<compile_context>
chip_gen: v6e
topology: v6e:2x2x1
jax: 0.10.0
libtpu: 0.0.40
codegen_flags: <defaults>
</compile_context>

<pallas_src>
import functools

import jax
import jax.numpy as jnp
from jax import lax
from jax.experimental import pallas as pl
from jax.experimental.pallas import tpu as pltpu

BN_EPS = 1e-5

# (Cin, Cout, kernel, stride, padding) for the three conv layers.
CONV_CFG = (
    (3, 32, 8, 4, 1),
    (32, 64, 4, 2, 1),
    (64, 64, 3, 1, 0),
)


def _out_size(h, k, s, p):
    return (h + 2 * p - k) // s + 1


def _round_up(v, m):
    return ((v + m - 1) // m) * m


# ------------------------------ kernel helpers -------------------------------
def _bn_relu_fused(y, bn_row, mask, inv_cnt, out_scale):
    """Training-mode BatchNorm2d fused to a per-channel scale/shift + ReLU.

    y:        (M, C) f32 pre-BN activations, rows ordered (oh, ow, n_pad).
    bn_row:   (2, C)  gamma; beta.
    mask:     (M, 1)  1.0 for real batch rows, 0.0 for padding rows (excluded
              from the statistics; they are dropped in the wrapper and never
              contaminate real rows since conv never mixes batch entries).
    inv_cnt:  1 / (#real rows), static python float.
    out_scale: positive constant folded into scale/shift (pool factor).
    """
    gamma = bn_row[0:1, :]
    beta = bn_row[1:2, :]
    mean = jnp.sum(y * mask, axis=0, keepdims=True) * inv_cnt
    d = (y - mean) * mask
    var = jnp.sum(d * d, axis=0, keepdims=True) * inv_cnt
    scale = gamma * lax.rsqrt(var + BN_EPS) * out_scale      # rsqrt -> EUP slot
    shift = beta * out_scale - mean * scale
    return jnp.maximum(y * scale + shift, 0.0)


def _gather_im2col(g_ref, y_prev, n, oh_prev, ow_prev, c_in,
                   oh, ow, k, stride, pad):
    """Assemble the next layer's im2col matrix into VMEM scratch `g_ref`
    ((oh*ow*n, k*k*c_in), f32) from the previous layer's activation matrix
    `y_prev` (rows ordered (oh_prev, ow_prev, n), columns = c_in channels).

    Per kernel offset (kh, kw): gather oh*ow row blocks of n rows each
    (sublane-aligned 8-row slices since n % 8 == 0), concatenate along axis 0
    and write them as one c_in-wide column block.  The caller then issues a
    SINGLE MXU matmul with K = k*k*c_in.
    """
    zeros = jnp.zeros((n, c_in), dtype=y_prev.dtype)
    for kh in range(k):
        for kw in range(k):
            blocks = []
            for i in range(oh):
                for j in range(ow):
                    hp = i * stride + kh - pad
                    wp = j * stride + kw - pad
                    if 0 <= hp < oh_prev and 0 <= wp < ow_prev:
                        r = (hp * ow_prev + wp) * n
                        blocks.append(y_prev[r:r + n, :])
                    else:
                        blocks.append(zeros)          # zero padding ring
            off = (kh * k + kw) * c_in
            g_ref[:, off:off + c_in] = jnp.concatenate(blocks, axis=0)


# --------------------------------- kernel ------------------------------------
def _net_kernel(p1_ref, w1_ref, w2_ref, w3_ref, bn1_ref, bn2_ref, bn3_ref,
                mask_ref, o_ref, g2_ref, g3_ref, *, n, n_real, dims):
    (oh1, ow1), (oh2, ow2), (oh3, ow3) = dims
    c2_in, _, k2, s2, pd2 = CONV_CFG[1]
    c3_in, _, k3, s3, pd3 = CONV_CFG[2]
    m2 = oh2 * ow2 * n
    m3 = oh3 * ow3 * n

    mask1 = mask_ref[...]                  # (oh1*ow1*n, 1)
    mask2 = mask_ref[0:m2, :]              # mask pattern repeats every n rows,
    mask3 = mask_ref[0:m3, :]              # so smaller layers use a prefix.

    # conv1 + fused BN/ReLU: single bf16 MXU matmul (patches built in wrapper).
    y1 = jnp.dot(p1_ref[...], w1_ref[...], preferred_element_type=jnp.float32)
    y1 = _bn_relu_fused(y1, bn1_ref[...], mask1,
                        1.0 / float(oh1 * ow1 * n_real), 1.0)   # (m1, 32) f32

    # conv2: assemble im2col in VMEM scratch, ONE matmul with K = 512.
    _gather_im2col(g2_ref, y1, n, oh1, ow1, c2_in, oh2, ow2, k2, s2, pd2)
    y2 = jnp.dot(g2_ref[...].astype(jnp.bfloat16), w2_ref[...],
                 preferred_element_type=jnp.float32)
    y2 = _bn_relu_fused(y2, bn2_ref[...], mask2,
                        1.0 / float(oh2 * ow2 * n_real), 1.0)   # (m2, 64) f32

    # conv3: ONE matmul with K = 576; pool scale folded into BN3 scale/shift.
    _gather_im2col(g3_ref, y2, n, oh2, ow2, c3_in, oh3, ow3, k3, s3, pd3)
    y3 = jnp.dot(g3_ref[...].astype(jnp.bfloat16), w3_ref[...],
                 preferred_element_type=jnp.float32)
    y3 = _bn_relu_fused(y3, bn3_ref[...], mask3,
                        1.0 / float(oh3 * ow3 * n_real),
                        1.0 / float(oh3 * ow3))                 # (m3, 64) f32

    # AdaptiveAvgPool2d((1,1)) + flatten: sum over the spatial row groups
    # (the 1/(oh3*ow3) factor was folded into BN3 above).
    acc = y3[0:n, :]
    for pos in range(1, oh3 * ow3):
        acc = acc + y3[pos * n:(pos + 1) * n, :]
    o_ref[...] = acc                                            # (n, 64)


# ------------------------------- wrapper (JAX) --------------------------------
def _extract_patches_conv1(x_nchw, k, stride, pad):
    """HBM-side im2col for conv1 only.  Rows ordered (oh, ow, n); columns
    ordered (kh, kw, cin) to match the weight flattening used in the kernel."""
    N, C, H, W = x_nchw.shape
    xp = jnp.pad(x_nchw, ((0, 0), (0, 0), (pad, pad), (pad, pad)))
    OH = _out_size(H, k, stride, pad)
    OW = _out_size(W, k, stride, pad)
    cols = []
    for i in range(k):
        for j in range(k):
            cols.append(xp[:, :, i:i + stride * (OH - 1) + 1:stride,
                                 j:j + stride * (OW - 1) + 1:stride])
    p = jnp.stack(cols, axis=0)            # (k*k, N, C, OH, OW)
    p = p.transpose(3, 4, 1, 0, 2)         # (OH, OW, N, k*k, C)
    return p.reshape(OH * OW * N, k * k * C), OH, OW


def net_forward(x, params):
    """Forward pass of Net (training-mode BN).  x: (N, 3, H, W) f32 -> (N, 64)."""
    n_real = x.shape[0]
    n_pad = _round_up(n_real, 8)     # sublane-aligned per-position row groups
    if n_pad != n_real:
        x = jnp.pad(x, ((0, n_pad - n_real), (0, 0), (0, 0), (0, 0)))

    c1_in, c1, k1, s1, pd1 = CONV_CFG[0]
    c2_in, c2, k2, s2, pd2 = CONV_CFG[1]
    c3_in, c3, k3, s3, pd3 = CONV_CFG[2]

    p1, oh1, ow1 = _extract_patches_conv1(x, k1, s1, pd1)
    oh2, ow2 = _out_size(oh1, k2, s2, pd2), _out_size(ow1, k2, s2, pd2)
    oh3, ow3 = _out_size(oh2, k3, s3, pd3), _out_size(ow2, k3, s3, pd3)

    # bf16 MXU operands (accumulation / BN math stays f32 inside the kernel).
    p1 = p1.astype(jnp.bfloat16)
    # Flatten weights so rows line up with (kh, kw, cin)-ordered im2col columns.
    # Conv biases are intentionally NOT passed: training-mode BN cancels them.
    w1f = params["w1"].transpose(2, 3, 1, 0).reshape(-1, c1).astype(jnp.bfloat16)
    w2f = params["w2"].transpose(2, 3, 1, 0).reshape(-1, c2).astype(jnp.bfloat16)
    w3f = params["w3"].transpose(2, 3, 1, 0).reshape(-1, c3).astype(jnp.bfloat16)
    bn1 = jnp.concatenate([params["g1"], params["be1"]], axis=0)   # (2, 32)
    bn2 = jnp.concatenate([params["g2"], params["be2"]], axis=0)   # (2, 64)
    bn3 = jnp.concatenate([params["g3"], params["be3"]], axis=0)   # (2, 64)
    # Row mask (1 = real sample, 0 = batch padding); pattern repeats every
    # n_pad rows, the deeper (smaller) layers just use a prefix of it.
    mask = ((jnp.arange(oh1 * ow1 * n_pad) % n_pad) < n_real
            ).astype(jnp.float32).reshape(-1, 1)

    kernel = functools.partial(
        _net_kernel, n=n_pad, n_real=n_real,
        dims=((oh1, ow1), (oh2, ow2), (oh3, ow3)))

    def full_spec(shape):
        return pl.BlockSpec(shape, lambda i: (0,) * len(shape))

    inputs = (p1, w1f, w2f, w3f, bn1, bn2, bn3, mask)
    out = pl.pallas_call(
        kernel,
        out_shape=jax.ShapeDtypeStruct((n_pad, c3), jnp.float32),
        grid=(1,),
        in_specs=[full_spec(a.shape) for a in inputs],
        out_specs=full_spec((n_pad, c3)),
        scratch_shapes=[
            pltpu.VMEM((oh2 * ow2 * n_pad, k2 * k2 * c2_in), jnp.float32),
            pltpu.VMEM((oh3 * ow3 * n_pad, k3 * k3 * c3_in), jnp.float32),
        ],
        compiler_params=pltpu.CompilerParams(
            dimension_semantics=("arbitrary",)),
    )(*inputs)
    return out[:n_real]


# ---------------------------- pure-JAX reference ------------------------------
def net_forward_ref(x, params):
    def conv(x, w, b, stride, pad):
        y = lax.conv_general_dilated(
            x, w, (stride, stride), [(pad, pad), (pad, pad)],
            dimension_numbers=("NCHW", "OIHW", "NCHW"))
        return y + b.reshape(1, -1, 1, 1)      # keep bias: BN must cancel it

    def bn_relu(y, g, be):
        mean = y.mean(axis=(0, 2, 3), keepdims=True)
        var = ((y - mean) ** 2).mean(axis=(0, 2, 3), keepdims=True)
        yhat = (y - mean) * lax.rsqrt(var + BN_EPS)
        return jnp.maximum(yhat * g.reshape(1, -1, 1, 1) + be.reshape(1, -1, 1, 1), 0.0)

    y = bn_relu(conv(x, params["w1"], params["b1"][0], 4, 1), params["g1"][0], params["be1"][0])
    y = bn_relu(conv(y, params["w2"], params["b2"][0], 2, 1), params["g2"][0], params["be2"][0])
    y = bn_relu(conv(y, params["w3"], params["b3"][0], 1, 0), params["g3"][0], params["be3"][0])
    return y.mean(axis=(2, 3))                 # AdaptiveAvgPool2d((1,1)) + flatten


# ----------------------------------- main -------------------------------------
def init_params(key):
    ks = jax.random.split(key, 12)
    p = {}
    p["w1"] = 0.05 * jax.random.normal(ks[0], (32, 3, 8, 8), jnp.float32)
    p["b1"] = 0.01 * jax.random.normal(ks[1], (1, 32), jnp.float32)
    p["g1"] = 1.0 + 0.1 * jax.random.normal(ks[2], (1, 32), jnp.float32)
    p["be1"] = 0.01 * jax.random.normal(ks[3], (1, 32), jnp.float32)
    p["w2"] = 0.05 * jax.random.normal(ks[4], (64, 32, 4, 4), jnp.float32)
    p["b2"] = 0.01 * jax.random.normal(ks[5], (1, 64), jnp.float32)
    p["g2"] = 1.0 + 0.1 * jax.random.normal(ks[6], (1, 64), jnp.float32)
    p["be2"] = 0.01 * jax.random.normal(ks[7], (1, 64), jnp.float32)
    p["w3"] = 0.05 * jax.random.normal(ks[8], (64, 64, 3, 3), jnp.float32)
    p["b3"] = 0.01 * jax.random.normal(ks[9], (1, 64), jnp.float32)
    p["g3"] = 1.0 + 0.1 * jax.random.normal(ks[10], (1, 64), jnp.float32)
    p["be3"] = 0.01 * jax.random.normal(ks[11], (1, 64), jnp.float32)
    return p


if __name__ == "__main__":
    key = jax.random.PRNGKey(0)
    kx, kp = jax.random.split(key)
    # Small input consistent with the conv stack: 36x36 -> 8x8 -> 4x4 -> 2x2 -> pool.
    N, C, H, W = 2, 3, 36, 36
    x = jax.random.normal(kx, (N, C, H, W), jnp.float32)
    params = init_params(kp)

    out = jax.block_until_ready(jax.jit(net_forward)(x, params))
    assert out.shape == (N, 64), out.shape

    ref = jax.block_until_ready(net_forward_ref(x, params))
    # bf16 MXU operands -> tolerance loosened vs the pure-f32 reference.
    assert jnp.allclose(out, ref, atol=5e-2, rtol=5e-2), \
        float(jnp.max(jnp.abs(out - ref)))

    print("KERNEL_OK")
</pallas_src>

<mosaic_0001>
module attributes {stable_mosaic.version = 11 : i64} {
  func.func @_net_kernel(%arg0: i32, %arg1: memref<512x192xbf16, #tpu.memory_space<vmem>>, %arg2: memref<192x32xbf16, #tpu.memory_space<vmem>>, %arg3: memref<512x64xbf16, #tpu.memory_space<vmem>>, %arg4: memref<576x64xbf16, #tpu.memory_space<vmem>>, %arg5: memref<2x32xf32, #tpu.memory_space<vmem>>, %arg6: memref<2x64xf32, #tpu.memory_space<vmem>>, %arg7: memref<2x64xf32, #tpu.memory_space<vmem>>, %arg8: memref<512x1xf32, #tpu.memory_space<vmem>>, %arg9: memref<8x64xf32, #tpu.memory_space<vmem>>, %arg10: memref<128x512xf32, #tpu.memory_space<vmem>>, %arg11: memref<32x576xf32, #tpu.memory_space<vmem>>) attributes {dimension_semantics = [#tpu.dimension_semantics<arbitrary>], iteration_bounds = array<i64: 1>, scalar_prefetch = 0 : i64, scratch_operands = 2 : i64, tpu.core_type = #tpu.core_type<tc>, window_params = [{pipeline_mode = #tpu.pipeline_mode<synchronous>, transform_indices = @transform_0, window_bounds = array<i64: 512, 192>}, {pipeline_mode = #tpu.pipeline_mode<synchronous>, transform_indices = @transform_1, window_bounds = array<i64: 192, 32>}, {pipeline_mode = #tpu.pipeline_mode<synchronous>, transform_indices = @transform_2, window_bounds = array<i64: 512, 64>}, {pipeline_mode = #tpu.pipeline_mode<synchronous>, transform_indices = @transform_3, window_bounds = array<i64: 576, 64>}, {pipeline_mode = #tpu.pipeline_mode<synchronous>, transform_indices = @transform_4, window_bounds = array<i64: 2, 32>}, {pipeline_mode = #tpu.pipeline_mode<synchronous>, transform_indices = @transform_5, window_bounds = array<i64: 2, 64>}, {pipeline_mode = #tpu.pipeline_mode<synchronous>, transform_indices = @transform_6, window_bounds = array<i64: 2, 64>}, {pipeline_mode = #tpu.pipeline_mode<synchronous>, transform_indices = @transform_7, window_bounds = array<i64: 512, 1>}, {pipeline_mode = #tpu.pipeline_mode<synchronous>, transform_indices = @transform_8, window_bounds = array<i64: 8, 64>}]} {
    %c0 = arith.constant 0 : index
    %c0_0 = arith.constant 0 : index
    %0 = vector.load %arg8[%c0, %c0_0] : memref<512x1xf32, #tpu.memory_space<vmem>>, vector<512x1xf32>
    %c0_1 = arith.constant 0 : index
    %c0_2 = arith.constant 0 : index
    %1 = vector.load %arg8[%c0_1, %c0_2] : memref<512x1xf32, #tpu.memory_space<vmem>>, vector<128x1xf32>
    %c0_3 = arith.constant 0 : index
    %c0_4 = arith.constant 0 : index
    %2 = vector.load %arg8[%c0_3, %c0_4] : memref<512x1xf32, #tpu.memory_space<vmem>>, vector<32x1xf32>
    %c0_5 = arith.constant 0 : index
    %c0_6 = arith.constant 0 : index
    %3 = vector.load %arg1[%c0_5, %c0_6] : memref<512x192xbf16, #tpu.memory_space<vmem>>, vector<512x192xbf16>
    %c0_7 = arith.constant 0 : index
    %c0_8 = arith.constant 0 : index
    %4 = vector.load %arg2[%c0_7, %c0_8] : memref<192x32xbf16, #tpu.memory_space<vmem>>, vector<192x32xbf16>
    %cst = arith.constant dense<0.000000e+00> : vector<512x32xf32>
    %5 = tpu.matmul %3, %4, %cst {dimension_numbers = #tpu.dot_dimension_numbers<[1], [0], [0], [1], [0, 0, 1, 1], [], []>} : vector<512x192xbf16>, vector<192x32xbf16>, vector<512x32xf32> -> vector<512x32xf32>
    %c0_9 = arith.constant 0 : index
    %c0_10 = arith.constant 0 : index
    %6 = vector.load %arg5[%c0_9, %c0_10] : memref<2x32xf32, #tpu.memory_space<vmem>>, vector<2x32xf32>
    %7 = vector.extract_strided_slice %6 {offsets = [0, 0], sizes = [1, 32], strides = [1, 1]} : vector<2x32xf32> to vector<1x32xf32>
    %8 = vector.extract_strided_slice %6 {offsets = [1, 0], sizes = [1, 32], strides = [1, 1]} : vector<2x32xf32> to vector<1x32xf32>
    %9 = vector.broadcast %0 : vector<512x1xf32> to vector<512x32xf32>
    %10 = arith.mulf %5, %9 : vector<512x32xf32>
    %cst_11 = arith.constant dense<0.000000e+00> : vector<32xf32>
    %11 = vector.multi_reduction <add>, %10, %cst_11 [0] : vector<512x32xf32> to vector<32xf32>
    %12 = vector.shape_cast %11 : vector<32xf32> to vector<1x32xf32>
    %cst_12 = arith.constant 7.812500e-03 : f32
    %13 = vector.broadcast %cst_12 : f32 to vector<1x32xf32>
    %14 = arith.mulf %12, %13 : vector<1x32xf32>
    %15 = vector.broadcast %14 : vector<1x32xf32> to vector<512x32xf32>
    %16 = arith.subf %5, %15 : vector<512x32xf32>
    %17 = vector.broadcast %0 : vector<512x1xf32> to vector<512x32xf32>
    %18 = arith.mulf %16, %17 : vector<512x32xf32>
    %19 = arith.mulf %18, %18 : vector<512x32xf32>
    %cst_13 = arith.constant dense<0.000000e+00> : vector<32xf32>
    %20 = vector.multi_reduction <add>, %19, %cst_13 [0] : vector<512x32xf32> to vector<32xf32>
    %21 = vector.shape_cast %20 : vector<32xf32> to vector<1x32xf32>
    %cst_14 = arith.constant 7.812500e-03 : f32
    %22 = vector.broadcast %cst_14 : f32 to vector<1x32xf32>
    %23 = arith.mulf %21, %22 : vector<1x32xf32>
    %cst_15 = arith.constant 9.99999974E-6 : f32
    %24 = vector.broadcast %cst_15 : f32 to vector<1x32xf32>
    %25 = arith.addf %23, %24 : vector<1x32xf32>
    %26 = math.rsqrt %25 : vector<1x32xf32>
    %27 = arith.mulf %7, %26 : vector<1x32xf32>
    %cst_16 = arith.constant 1.000000e+00 : f32
    %28 = vector.broadcast %cst_16 : f32 to vector<1x32xf32>
    %29 = arith.mulf %27, %28 : vector<1x32xf32>
    %cst_17 = arith.constant 1.000000e+00 : f32
    %30 = vector.broadcast %cst_17 : f32 to vector<1x32xf32>
    %31 = arith.mulf %8, %30 : vector<1x32xf32>
    %32 = arith.mulf %14, %29 : vector<1x32xf32>
    %33 = arith.subf %31, %32 : vector<1x32xf32>
    %34 = vector.broadcast %29 : vector<1x32xf32> to vector<512x32xf32>
    %35 = arith.mulf %5, %34 : vector<512x32xf32>
    %36 = vector.broadcast %33 : vector<1x32xf32> to vector<512x32xf32>
    %37 = arith.addf %35, %36 : vector<512x32xf32>
    %cst_18 = arith.constant 0.000000e+00 : f32
    %38 = vector.broadcast %cst_18 : f32 to vector<512x32xf32>
    %39 = arith.maximumf %37, %38 : vector<512x32xf32>
    %cst_19 = arith.constant 0.000000e+00 : f32
    %40 = vector.broadcast %cst_19 : f32 to vector<8x32xf32>
    %41 = vector.extract_strided_slice %39 {offsets = [72, 0], sizes = [8, 32], strides = [1, 1]} : vector<512x32xf32> to vector<8x32xf32>
    %42 = vector.extract_strided_slice %39 {offsets = [88, 0], sizes = [8, 32], strides = [1, 1]} : vector<512x32xf32> to vector<8x32xf32>
    %43 = vector.extract_strided_slice %39 {offsets = [104, 0], sizes = [8, 32], strides = [1, 1]} : vector<512x32xf32> to vector<8x32xf32>
    %44 = vector.extract_strided_slice %39 {offsets = [200, 0], sizes = [8, 32], strides = [1, 1]} : vector<512x32xf32> to vector<8x32xf32>
    %45 = vector.extract_strided_slice %39 {offsets = [216, 0], sizes = [8, 32], strides = [1, 1]} : vector<512x32xf32> to vector<8x32xf32>
    %46 = vector.extract_strided_slice %39 {offsets = [232, 0], sizes = [8, 32], strides = [1, 1]} : vector<512x32xf32> to vector<8x32xf32>
    %47 = vector.extract_strided_slice %39 {offsets = [328, 0], sizes = [8, 32], strides = [1, 1]} : vector<512x32xf32> to vector<8x32xf32>
    %48 = vector.extract_strided_slice %39 {offsets = [344, 0], sizes = [8, 32], strides = [1, 1]} : vector<512x32xf32> to vector<8x32xf32>
    %49 = vector.extract_strided_slice %39 {offsets = [360, 0], sizes = [8, 32], strides = [1, 1]} : vector<512x32xf32> to vector<8x32xf32>
    %50 = tpu.concatenate %40, %40, %40, %40, %40, %41, %42, %43, %40, %44, %45, %46, %40, %47, %48, %49 in 0 : vector<8x32xf32>, vector<8x32xf32>, vector<8x32xf32>, vector<8x32xf32>, vector<8x32xf32>, vector<8x32xf32>, vector<8x32xf32>, vector<8x32xf32>, vector<8x32xf32>, vector<8x32xf32>, vector<8x32xf32>, vector<8x32xf32>, vector<8x32xf32>, vector<8x32xf32>, vector<8x32xf32>, vector<8x32xf32> -> vector<128x32xf32>
    %c0_20 = arith.constant 0 : index
    %c0_21 = arith.constant 0 : index
    %51 = vector.load %arg10[%c0_20, %c0_21] : memref<128x512xf32, #tpu.memory_space<vmem>>, vector<128x32xf32>
    tpu.vector_store %arg10[%c0_20, %c0_21], %50 {strides = array<i32>} : memref<128x512xf32, #tpu.memory_space<vmem>>, vector<128x32xf32>,
    %52 = vector.extract_strided_slice %39 {offsets = [64, 0], sizes = [8, 32], strides = [1, 1]} : vector<512x32xf32> to vector<8x32xf32>
    %53 = vector.extract_strided_slice %39 {offsets = [80, 0], sizes = [8, 32], strides = [1, 1]} : vector<512x32xf32> to vector<8x32xf32>
    %54 = vector.extract_strided_slice %39 {offsets = [96, 0], sizes = [8, 32], strides = [1, 1]} : vector<512x32xf32> to vector<8x32xf32>
    %55 = vector.extract_strided_slice %39 {offsets = [112, 0], sizes = [8, 32], strides = [1, 1]} : vector<512x32xf32> to vector<8x32xf32>
    %56 = vector.extract_strided_slice %39 {offsets = [192, 0], sizes = [8, 32], strides = [1, 1]} : vector<512x32xf32> to vector<8x32xf32>
    %57 = vector.extract_strided_slice %39 {offsets = [208, 0], sizes = [8, 32], strides = [1, 1]} : vector<512x32xf32> to vector<8x32xf32>
    %58 = vector.extract_strided_slice %39 {offsets = [224, 0], sizes = [8, 32], strides = [1, 1]} : vector<512x32xf32> to vector<8x32xf32>
    %59 = vector.extract_strided_slice %39 {offsets = [240, 0], sizes = [8, 32], strides = [1, 1]} : vector<512x32xf32> to vector<8x32xf32>
    %60 = vector.extract_strided_slice %39 {offsets = [320, 0], sizes = [8, 32], strides = [1, 1]} : vector<512x32xf32> to vector<8x32xf32>
    %61 = vector.extract_strided_slice %39 {offsets = [336, 0], sizes = [8, 32], strides = [1, 1]} : vector<512x32xf32> to vector<8x32xf32>
    %62 = vector.extract_strided_slice %39 {offsets = [352, 0], sizes = [8, 32], strides = [1, 1]} : vector<512x32xf32> to vector<8x32xf32>
    %63 = vector.extract_strided_slice %39 {offsets = [368, 0], sizes = [8, 32], strides = [1, 1]} : vector<512x32xf32> to vector<8x32xf32>
    %64 = tpu.concatenate %40, %40, %40, %40, %52, %53, %54, %55, %56, %57, %58, %59, %60, %61, %62, %63 in 0 : vector<8x32xf32>, vector<8x32xf32>, vector<8x32xf32>, vector<8x32xf32>, vector<8x32xf32>, vector<8x32xf32>, vector<8x32xf32>, vector<8x32xf32>, vector<8x32xf32>, vector<8x32xf32>, vector<8x32xf32>, vector<8x32xf32>, vector<8x32xf32>, vector<8x32xf32>, vector<8x32xf32>, vector<8x32xf32> -> vector<128x32xf32>
    %c0_22 = arith.constant 0 : index
    %c32 = arith.constant 32 : index
    %65 = vector.load %arg10[%c0_22, %c32] : memref<128x512xf32, #tpu.memory_space<vmem>>, vector<128x32xf32>
    tpu.vector_store %arg10[%c0_22, %c32], %64 {strides = array<i32>} : memref<128x512xf32, #tpu.memory_space<vmem>>, vector<128x32xf32>,
    %66 = vector.extract_strided_slice %39 {offsets = [72, 0], sizes = [8, 32], strides = [1, 1]} : vector<512x32xf32> to vector<8x32xf32>
    %67 = vector.extract_strided_slice %39 {offsets = [88, 0], sizes = [8, 32], strides = [1, 1]} : vector<512x32xf32> to vector<8x32xf32>
    %68 = vector.extract_strided_slice %39 {offsets = [104, 0], sizes = [8, 32], strides = [1, 1]} : vector<512x32xf32> to vector<8x32xf32>
    %69 = vector.extract_strided_slice %39 {offsets = [120, 0], sizes = [8, 32], strides = [1, 1]} : vector<512x32xf32> to vector<8x32xf32>
    %70 = vector.extract_strided_slice %39 {offsets = [200, 0], sizes = [8, 32], strides = [1, 1]} : vector<512x32xf32> to vector<8x32xf32>
    %71 = vector.extract_strided_slice %39 {offsets = [216, 0], sizes = [8, 32], strides = [1, 1]} : vector<512x32xf32> to vector<8x32xf32>
    %72 = vector.extract_strided_slice %39 {offsets = [232, 0], sizes = [8, 32], strides = [1, 1]} : vector<512x32xf32> to vector<8x32xf32>
    %73 = vector.extract_strided_slice %39 {offsets = [248, 0], sizes = [8, 32], strides = [1, 1]} : vector<512x32xf32> to vector<8x32xf32>
    %74 = vector.extract_strided_slice %39 {offsets = [328, 0], sizes = [8, 32], strides = [1, 1]} : vector<512x32xf32> to vector<8x32xf32>
    %75 = vector.extract_strided_slice %39 {offsets = [344, 0], sizes = [8, 32], strides = [1, 1]} : vector<512x32xf32> to vector<8x32xf32>
    %76 = vector.extract_strided_slice %39 {offsets = [360, 0], sizes = [8, 32], strides = [1, 1]} : vector<512x32xf32> to vector<8x32xf32>
    %77 = vector.extract_strided_slice %39 {offsets = [376, 0], sizes = [8, 32], strides = [1, 1]} : vector<512x32xf32> to vector<8x32xf32>
    %78 = tpu.concatenate %40, %40, %40, %40, %66, %67, %68, %69, %70, %71, %72, %73, %74, %75, %76, %77 in 0 : vector<8x32xf32>, vector<8x32xf32>, vector<8x32xf32>, vector<8x32xf32>, vector<8x32xf32>, vector<8x32xf32>, vector<8x32xf32>, vector<8x32xf32>, vector<8x32xf32>, vector<8x32xf32>, vector<8x32xf32>, vector<8x32xf32>, vector<8x32xf32>, vector<8x32xf32>, vector<8x32xf32>, vector<8x32xf32> -> vector<128x32xf32>
    %c0_23 = arith.constant 0 : index
    %c64 = arith.constant 64 : index
    %79 = vector.load %arg10[%c0_23, %c64] : memref<128x512xf32, #tpu.memory_space<vmem>>, vector<128x32xf32>
    tpu.vector_store %arg10[%c0_23, %c64], %78 {strides = array<i32>} : memref<128x512xf32, #tpu.memory_space<vmem>>, vector<128x32xf32>,
    %80 = vector.extract_strided_slice %39 {offsets = [80, 0], sizes = [8, 32], strides = [1, 1]} : vector<512x32xf32> to vector<8x32xf32>
    %81 = vector.extract_strided_slice %39 {offsets = [96, 0], sizes = [8, 32], strides = [1, 1]} : vector<512x32xf32> to vector<8x32xf32>
    %82 = vector.extract_strided_slice %39 {offsets = [112, 0], sizes = [8, 32], strides = [1, 1]} : vector<512x32xf32> to vector<8x32xf32>
    %83 = vector.extract_strided_slice %39 {offsets = [208, 0], sizes = [8, 32], strides = [1, 1]} : vector<512x32xf32> to vector<8x32xf32>
    %84 = vector.extract_strided_slice %39 {offsets = [224, 0], sizes = [8, 32], strides = [1, 1]} : vector<512x32xf32> to vector<8x32xf32>
    %85 = vector.extract_strided_slice %39 {offsets = [240, 0], sizes = [8, 32], strides = [1, 1]} : vector<512x32xf32> to vector<8x32xf32>
    %86 = vector.extract_strided_slice %39 {offsets = [336, 0], sizes = [8, 32], strides = [1, 1]} : vector<512x32xf32> to vector<8x32xf32>
    %87 = vector.extract_strided_slice %39 {offsets = [352, 0], sizes = [8, 32], strides = [1, 1]} : vector<512x32xf32> to vector<8x32xf32>
    %88 = vector.extract_strided_slice %39 {offsets = [368, 0], sizes = [8, 32], strides = [1, 1]} : vector<512x32xf32> to vector<8x32xf32>
    %89 = tpu.concatenate %40, %40, %40, %40, %80, %81, %82, %40, %83, %84, %85, %40, %86, %87, %88, %40 in 0 : vector<8x32xf32>, vector<8x32xf32>, vector<8x32xf32>, vector<8x32xf32>, vector<8x32xf32>, vector<8x32xf32>, vector<8x32xf32>, vector<8x32xf32>, vector<8x32xf32>, vector<8x32xf32>, vector<8x32xf32>, vector<8x32xf32>, vector<8x32xf32>, vector<8x32xf32>, vector<8x32xf32>, vector<8x32xf32> -> vector<128x32xf32>
    %c0_24 = arith.constant 0 : index
    %c96 = arith.constant 96 : index
    %90 = vector.load %arg10[%c0_24, %c96] : memref<128x512xf32, #tpu.memory_space<vmem>>, vector<128x32xf32>
    tpu.vector_store %arg10[%c0_24, %c96], %89 {strides = array<i32>} : memref<128x512xf32, #tpu.memory_space<vmem>>, vector<128x32xf32>,
    %91 = vector.extract_strided_slice %39 {offsets = [8, 0], sizes = [8, 32], strides = [1, 1]} : vector<512x32xf32> to vector<8x32xf32>
    %92 = vector.extract_strided_slice %39 {offsets = [24, 0], sizes = [8, 32], strides = [1, 1]} : vector<512x32xf32> to vector<8x32xf32>
    %93 = vector.extract_strided_slice %39 {offsets = [40, 0], sizes = [8, 32], strides = [1, 1]} : vector<512x32xf32> to vector<8x32xf32>
    %94 = vector.extract_strided_slice %39 {offsets = [136, 0], sizes = [8, 32], strides = [1, 1]} : vector<512x32xf32> to vector<8x32xf32>
    %95 = vector.extract_strided_slice %39 {offsets = [152, 0], sizes = [8, 32], strides = [1, 1]} : vector<512x32xf32> to vector<8x32xf32>
    %96 = vector.extract_strided_slice %39 {offsets = [168, 0], sizes = [8, 32], strides = [1, 1]} : vector<512x32xf32> to vector<8x32xf32>
    %97 = vector.extract_strided_slice %39 {offsets = [264, 0], sizes = [8, 32], strides = [1, 1]} : vector<512x32xf32> to vector<8x32xf32>
    %98 = vector.extract_strided_slice %39 {offsets = [280, 0], sizes = [8, 32], strides = [1, 1]} : vector<512x32xf32> to vector<8x32xf32>
    %99 = vector.extract_strided_slice %39 {offsets = [296, 0], sizes = [8, 32], strides = [1, 1]} : vector<512x32xf32> to vector<8x32xf32>
    %100 = vector.extract_strided_slice %39 {offsets = [392, 0], sizes = [8, 32], strides = [1, 1]} : vector<512x32xf32> to vector<8x32xf32>
    %101 = vector.extract_strided_slice %39 {offsets = [408, 0], sizes = [8, 32], strides = [1, 1]} : vector<512x32xf32> to vector<8x32xf32>
    %102 = vector.extract_strided_slice %39 {offsets = [424, 0], sizes = [8, 32], strides = [1, 1]} : vector<512x32xf32> to vector<8x32xf32>
    %103 = tpu.concatenate %40, %91, %92, %93, %40, %94, %95, %96, %40, %97, %98, %99, %40, %100, %101, %102 in 0 : vector<8x32xf32>, vector<8x32xf32>, vector<8x32xf32>, vector<8x32xf32>, vector<8x32xf32>, vector<8x32xf32>, vector<8x32xf32>, vector<8x32xf32>, vector<8x32xf32>, vector<8x32xf32>, vector<8x32xf32>, vector<8x32xf32>, vector<8x32xf32>, vector<8x32xf32>, vector<8x32xf32>, vector<8x32xf32> -> vector<128x32xf32>
    %c0_25 = arith.constant 0 : index
    %c128 = arith.constant 128 : index
    %104 = vector.load %arg10[%c0_25, %c128] : memref<128x512xf32, #tpu.memory_space<vmem>>, vector<128x32xf32>
    tpu.vector_store %arg10[%c0_25, %c128], %103 {strides = array<i32>} : memref<128x512xf32, #tpu.memory_space<vmem>>, vector<128x32xf32>,
    %105 = vector.extract_strided_slice %39 {offsets = [0, 0], sizes = [8, 32], strides = [1, 1]} : vector<512x32xf32> to vector<8x32xf32>
    %106 = vector.extract_strided_slice %39 {offsets = [16, 0], sizes = [8, 32], strides = [1, 1]} : vector<512x32xf32> to vector<8x32xf32>
    %107 = vector.extract_strided_slice %39 {offsets = [32, 0], sizes = [8, 32], strides = [1, 1]} : vector<512x32xf32> to vector<8x32xf32>
    %108 = vector.extract_strided_slice %39 {offsets = [48, 0], sizes = [8, 32], strides = [1, 1]} : vector<512x32xf32> to vector<8x32xf32>
    %109 = vector.extract_strided_slice %39 {offsets = [128, 0], sizes = [8, 32], strides = [1, 1]} : vector<512x32xf32> to vector<8x32xf32>
    %110 = vector.extract_strided_slice %39 {offsets = [144, 0], sizes = [8, 32], strides = [1, 1]} : vector<512x32xf32> to vector<8x32xf32>
    %111 = vector.extract_strided_slice %39 {offsets = [160, 0], sizes = [8, 32], strides = [1, 1]} : vector<512x32xf32> to vector<8x32xf32>
    %112 = vector.extract_strided_slice %39 {offsets = [176, 0], sizes = [8, 32], strides = [1, 1]} : vector<512x32xf32> to vector<8x32xf32>
    %113 = vector.extract_strided_slice %39 {offsets = [256, 0], sizes = [8, 32], strides = [1, 1]} : vector<512x32xf32> to vector<8x32xf32>
    %114 = vector.extract_strided_slice %39 {offsets = [272, 0], sizes = [8, 32], strides = [1, 1]} : vector<512x32xf32> to vector<8x32xf32>
    %115 = vector.extract_strided_slice %39 {offsets = [288, 0], sizes = [8, 32], strides = [1, 1]} : vector<512x32xf32> to vector<8x32xf32>
    %116 = vector.extract_strided_slice %39 {offsets = [304, 0], sizes = [8, 32], strides = [1, 1]} : vector<512x32xf32> to vector<8x32xf32>
    %117 = vector.extract_strided_slice %39 {offsets = [384, 0], sizes = [8, 32], strides = [1, 1]} : vector<512x32xf32> to vector<8x32xf32>
    %118 = vector.extract_strided_slice %39 {offsets = [400, 0], sizes = [8, 32], strides = [1, 1]} : vector<512x32xf32> to vector<8x32xf32>
    %119 = vector.extract_strided_slice %39 {offsets = [416, 0], sizes = [8, 32], strides = [1, 1]} : vector<512x32xf32> to vector<8x32xf32>
    %120 = vector.extract_strided_slice %39 {offsets = [432, 0], sizes = [8, 32], strides = [1, 1]} : vector<512x32xf32> to vector<8x32xf32>
    %121 = tpu.concatenate %105, %106, %107, %108, %109, %110, %111, %112, %113, %114, %115, %116, %117, %118, %119, %120 in 0 : vector<8x32xf32>, vector<8x32xf32>, vector<8x32xf32>, vector<8x32xf32>, vector<8x32xf32>, vector<8x32xf32>, vector<8x32xf32>, vector<8x32xf32>, vector<8x32xf32>, vector<8x32xf32>, vector<8x32xf32>, vector<8x32xf32>, vector<8x32xf32>, vector<8x32xf32>, vector<8x32xf32>, vector<8x32xf32> -> vector<128x32xf32>
    %c0_26 = arith.constant 0 : index
    %c160 = arith.constant 160 : index
    %122 = vector.load %arg10[%c0_26, %c160] : memref<128x512xf32, #tpu.memory_space<vmem>>, vector<128x32xf32>
    tpu.vector_store %arg10[%c0_26, %c160], %121 {strides = array<i32>} : memref<128x512xf32, #tpu.memory_space<vmem>>, vector<128x32xf32>,
    %123 = vector.extract_strided_slice %39 {offsets = [8, 0], sizes = [8, 32], strides = [1, 1]} : vector<512x32xf32> to vector<8x32xf32>
    %124 = vector.extract_strided_slice %39 {offsets = [24, 0], sizes = [8, 32], strides = [1, 1]} : vector<512x32xf32> to vector<8x32xf32>
    %125 = vector.extract_strided_slice %39 {offsets = [40, 0], sizes = [8, 32], strides = [1, 1]} : vector<512x32xf32> to vector<8x32xf32>
    %126 = vector.extract_strided_slice %39 {offsets = [56, 0], sizes = [8, 32], strides = [1, 1]} : vector<512x32xf32> to vector<8x32xf32>
    %127 = vector.extract_strided_slice %39 {offsets = [136, 0], sizes = [8, 32], strides = [1, 1]} : vector<512x32xf32> to vector<8x32xf32>
    %128 = vector.extract_strided_slice %39 {offsets = [152, 0], sizes = [8, 32], strides = [1, 1]} : vector<512x32xf32> to vector<8x32xf32>
    %129 = vector.extract_strided_slice %39 {offsets = [168, 0], sizes = [8, 32], strides = [1, 1]} : vector<512x32xf32> to vector<8x32xf32>
    %130 = vector.extract_strided_slice %39 {offsets = [184, 0], sizes = [8, 32], strides = [1, 1]} : vector<512x32xf32> to vector<8x32xf32>
    %131 = vector.extract_strided_slice %39 {offsets = [264, 0], sizes = [8, 32], strides = [1, 1]} : vector<512x32xf32> to vector<8x32xf32>
    %132 = vector.extract_strided_slice %39 {offsets = [280, 0], sizes = [8, 32], strides = [1, 1]} : vector<512x32xf32> to vector<8x32xf32>
    %133 = vector.extract_strided_slice %39 {offsets = [296, 0], sizes = [8, 32], strides = [1, 1]} : vector<512x32xf32> to vector<8x32xf32>
    %134 = vector.extract_strided_slice %39 {offsets = [312, 0], sizes = [8, 32], strides = [1, 1]} : vector<512x32xf32> to vector<8x32xf32>
    %135 = vector.extract_strided_slice %39 {offsets = [392, 0], sizes = [8, 32], strides = [1, 1]} : vector<512x32xf32> to vector<8x32xf32>
    %136 = vector.extract_strided_slice %39 {offsets = [408, 0], sizes = [8, 32], strides = [1, 1]} : vector<512x32xf32> to vector<8x32xf32>
    %137 = vector.extract_strided_slice %39 {offsets = [424, 0], sizes = [8, 32], strides = [1, 1]} : vector<512x32xf32> to vector<8x32xf32>
    %138 = vector.extract_strided_slice %39 {offsets = [440, 0], sizes = [8, 32], strides = [1, 1]} : vector<512x32xf32> to vector<8x32xf32>
    %139 = tpu.concatenate %123, %124, %125, %126, %127, %128, %129, %130, %131, %132, %133, %134, %135, %136, %137, %138 in 0 : vector<8x32xf32>, vector<8x32xf32>, vector<8x32xf32>, vector<8x32xf32>, vector<8x32xf32>, vector<8x32xf32>, vector<8x32xf32>, vector<8x32xf32>, vector<8x32xf32>, vector<8x32xf32>, vector<8x32xf32>, vector<8x32xf32>, vector<8x32xf32>, vector<8x32xf32>, vector<8x32xf32>, vector<8x32xf32> -> vector<128x32xf32>
    %c0_27 = arith.constant 0 : index
    %c192 = arith.constant 192 : index
    %140 = vector.load %arg10[%c0_27, %c192] : memref<128x512xf32, #tpu.memory_space<vmem>>, vector<128x32xf32>
    tpu.vector_store %arg10[%c0_27, %c192], %139 {strides = array<i32>} : memref<128x512xf32, #tpu.memory_space<vmem>>, vector<128x32xf32>,
    %141 = vector.extract_strided_slice %39 {offsets = [16, 0], sizes = [8, 32], strides = [1, 1]} : vector<512x32xf32> to vector<8x32xf32>
    %142 = vector.extract_strided_slice %39 {offsets = [32, 0], sizes = [8, 32], strides = [1, 1]} : vector<512x32xf32> to vector<8x32xf32>
    %143 = vector.extract_strided_slice %39 {offsets = [48, 0], sizes = [8, 32], strides = [1, 1]} : vector<512x32xf32> to vector<8x32xf32>
    %144 = vector.extract_strided_slice %39 {offsets = [144, 0], sizes = [8, 32], strides = [1, 1]} : vector<512x32xf32> to vector<8x32xf32>
    %145 = vector.extract_strided_slice %39 {offsets = [160, 0], sizes = [8, 32], strides = [1, 1]} : vector<512x32xf32> to vector<8x32xf32>
    %146 = vector.extract_strided_slice %39 {offsets = [176, 0], sizes = [8, 32], strides = [1, 1]} : vector<512x32xf32> to vector<8x32xf32>
    %147 = vector.extract_strided_slice %39 {offsets = [272, 0], sizes = [8, 32], strides = [1, 1]} : vector<512x32xf32> to vector<8x32xf32>
    %148 = vector.extract_strided_slice %39 {offsets = [288, 0], sizes = [8, 32], strides = [1, 1]} : vector<512x32xf32> to vector<8x32xf32>
    %149 = vector.extract_strided_slice %39 {offsets = [304, 0], sizes = [8, 32], strides = [1, 1]} : vector<512x32xf32> to vector<8x32xf32>
    %150 = vector.extract_strided_slice %39 {offsets = [400, 0], sizes = [8, 32], strides = [1, 1]} : vector<512x32xf32> to vector<8x32xf32>
    %151 = vector.extract_strided_slice %39 {offsets = [416, 0], sizes = [8, 32], strides = [1, 1]} : vector<512x32xf32> to vector<8x32xf32>
    %152 = vector.extract_strided_slice %39 {offsets = [432, 0], sizes = [8, 32], strides = [1, 1]} : vector<512x32xf32> to vector<8x32xf32>
    %153 = tpu.concatenate %141, %142, %143, %40, %144, %145, %146, %40, %147, %148, %149, %40, %150, %151, %152, %40 in 0 : vector<8x32xf32>, vector<8x32xf32>, vector<8x32xf32>, vector<8x32xf32>, vector<8x32xf32>, vector<8x32xf32>, vector<8x32xf32>, vector<8x32xf32>, vector<8x32xf32>, vector<8x32xf32>, vector<8x32xf32>, vector<8x32xf32>, vector<8x32xf32>, vector<8x32xf32>, vector<8x32xf32>, vector<8x32xf32> -> vector<128x32xf32>
    %c0_28 = arith.constant 0 : index
    %c224 = arith.constant 224 : index
    %154 = vector.load %arg10[%c0_28, %c224] : memref<128x512xf32, #tpu.memory_space<vmem>>, vector<128x32xf32>
    tpu.vector_store %arg10[%c0_28, %c224], %153 {strides = array<i32>} : memref<128x512xf32, #tpu.memory_space<vmem>>, vector<128x32xf32>,
    %155 = vector.extract_strided_slice %39 {offsets = [72, 0], sizes = [8, 32], strides = [1, 1]} : vector<512x32xf32> to vector<8x32xf32>
    %156 = vector.extract_strided_slice %39 {offsets = [88, 0], sizes = [8, 32], strides = [1, 1]} : vector<512x32xf32> to vector<8x32xf32>
    %157 = vector.extract_strided_slice %39 {offsets = [104, 0], sizes = [8, 32], strides = [1, 1]} : vector<512x32xf32> to vector<8x32xf32>
    %158 = vector.extract_strided_slice %39 {offsets = [200, 0], sizes = [8, 32], strides = [1, 1]} : vector<512x32xf32> to vector<8x32xf32>
    %159 = vector.extract_strided_slice %39 {offsets = [216, 0], sizes = [8, 32], strides = [1, 1]} : vector<512x32xf32> to vector<8x32xf32>
    %160 = vector.extract_strided_slice %39 {offsets = [232, 0], sizes = [8, 32], strides = [1, 1]} : vector<512x32xf32> to vector<8x32xf32>
    %161 = vector.extract_strided_slice %39 {offsets = [328, 0], sizes = [8, 32], strides = [1, 1]} : vector<512x32xf32> to vector<8x32xf32>
    %162 = vector.extract_strided_slice %39 {offsets = [344, 0], sizes = [8, 32], strides = [1, 1]} : vector<512x32xf32> to vector<8x32xf32>
    %163 = vector.extract_strided_slice %39 {offsets = [360, 0], sizes = [8, 32], strides = [1, 1]} : vector<512x32xf32> to vector<8x32xf32>
    %164 = vector.extract_strided_slice %39 {offsets = [456, 0], sizes = [8, 32], strides = [1, 1]} : vector<512x32xf32> to vector<8x32xf32>
    %165 = vector.extract_strided_slice %39 {offsets = [472, 0], sizes = [8, 32], strides = [1, 1]} : vector<512x32xf32> to vector<8x32xf32>
    %166 = vector.extract_strided_slice %39 {offsets = [488, 0], sizes = [8, 32], strides = [1, 1]} : vector<512x32xf32> to vector<8x32xf32>
    %167 = tpu.concatenate %40, %155, %156, %157, %40, %158, %159, %160, %40, %161, %162, %163, %40, %164, %165, %166 in 0 : vector<8x32xf32>, vector<8x32xf32>, vector<8x32xf32>, vector<8x32xf32>, vector<8x32xf32>, vector<8x32xf32>, vector<8x32xf32>, vector<8x32xf32>, vector<8x32xf32>, vector<8x32xf32>, vector<8x32xf32>, vector<8x32xf32>, vector<8x32xf32>, vector<8x32xf32>, vector<8x32xf32>, vector<8x32xf32> -> vector<128x32xf32>
    %c0_29 = arith.constant 0 : index
    %c256 = arith.constant 256 : index
    %168 = vector.load %arg10[%c0_29, %c256] : memref<128x512xf32, #tpu.memory_space<vmem>>, vector<128x32xf32>
    tpu.vector_store %arg10[%c0_29, %c256], %167 {strides = array<i32>} : memref<128x512xf32, #tpu.memory_space<vmem>>, vector<128x32xf32>,
    %169 = vector.extract_strided_slice %39 {offsets = [64, 0], sizes = [8, 32], strides = [1, 1]} : vector<512x32xf32> to vector<8x32xf32>
    %170 = vector.extract_strided_slice %39 {offsets = [80, 0], sizes = [8, 32], strides = [1, 1]} : vector<512x32xf32> to vector<8x32xf32>
    %171 = vector.extract_strided_slice %39 {offsets = [96, 0], sizes = [8, 32], strides = [1, 1]} : vector<512x32xf32> to vector<8x32xf32>
    %172 = vector.extract_strided_slice %39 {offsets = [112, 0], sizes = [8, 32], strides = [1, 1]} : vector<512x32xf32> to vector<8x32xf32>
    %173 = vector.extract_strided_slice %39 {offsets = [192, 0], sizes = [8, 32], strides = [1, 1]} : vector<512x32xf32> to vector<8x32xf32>
    %174 = vector.extract_strided_slice %39 {offsets = [208, 0], sizes = [8, 32], strides = [1, 1]} : vector<512x32xf32> to vector<8x32xf32>
    %175 = vector.extract_strided_slice %39 {offsets = [224, 0], sizes = [8, 32], strides = [1, 1]} : vector<512x32xf32> to vector<8x32xf32>
    %176 = vector.extract_strided_slice %39 {offsets = [240, 0], sizes = [8, 32], strides = [1, 1]} : vector<512x32xf32> to vector<8x32xf32>
    %177 = vector.extract_strided_slice %39 {offsets = [320, 0], sizes = [8, 32], strides = [1, 1]} : vector<512x32xf32> to vector<8x32xf32>
    %178 = vector.extract_strided_slice %39 {offsets = [336, 0], sizes = [8, 32], strides = [1, 1]} : vector<512x32xf32> to vector<8x32xf32>
    %179 = vector.extract_strided_slice %39 {offsets = [352, 0], sizes = [8, 32], strides = [1, 1]} : vector<512x32xf32> to vector<8x32xf32>
    %180 = vector.extract_strided_slice %39 {offsets = [368, 0], sizes = [8, 32], strides = [1, 1]} : vector<512x32xf32> to vector<8x32xf32>
    %181 = vector.extract_strided_slice %39 {offsets = [448, 0], sizes = [8, 32], strides = [1, 1]} : vector<512x32xf32> to vector<8x32xf32>
    %182 = vector.extract_strided_slice %39 {offsets = [464, 0], sizes = [8, 32], strides = [1, 1]} : vector<512x32xf32> to vector<8x32xf32>
    %183 = vector.extract_strided_slice %39 {offsets = [480, 0], sizes = [8, 32], strides = [1, 1]} : vector<512x32xf32> to vector<8x32xf32>
    %184 = vector.extract_strided_slice %39 {offsets = [496, 0], sizes = [8, 32], strides = [1, 1]} : vector<512x32xf32> to vector<8x32xf32>
    %185 = tpu.concatenate %169, %170, %171, %172, %173, %174, %175, %176, %177, %178, %179, %180, %181, %182, %183, %184 in 0 : vector<8x32xf32>, vector<8x32xf32>, vector<8x32xf32>, vector<8x32xf32>, vector<8x32xf32>, vector<8x32xf32>, vector<8x32xf32>, vector<8x32xf32>, vector<8x32xf32>, vector<8x32xf32>, vector<8x32xf32>, vector<8x32xf32>, vector<8x32xf32>, vector<8x32xf32>, vector<8x32xf32>, vector<8x32xf32> -> vector<128x32xf32>
    %c0_30 = arith.constant 0 : index
    %c288 = arith.constant 288 : index
    %186 = vector.load %arg10[%c0_30, %c288] : memref<128x512xf32, #tpu.memory_space<vmem>>, vector<128x32xf32>
    tpu.vector_store %arg10[%c0_30, %c288], %185 {strides = array<i32>} : memref<128x512xf32, #tpu.memory_space<vmem>>, vector<128x32xf32>,
    %187 = vector.extract_strided_slice %39 {offsets = [72, 0], sizes = [8, 32], strides = [1, 1]} : vector<512x32xf32> to vector<8x32xf32>
    %188 = vector.extract_strided_slice %39 {offsets = [88, 0], sizes = [8, 32], strides = [1, 1]} : vector<512x32xf32> to vector<8x32xf32>
    %189 = vector.extract_strided_slice %39 {offsets = [104, 0], sizes = [8, 32], strides = [1, 1]} : vector<512x32xf32> to vector<8x32xf32>
    %190 = vector.extract_strided_slice %39 {offsets = [120, 0], sizes = [8, 32], strides = [1, 1]} : vector<512x32xf32> to vector<8x32xf32>
    %191 = vector.extract_strided_slice %39 {offsets = [200, 0], sizes = [8, 32], strides = [1, 1]} : vector<512x32xf32> to vector<8x32xf32>
    %192 = vector.extract_strided_slice %39 {offsets = [216, 0], sizes = [8, 32], strides = [1, 1]} : vector<512x32xf32> to vector<8x32xf32>
    %193 = vector.extract_strided_slice %39 {offsets = [232, 0], sizes = [8, 32], strides = [1, 1]} : vector<512x32xf32> to vector<8x32xf32>
    %194 = vector.extract_strided_slice %39 {offsets = [248, 0], sizes = [8, 32], strides = [1, 1]} : vector<512x32xf32> to vector<8x32xf32>
    %195 = vector.extract_strided_slice %39 {offsets = [328, 0], sizes = [8, 32], strides = [1, 1]} : vector<512x32xf32> to vector<8x32xf32>
    %196 = vector.extract_strided_slice %39 {offsets = [344, 0], sizes = [8, 32], strides = [1, 1]} : vector<512x32xf32> to vector<8x32xf32>
    %197 = vector.extract_strided_slice %39 {offsets = [360, 0], sizes = [8, 32], strides = [1, 1]} : vector<512x32xf32> to vector<8x32xf32>
    %198 = vector.extract_strided_slice %39 {offsets = [376, 0], sizes = [8, 32], strides = [1, 1]} : vector<512x32xf32> to vector<8x32xf32>
    %199 = vector.extract_strided_slice %39 {offsets = [456, 0], sizes = [8, 32], strides = [1, 1]} : vector<512x32xf32> to vector<8x32xf32>
    %200 = vector.extract_strided_slice %39 {offsets = [472, 0], sizes = [8, 32], strides = [1, 1]} : vector<512x32xf32> to vector<8x32xf32>
    %201 = vector.extract_strided_slice %39 {offsets = [488, 0], sizes = [8, 32], strides = [1, 1]} : vector<512x32xf32> to vector<8x32xf32>
    %202 = vector.extract_strided_slice %39 {offsets = [504, 0], sizes = [8, 32], strides = [1, 1]} : vector<512x32xf32> to vector<8x32xf32>
    %203 = tpu.concatenate %187, %188, %189, %190, %191, %192, %193, %194, %195, %196, %197, %198, %199, %200, %201, %202 in 0 : vector<8x32xf32>, vector<8x32xf32>, vector<8x32xf32>, vector<8x32xf32>, vector<8x32xf32>, vector<8x32xf32>, vector<8x32xf32>, vector<8x32xf32>, vector<8x32xf32>, vector<8x32xf32>, vector<8x32xf32>, vector<8x32xf32>, vector<8x32xf32>, vector<8x32xf32>, vector<8x32xf32>, vector<8x32xf32> -> vector<128x32xf32>
    %c0_31 = arith.constant 0 : index
    %c320 = arith.constant 320 : index
    %204 = vector.load %arg10[%c0_31, %c320] : memref<128x512xf32, #tpu.memory_space<vmem>>, vector<128x32xf32>
    tpu.vector_store %arg10[%c0_31, %c320], %203 {strides = array<i32>} : memref<128x512xf32, #tpu.memory_space<vmem>>, vector<128x32xf32>,
    %205 = vector.extract_strided_slice %39 {offsets = [80, 0], sizes = [8, 32], strides = [1, 1]} : vector<512x32xf32> to vector<8x32xf32>
    %206 = vector.extract_strided_slice %39 {offsets = [96, 0], sizes = [8, 32], strides = [1, 1]} : vector<512x32xf32> to vector<8x32xf32>
    %207 = vector.extract_strided_slice %39 {offsets = [112, 0], sizes = [8, 32], strides = [1, 1]} : vector<512x32xf32> to vector<8x32xf32>
    %208 = vector.extract_strided_slice %39 {offsets = [208, 0], sizes = [8, 32], strides = [1, 1]} : vector<512x32xf32> to vector<8x32xf32>
    %209 = vector.extract_strided_slice %39 {offsets = [224, 0], sizes = [8, 32], strides = [1, 1]} : vector<512x32xf32> to vector<8x32xf32>
    %210 = vector.extract_strided_slice %39 {offsets = [240, 0], sizes = [8, 32], strides = [1, 1]} : vector<512x32xf32> to vector<8x32xf32>
    %211 = vector.extract_strided_slice %39 {offsets = [336, 0], sizes = [8, 32], strides = [1, 1]} : vector<512x32xf32> to vector<8x32xf32>
    %212 = vector.extract_strided_slice %39 {offsets = [352, 0], sizes = [8, 32], strides = [1, 1]} : vector<512x32xf32> to vector<8x32xf32>
    %213 = vector.extract_strided_slice %39 {offsets = [368, 0], sizes = [8, 32], strides = [1, 1]} : vector<512x32xf32> to vector<8x32xf32>
    %214 = vector.extract_strided_slice %39 {offsets = [464, 0], sizes = [8, 32], strides = [1, 1]} : vector<512x32xf32> to vector<8x32xf32>
    %215 = vector.extract_strided_slice %39 {offsets = [480, 0], sizes = [8, 32], strides = [1, 1]} : vector<512x32xf32> to vector<8x32xf32>
    %216 = vector.extract_strided_slice %39 {offsets = [496, 0], sizes = [8, 32], strides = [1, 1]} : vector<512x32xf32> to vector<8x32xf32>
    %217 = tpu.concatenate %205, %206, %207, %40, %208, %209, %210, %40, %211, %212, %213, %40, %214, %215, %216, %40 in 0 : vector<8x32xf32>, vector<8x32xf32>, vector<8x32xf32>, vector<8x32xf32>, vector<8x32xf32>, vector<8x32xf32>, vector<8x32xf32>, vector<8x32xf32>, vector<8x32xf32>, vector<8x32xf32>, vector<8x32xf32>, vector<8x32xf32>, vector<8x32xf32>, vector<8x32xf32>, vector<8x32xf32>, vector<8x32xf32> -> vector<128x32xf32>
    %c0_32 = arith.constant 0 : index
    %c352 = arith.constant 352 : index
    %218 = vector.load %arg10[%c0_32, %c352] : memref<128x512xf32, #tpu.memory_space<vmem>>, vector<128x32xf32>
    tpu.vector_store %arg10[%c0_32, %c352], %217 {strides = array<i32>} : memref<128x512xf32, #tpu.memory_space<vmem>>, vector<128x32xf32>,
    %219 = vector.extract_strided_slice %39 {offsets = [136, 0], sizes = [8, 32], strides = [1, 1]} : vector<512x32xf32> to vector<8x32xf32>
    %220 = vector.extract_strided_slice %39 {offsets = [152, 0], sizes = [8, 32], strides = [1, 1]} : vector<512x32xf32> to vector<8x32xf32>
    %221 = vector.extract_strided_slice %39 {offsets = [168, 0], sizes = [8, 32], strides = [1, 1]} : vector<512x32xf32> to vector<8x32xf32>
    %222 = vector.extract_strided_slice %39 {offsets = [264, 0], sizes = [8, 32], strides = [1, 1]} : vector<512x32xf32> to vector<8x32xf32>
    %223 = vector.extract_strided_slice %39 {offsets = [280, 0], sizes = [8, 32], strides = [1, 1]} : vector<512x32xf32> to vector<8x32xf32>
    %224 = vector.extract_strided_slice %39 {offsets = [296, 0], sizes = [8, 32], strides = [1, 1]} : vector<512x32xf32> to vector<8x32xf32>
    %225 = vector.extract_strided_slice %39 {offsets = [392, 0], sizes = [8, 32], strides = [1, 1]} : vector<512x32xf32> to vector<8x32xf32>
    %226 = vector.extract_strided_slice %39 {offsets = [408, 0], sizes = [8, 32], strides = [1, 1]} : vector<512x32xf32> to vector<8x32xf32>
    %227 = vector.extract_strided_slice %39 {offsets = [424, 0], sizes = [8, 32], strides = [1, 1]} : vector<512x32xf32> to vector<8x32xf32>
    %228 = tpu.concatenate %40, %219, %220, %221, %40, %222, %223, %224, %40, %225, %226, %227, %40, %40, %40, %40 in 0 : vector<8x32xf32>, vector<8x32xf32>, vector<8x32xf32>, vector<8x32xf32>, vector<8x32xf32>, vector<8x32xf32>, vector<8x32xf32>, vector<8x32xf32>, vector<8x32xf32>, vector<8x32xf32>, vector<8x32xf32>, vector<8x32xf32>, vector<8x32xf32>, vector<8x32xf32>, vector<8x32xf32>, vector<8x32xf32> -> vector<128x32xf32>
    %c0_33 = arith.constant 0 : index
    %c384 = arith.constant 384 : index
    %229 = vector.load %arg10[%c0_33, %c384] : memref<128x512xf32, #tpu.memory_space<vmem>>, vector<128x32xf32>
    tpu.vector_store %arg10[%c0_33, %c384], %228 {strides = array<i32>} : memref<128x512xf32, #tpu.memory_space<vmem>>, vector<128x32xf32>,
    %230 = vector.extract_strided_slice %39 {offsets = [128, 0], sizes = [8, 32], strides = [1, 1]} : vector<512x32xf32> to vector<8x32xf32>
    %231 = vector.extract_strided_slice %39 {offsets = [144, 0], sizes = [8, 32], strides = [1, 1]} : vector<512x32xf32> to vector<8x32xf32>
    %232 = vector.extract_strided_slice %39 {offsets = [160, 0], sizes = [8, 32], strides = [1, 1]} : vector<512x32xf32> to vector<8x32xf32>
    %233 = vector.extract_strided_slice %39 {offsets = [176, 0], sizes = [8, 32], strides = [1, 1]} : vector<512x32xf32> to vector<8x32xf32>
    %234 = vector.extract_strided_slice %39 {offsets = [256, 0], sizes = [8, 32], strides = [1, 1]} : vector<512x32xf32> to vector<8x32xf32>
    %235 = vector.extract_strided_slice %39 {offsets = [272, 0], sizes = [8, 32], strides = [1, 1]} : vector<512x32xf32> to vector<8x32xf32>
    %236 = vector.extract_strided_slice %39 {offsets = [288, 0], sizes = [8, 32], strides = [1, 1]} : vector<512x32xf32> to vector<8x32xf32>
    %237 = vector.extract_strided_slice %39 {offsets = [304, 0], sizes = [8, 32], strides = [1, 1]} : vector<512x32xf32> to vector<8x32xf32>
    %238 = vector.extract_strided_slice %39 {offsets = [384, 0], sizes = [8, 32], strides = [1, 1]} : vector<512x32xf32> to vector<8x32xf32>
    %239 = vector.extract_strided_slice %39 {offsets = [400, 0], sizes = [8, 32], strides = [1, 1]} : vector<512x32xf32> to vector<8x32xf32>
    %240 = vector.extract_strided_slice %39 {offsets = [416, 0], sizes = [8, 32], strides = [1, 1]} : vector<512x32xf32> to vector<8x32xf32>
    %241 = vector.extract_strided_slice %39 {offsets = [432, 0], sizes = [8, 32], strides = [1, 1]} : vector<512x32xf32> to vector<8x32xf32>
    %242 = tpu.concatenate %230, %231, %232, %233, %234, %235, %236, %237, %238, %239, %240, %241, %40, %40, %40, %40 in 0 : vector<8x32xf32>, vector<8x32xf32>, vector<8x32xf32>, vector<8x32xf32>, vector<8x32xf32>, vector<8x32xf32>, vector<8x32xf32>, vector<8x32xf32>, vector<8x32xf32>, vector<8x32xf32>, vector<8x32xf32>, vector<8x32xf32>, vector<8x32xf32>, vector<8x32xf32>, vector<8x32xf32>, vector<8x32xf32> -> vector<128x32xf32>
    %c0_34 = arith.constant 0 : index
    %c416 = arith.constant 416 : index
    %243 = vector.load %arg10[%c0_34, %c416] : memref<128x512xf32, #tpu.memory_space<vmem>>, vector<128x32xf32>
    tpu.vector_store %arg10[%c0_34, %c416], %242 {strides = array<i32>} : memref<128x512xf32, #tpu.memory_space<vmem>>, vector<128x32xf32>,
    %244 = vector.extract_strided_slice %39 {offsets = [136, 0], sizes = [8, 32], strides = [1, 1]} : vector<512x32xf32> to vector<8x32xf32>
    %245 = vector.extract_strided_slice %39 {offsets = [152, 0], sizes = [8, 32], strides = [1, 1]} : vector<512x32xf32> to vector<8x32xf32>
    %246 = vector.extract_strided_slice %39 {offsets = [168, 0], sizes = [8, 32], strides = [1, 1]} : vector<512x32xf32> to vector<8x32xf32>
    %247 = vector.extract_strided_slice %39 {offsets = [184, 0], sizes = [8, 32], strides = [1, 1]} : vector<512x32xf32> to vector<8x32xf32>
    %248 = vector.extract_strided_slice %39 {offsets = [264, 0], sizes = [8, 32], strides = [1, 1]} : vector<512x32xf32> to vector<8x32xf32>
    %249 = vector.extract_strided_slice %39 {offsets = [280, 0], sizes = [8, 32], strides = [1, 1]} : vector<512x32xf32> to vector<8x32xf32>
    %250 = vector.extract_strided_slice %39 {offsets = [296, 0], sizes = [8, 32], strides = [1, 1]} : vector<512x32xf32> to vector<8x32xf32>
    %251 = vector.extract_strided_slice %39 {offsets = [312, 0], sizes = [8, 32], strides = [1, 1]} : vector<512x32xf32> to vector<8x32xf32>
    %252 = vector.extract_strided_slice %39 {offsets = [392, 0], sizes = [8, 32], strides = [1, 1]} : vector<512x32xf32> to vector<8x32xf32>
    %253 = vector.extract_strided_slice %39 {offsets = [408, 0], sizes = [8, 32], strides = [1, 1]} : vector<512x32xf32> to vector<8x32xf32>
    %254 = vector.extract_strided_slice %39 {offsets = [424, 0], sizes = [8, 32], strides = [1, 1]} : vector<512x32xf32> to vector<8x32xf32>
    %255 = vector.extract_strided_slice %39 {offsets = [440, 0], sizes = [8, 32], strides = [1, 1]} : vector<512x32xf32> to vector<8x32xf32>
    %256 = tpu.concatenate %244, %245, %246, %247, %248, %249, %250, %251, %252, %253, %254, %255, %40, %40, %40, %40 in 0 : vector<8x32xf32>, vector<8x32xf32>, vector<8x32xf32>, vector<8x32xf32>, vector<8x32xf32>, vector<8x32xf32>, vector<8x32xf32>, vector<8x32xf32>, vector<8x32xf32>, vector<8x32xf32>, vector<8x32xf32>, vector<8x32xf32>, vector<8x32xf32>, vector<8x32xf32>, vector<8x32xf32>, vector<8x32xf32> -> vector<128x32xf32>
    %c0_35 = arith.constant 0 : index
    %c448 = arith.constant 448 : index
    %257 = vector.load %arg10[%c0_35, %c448] : memref<128x512xf32, #tpu.memory_space<vmem>>, vector<128x32xf32>
    tpu.vector_store %arg10[%c0_35, %c448], %256 {strides = array<i32>} : memref<128x512xf32, #tpu.memory_space<vmem>>, vector<128x32xf32>,
    %258 = vector.extract_strided_slice %39 {offsets = [144, 0], sizes = [8, 32], strides = [1, 1]} : vector<512x32xf32> to vector<8x32xf32>
    %259 = vector.extract_strided_slice %39 {offsets = [160, 0], sizes = [8, 32], strides = [1, 1]} : vector<512x32xf32> to vector<8x32xf32>
    %260 = vector.extract_strided_slice %39 {offsets = [176, 0], sizes = [8, 32], strides = [1, 1]} : vector<512x32xf32> to vector<8x32xf32>
    %261 = vector.extract_strided_slice %39 {offsets = [272, 0], sizes = [8, 32], strides = [1, 1]} : vector<512x32xf32> to vector<8x32xf32>
    %262 = vector.extract_strided_slice %39 {offsets = [288, 0], sizes = [8, 32], strides = [1, 1]} : vector<512x32xf32> to vector<8x32xf32>
    %263 = vector.extract_strided_slice %39 {offsets = [304, 0], sizes = [8, 32], strides = [1, 1]} : vector<512x32xf32> to vector<8x32xf32>
    %264 = vector.extract_strided_slice %39 {offsets = [400, 0], sizes = [8, 32], strides = [1, 1]} : vector<512x32xf32> to vector<8x32xf32>
    %265 = vector.extract_strided_slice %39 {offsets = [416, 0], sizes = [8, 32], strides = [1, 1]} : vector<512x32xf32> to vector<8x32xf32>
    %266 = vector.extract_strided_slice %39 {offsets = [432, 0], sizes = [8, 32], strides = [1, 1]} : vector<512x32xf32> to vector<8x32xf32>
    %267 = tpu.concatenate %258, %259, %260, %40, %261, %262, %263, %40, %264, %265, %266, %40, %40, %40, %40, %40 in 0 : vector<8x32xf32>, vector<8x32xf32>, vector<8x32xf32>, vector<8x32xf32>, vector<8x32xf32>, vector<8x32xf32>, vector<8x32xf32>, vector<8x32xf32>, vector<8x32xf32>, vector<8x32xf32>, vector<8x32xf32>, vector<8x32xf32>, vector<8x32xf32>, vector<8x32xf32>, vector<8x32xf32>, vector<8x32xf32> -> vector<128x32xf32>
    %c0_36 = arith.constant 0 : index
    %c480 = arith.constant 480 : index
    %268 = vector.load %arg10[%c0_36, %c480] : memref<128x512xf32, #tpu.memory_space<vmem>>, vector<128x32xf32>
    tpu.vector_store %arg10[%c0_36, %c480], %267 {strides = array<i32>} : memref<128x512xf32, #tpu.memory_space<vmem>>, vector<128x32xf32>,
    %c0_37 = arith.constant 0 : index
    %c0_38 = arith.constant 0 : index
    %269 = vector.load %arg10[%c0_37, %c0_38] : memref<128x512xf32, #tpu.memory_space<vmem>>, vector<128x512xf32>
    %270 = arith.truncf %269 : vector<128x512xf32> to vector<128x512xbf16>
    %c0_39 = arith.constant 0 : index
    %c0_40 = arith.constant 0 : index
    %271 = vector.load %arg3[%c0_39, %c0_40] : memref<512x64xbf16, #tpu.memory_space<vmem>>, vector<512x64xbf16>
    %cst_41 = arith.constant dense<0.000000e+00> : vector<128x64xf32>
    %272 = tpu.matmul %270, %271, %cst_41 {dimension_numbers = #tpu.dot_dimension_numbers<[1], [0], [0], [1], [0, 0, 1, 1], [], []>} : vector<128x512xbf16>, vector<512x64xbf16>, vector<128x64xf32> -> vector<128x64xf32>
    %c0_42 = arith.constant 0 : index
    %c0_43 = arith.constant 0 : index
    %273 = vector.load %arg6[%c0_42, %c0_43] : memref<2x64xf32, #tpu.memory_space<vmem>>, vector<2x64xf32>
    %274 = vector.extract_strided_slice %273 {offsets = [0, 0], sizes = [1, 64], strides = [1, 1]} : vector<2x64xf32> to vector<1x64xf32>
    %275 = vector.extract_strided_slice %273 {offsets = [1, 0], sizes = [1, 64], strides = [1, 1]} : vector<2x64xf32> to vector<1x64xf32>
    %276 = vector.broadcast %1 : vector<128x1xf32> to vector<128x64xf32>
    %277 = arith.mulf %272, %276 : vector<128x64xf32>
    %cst_44 = arith.constant dense<0.000000e+00> : vector<64xf32>
    %278 = vector.multi_reduction <add>, %277, %cst_44 [0] : vector<128x64xf32> to vector<64xf32>
    %279 = vector.shape_cast %278 : vector<64xf32> to vector<1x64xf32>
    %cst_45 = arith.constant 3.125000e-02 : f32
    %280 = vector.broadcast %cst_45 : f32 to vector<1x64xf32>
    %281 = arith.mulf %279, %280 : vector<1x64xf32>
    %282 = vector.broadcast %281 : vector<1x64xf32> to vector<128x64xf32>
    %283 = arith.subf %272, %282 : vector<128x64xf32>
    %284 = vector.broadcast %1 : vector<128x1xf32> to vector<128x64xf32>
    %285 = arith.mulf %283, %284 : vector<128x64xf32>
    %286 = arith.mulf %285, %285 : vector<128x64xf32>
    %cst_46 = arith.constant dense<0.000000e+00> : vector<64xf32>
    %287 = vector.multi_reduction <add>, %286, %cst_46 [0] : vector<128x64xf32> to vector<64xf32>
    %288 = vector.shape_cast %287 : vector<64xf32> to vector<1x64xf32>
    %cst_47 = arith.constant 3.125000e-02 : f32
    %289 = vector.broadcast %cst_47 : f32 to vector<1x64xf32>
    %290 = arith.mulf %288, %289 : vector<1x64xf32>
    %cst_48 = arith.constant 9.99999974E-6 : f32
    %291 = vector.broadcast %cst_48 : f32 to vector<1x64xf32>
    %292 = arith.addf %290, %291 : vector<1x64xf32>
    %293 = math.rsqrt %292 : vector<1x64xf32>
    %294 = arith.mulf %274, %293 : vector<1x64xf32>
    %cst_49 = arith.constant 1.000000e+00 : f32
    %295 = vector.broadcast %cst_49 : f32 to vector<1x64xf32>
    %296 = arith.mulf %294, %295 : vector<1x64xf32>
    %cst_50 = arith.constant 1.000000e+00 : f32
    %297 = vector.broadcast %cst_50 : f32 to vector<1x64xf32>
    %298 = arith.mulf %275, %297 : vector<1x64xf32>
    %299 = arith.mulf %281, %296 : vector<1x64xf32>
    %300 = arith.subf %298, %299 : vector<1x64xf32>
    %301 = vector.broadcast %296 : vector<1x64xf32> to vector<128x64xf32>
    %302 = arith.mulf %272, %301 : vector<128x64xf32>
    %303 = vector.broadcast %300 : vector<1x64xf32> to vector<128x64xf32>
    %304 = arith.addf %302, %303 : vector<128x64xf32>
    %cst_51 = arith.constant 0.000000e+00 : f32
    %305 = vector.broadcast %cst_51 : f32 to vector<128x64xf32>
    %306 = arith.maximumf %304, %305 : vector<128x64xf32>
    %307 = vector.extract_strided_slice %306 {offsets = [0, 0], sizes = [8, 64], strides = [1, 1]} : vector<128x64xf32> to vector<8x64xf32>
    %308 = vector.extract_strided_slice %306 {offsets = [8, 0], sizes = [8, 64], strides = [1, 1]} : vector<128x64xf32> to vector<8x64xf32>
    %309 = vector.extract_strided_slice %306 {offsets = [32, 0], sizes = [8, 64], strides = [1, 1]} : vector<128x64xf32> to vector<8x64xf32>
    %310 = vector.extract_strided_slice %306 {offsets = [40, 0], sizes = [8, 64], strides = [1, 1]} : vector<128x64xf32> to vector<8x64xf32>
    %311 = tpu.concatenate %307, %308, %309, %310 in 0 : vector<8x64xf32>, vector<8x64xf32>, vector<8x64xf32>, vector<8x64xf32> -> vector<32x64xf32>
    %c0_52 = arith.constant 0 : index
    %c0_53 = arith.constant 0 : index
    %312 = vector.load %arg11[%c0_52, %c0_53] : memref<32x576xf32, #tpu.memory_space<vmem>>, vector<32x64xf32>
    tpu.vector_store %arg11[%c0_52, %c0_53], %311 {strides = array<i32>} : memref<32x576xf32, #tpu.memory_space<vmem>>, vector<32x64xf32>,
    %313 = vector.extract_strided_slice %306 {offsets = [8, 0], sizes = [8, 64], strides = [1, 1]} : vector<128x64xf32> to vector<8x64xf32>
    %314 = vector.extract_strided_slice %306 {offsets = [16, 0], sizes = [8, 64], strides = [1, 1]} : vector<128x64xf32> to vector<8x64xf32>
    %315 = vector.extract_strided_slice %306 {offsets = [40, 0], sizes = [8, 64], strides = [1, 1]} : vector<128x64xf32> to vector<8x64xf32>
    %316 = vector.extract_strided_slice %306 {offsets = [48, 0], sizes = [8, 64], strides = [1, 1]} : vector<128x64xf32> to vector<8x64xf32>
    %317 = tpu.concatenate %313, %314, %315, %316 in 0 : vector<8x64xf32>, vector<8x64xf32>, vector<8x64xf32>, vector<8x64xf32> -> vector<32x64xf32>
    %c0_54 = arith.constant 0 : index
    %c64_55 = arith.constant 64 : index
    %318 = vector.load %arg11[%c0_54, %c64_55] : memref<32x576xf32, #tpu.memory_space<vmem>>, vector<32x64xf32>
    tpu.vector_store %arg11[%c0_54, %c64_55], %317 {strides = array<i32>} : memref<32x576xf32, #tpu.memory_space<vmem>>, vector<32x64xf32>,
    %319 = vector.extract_strided_slice %306 {offsets = [16, 0], sizes = [8, 64], strides = [1, 1]} : vector<128x64xf32> to vector<8x64xf32>
    %320 = vector.extract_strided_slice %306 {offsets = [24, 0], sizes = [8, 64], strides = [1, 1]} : vector<128x64xf32> to vector<8x64xf32>
    %321 = vector.extract_strided_slice %306 {offsets = [48, 0], sizes = [8, 64], strides = [1, 1]} : vector<128x64xf32> to vector<8x64xf32>
    %322 = vector.extract_strided_slice %306 {offsets = [56, 0], sizes = [8, 64], strides = [1, 1]} : vector<128x64xf32> to vector<8x64xf32>
    %323 = tpu.concatenate %319, %320, %321, %322 in 0 : vector<8x64xf32>, vector<8x64xf32>, vector<8x64xf32>, vector<8x64xf32> -> vector<32x64xf32>
    %c0_56 = arith.constant 0 : index
    %c128_57 = arith.constant 128 : index
    %324 = vector.load %arg11[%c0_56, %c128_57] : memref<32x576xf32, #tpu.memory_space<vmem>>, vector<32x64xf32>
    tpu.vector_store %arg11[%c0_56, %c128_57], %323 {strides = array<i32>} : memref<32x576xf32, #tpu.memory_space<vmem>>, vector<32x64xf32>,
    %325 = vector.extract_strided_slice %306 {offsets = [32, 0], sizes = [8, 64], strides = [1, 1]} : vector<128x64xf32> to vector<8x64xf32>
    %326 = vector.extract_strided_slice %306 {offsets = [40, 0], sizes = [8, 64], strides = [1, 1]} : vector<128x64xf32> to vector<8x64xf32>
    %327 = vector.extract_strided_slice %306 {offsets = [64, 0], sizes = [8, 64], strides = [1, 1]} : vector<128x64xf32> to vector<8x64xf32>
    %328 = vector.extract_strided_slice %306 {offsets = [72, 0], sizes = [8, 64], strides = [1, 1]} : vector<128x64xf32> to vector<8x64xf32>
    %329 = tpu.concatenate %325, %326, %327, %328 in 0 : vector<8x64xf32>, vector<8x64xf32>, vector<8x64xf32>, vector<8x64xf32> -> vector<32x64xf32>
    %c0_58 = arith.constant 0 : index
    %c192_59 = arith.constant 192 : index
    %330 = vector.load %arg11[%c0_58, %c192_59] : memref<32x576xf32, #tpu.memory_space<vmem>>, vector<32x64xf32>
    tpu.vector_store %arg11[%c0_58, %c192_59], %329 {strides = array<i32>} : memref<32x576xf32, #tpu.memory_space<vmem>>, vector<32x64xf32>,
    %331 = vector.extract_strided_slice %306 {offsets = [40, 0], sizes = [8, 64], strides = [1, 1]} : vector<128x64xf32> to vector<8x64xf32>
    %332 = vector.extract_strided_slice %306 {offsets = [48, 0], sizes = [8, 64], strides = [1, 1]} : vector<128x64xf32> to vector<8x64xf32>
    %333 = vector.extract_strided_slice %306 {offsets = [72, 0], sizes = [8, 64], strides = [1, 1]} : vector<128x64xf32> to vector<8x64xf32>
    %334 = vector.extract_strided_slice %306 {offsets = [80, 0], sizes = [8, 64], strides = [1, 1]} : vector<128x64xf32> to vector<8x64xf32>
    %335 = tpu.concatenate %331, %332, %333, %334 in 0 : vector<8x64xf32>, vector<8x64xf32>, vector<8x64xf32>, vector<8x64xf32> -> vector<32x64xf32>
    %c0_60 = arith.constant 0 : index
    %c256_61 = arith.constant 256 : index
    %336 = vector.load %arg11[%c0_60, %c256_61] : memref<32x576xf32, #tpu.memory_space<vmem>>, vector<32x64xf32>
    tpu.vector_store %arg11[%c0_60, %c256_61], %335 {strides = array<i32>} : memref<32x576xf32, #tpu.memory_space<vmem>>, vector<32x64xf32>,
    %337 = vector.extract_strided_slice %306 {offsets = [48, 0], sizes = [8, 64], strides = [1, 1]} : vector<128x64xf32> to vector<8x64xf32>
    %338 = vector.extract_strided_slice %306 {offsets = [56, 0], sizes = [8, 64], strides = [1, 1]} : vector<128x64xf32> to vector<8x64xf32>
    %339 = vector.extract_strided_slice %306 {offsets = [80, 0], sizes = [8, 64], strides = [1, 1]} : vector<128x64xf32> to vector<8x64xf32>
    %340 = vector.extract_strided_slice %306 {offsets = [88, 0], sizes = [8, 64], strides = [1, 1]} : vector<128x64xf32> to vector<8x64xf32>
    %341 = tpu.concatenate %337, %338, %339, %340 in 0 : vector<8x64xf32>, vector<8x64xf32>, vector<8x64xf32>, vector<8x64xf32> -> vector<32x64xf32>
    %c0_62 = arith.constant 0 : index
    %c320_63 = arith.constant 320 : index
    %342 = vector.load %arg11[%c0_62, %c320_63] : memref<32x576xf32, #tpu.memory_space<vmem>>, vector<32x64xf32>
    tpu.vector_store %arg11[%c0_62, %c320_63], %341 {strides = array<i32>} : memref<32x576xf32, #tpu.memory_space<vmem>>, vector<32x64xf32>,
    %343 = vector.extract_strided_slice %306 {offsets = [64, 0], sizes = [8, 64], strides = [1, 1]} : vector<128x64xf32> to vector<8x64xf32>
    %344 = vector.extract_strided_slice %306 {offsets = [72, 0], sizes = [8, 64], strides = [1, 1]} : vector<128x64xf32> to vector<8x64xf32>
    %345 = vector.extract_strided_slice %306 {offsets = [96, 0], sizes = [8, 64], strides = [1, 1]} : vector<128x64xf32> to vector<8x64xf32>
    %346 = vector.extract_strided_slice %306 {offsets = [104, 0], sizes = [8, 64], strides = [1, 1]} : vector<128x64xf32> to vector<8x64xf32>
    %347 = tpu.concatenate %343, %344, %345, %346 in 0 : vector<8x64xf32>, vector<8x64xf32>, vector<8x64xf32>, vector<8x64xf32> -> vector<32x64xf32>
    %c0_64 = arith.constant 0 : index
    %c384_65 = arith.constant 384 : index
    %348 = vector.load %arg11[%c0_64, %c384_65] : memref<32x576xf32, #tpu.memory_space<vmem>>, vector<32x64xf32>
    tpu.vector_store %arg11[%c0_64, %c384_65], %347 {strides = array<i32>} : memref<32x576xf32, #tpu.memory_space<vmem>>, vector<32x64xf32>,
    %349 = vector.extract_strided_slice %306 {offsets = [72, 0], sizes = [8, 64], strides = [1, 1]} : vector<128x64xf32> to vector<8x64xf32>
    %350 = vector.extract_strided_slice %306 {offsets = [80, 0], sizes = [8, 64], strides = [1, 1]} : vector<128x64xf32> to vector<8x64xf32>
    %351 = vector.extract_strided_slice %306 {offsets = [104, 0], sizes = [8, 64], strides = [1, 1]} : vector<128x64xf32> to vector<8x64xf32>
    %352 = vector.extract_strided_slice %306 {offsets = [112, 0], sizes = [8, 64], strides = [1, 1]} : vector<128x64xf32> to vector<8x64xf32>
    %353 = tpu.concatenate %349, %350, %351, %352 in 0 : vector<8x64xf32>, vector<8x64xf32>, vector<8x64xf32>, vector<8x64xf32> -> vector<32x64xf32>
    %c0_66 = arith.constant 0 : index
    %c448_67 = arith.constant 448 : index
    %354 = vector.load %arg11[%c0_66, %c448_67] : memref<32x576xf32, #tpu.memory_space<vmem>>, vector<32x64xf32>
    tpu.vector_store %arg11[%c0_66, %c448_67], %353 {strides = array<i32>} : memref<32x576xf32, #tpu.memory_space<vmem>>, vector<32x64xf32>,
    %355 = vector.extract_strided_slice %306 {offsets = [80, 0], sizes = [8, 64], strides = [1, 1]} : vector<128x64xf32> to vector<8x64xf32>
    %356 = vector.extract_strided_slice %306 {offsets = [88, 0], sizes = [8, 64], strides = [1, 1]} : vector<128x64xf32> to vector<8x64xf32>
    %357 = vector.extract_strided_slice %306 {offsets = [112, 0], sizes = [8, 64], strides = [1, 1]} : vector<128x64xf32> to vector<8x64xf32>
    %358 = vector.extract_strided_slice %306 {offsets = [120, 0], sizes = [8, 64], strides = [1, 1]} : vector<128x64xf32> to vector<8x64xf32>
    %359 = tpu.concatenate %355, %356, %357, %358 in 0 : vector<8x64xf32>, vector<8x64xf32>, vector<8x64xf32>, vector<8x64xf32> -> vector<32x64xf32>
    %c0_68 = arith.constant 0 : index
    %c512 = arith.constant 512 : index
    %360 = vector.load %arg11[%c0_68, %c512] : memref<32x576xf32, #tpu.memory_space<vmem>>, vector<32x64xf32>
    tpu.vector_store %arg11[%c0_68, %c512], %359 {strides = array<i32>} : memref<32x576xf32, #tpu.memory_space<vmem>>, vector<32x64xf32>,
    %c0_69 = arith.constant 0 : index
    %c0_70 = arith.constant 0 : index
    %361 = vector.load %arg11[%c0_69, %c0_70] : memref<32x576xf32, #tpu.memory_space<vmem>>, vector<32x576xf32>
    %362 = arith.truncf %361 : vector<32x576xf32> to vector<32x576xbf16>
    %c0_71 = arith.constant 0 : index
    %c0_72 = arith.constant 0 : index
    %363 = vector.load %arg4[%c0_71, %c0_72] : memref<576x64xbf16, #tpu.memory_space<vmem>>, vector<576x64xbf16>
    %cst_73 = arith.constant dense<0.000000e+00> : vector<32x64xf32>
    %364 = tpu.matmul %362, %363, %cst_73 {dimension_numbers = #tpu.dot_dimension_numbers<[1], [0], [0], [1], [0, 0, 1, 1], [], []>} : vector<32x576xbf16>, vector<576x64xbf16>, vector<32x64xf32> -> vector<32x64xf32>
    %c0_74 = arith.constant 0 : index
    %c0_75 = arith.constant 0 : index
    %365 = vector.load %arg7[%c0_74, %c0_75] : memref<2x64xf32, #tpu.memory_space<vmem>>, vector<2x64xf32>
    %366 = vector.extract_strided_slice %365 {offsets = [0, 0], sizes = [1, 64], strides = [1, 1]} : vector<2x64xf32> to vector<1x64xf32>
    %367 = vector.extract_strided_slice %365 {offsets = [1, 0], sizes = [1, 64], strides = [1, 1]} : vector<2x64xf32> to vector<1x64xf32>
    %368 = vector.broadcast %2 : vector<32x1xf32> to vector<32x64xf32>
    %369 = arith.mulf %364, %368 : vector<32x64xf32>
    %cst_76 = arith.constant dense<0.000000e+00> : vector<64xf32>
    %370 = vector.multi_reduction <add>, %369, %cst_76 [0] : vector<32x64xf32> to vector<64xf32>
    %371 = vector.shape_cast %370 : vector<64xf32> to vector<1x64xf32>
    %cst_77 = arith.constant 1.250000e-01 : f32
    %372 = vector.broadcast %cst_77 : f32 to vector<1x64xf32>
    %373 = arith.mulf %371, %372 : vector<1x64xf32>
    %374 = vector.broadcast %373 : vector<1x64xf32> to vector<32x64xf32>
    %375 = arith.subf %364, %374 : vector<32x64xf32>
    %376 = vector.broadcast %2 : vector<32x1xf32> to vector<32x64xf32>
    %377 = arith.mulf %375, %376 : vector<32x64xf32>
    %378 = arith.mulf %377, %377 : vector<32x64xf32>
    %cst_78 = arith.constant dense<0.000000e+00> : vector<64xf32>
    %379 = vector.multi_reduction <add>, %378, %cst_78 [0] : vector<32x64xf32> to vector<64xf32>
    %380 = vector.shape_cast %379 : vector<64xf32> to vector<1x64xf32>
    %cst_79 = arith.constant 1.250000e-01 : f32
    %381 = vector.broadcast %cst_79 : f32 to vector<1x64xf32>
    %382 = arith.mulf %380, %381 : vector<1x64xf32>
    %cst_80 = arith.constant 9.99999974E-6 : f32
    %383 = vector.broadcast %cst_80 : f32 to vector<1x64xf32>
    %384 = arith.addf %382, %383 : vector<1x64xf32>
    %385 = math.rsqrt %384 : vector<1x64xf32>
    %386 = arith.mulf %366, %385 : vector<1x64xf32>
    %cst_81 = arith.constant 2.500000e-01 : f32
    %387 = vector.broadcast %cst_81 : f32 to vector<1x64xf32>
    %388 = arith.mulf %386, %387 : vector<1x64xf32>
    %cst_82 = arith.constant 2.500000e-01 : f32
    %389 = vector.broadcast %cst_82 : f32 to vector<1x64xf32>
    %390 = arith.mulf %367, %389 : vector<1x64xf32>
    %391 = arith.mulf %373, %388 : vector<1x64xf32>
    %392 = arith.subf %390, %391 : vector<1x64xf32>
    %393 = vector.broadcast %388 : vector<1x64xf32> to vector<32x64xf32>
    %394 = arith.mulf %364, %393 : vector<32x64xf32>
    %395 = vector.broadcast %392 : vector<1x64xf32> to vector<32x64xf32>
    %396 = arith.addf %394, %395 : vector<32x64xf32>
    %cst_83 = arith.constant 0.000000e+00 : f32
    %397 = vector.broadcast %cst_83 : f32 to vector<32x64xf32>
    %398 = arith.maximumf %396, %397 : vector<32x64xf32>
    %399 = vector.extract_strided_slice %398 {offsets = [0, 0], sizes = [8, 64], strides = [1, 1]} : vector<32x64xf32> to vector<8x64xf32>
    %400 = vector.extract_strided_slice %398 {offsets = [8, 0], sizes = [8, 64], strides = [1, 1]} : vector<32x64xf32> to vector<8x64xf32>
    %401 = arith.addf %399, %400 : vector<8x64xf32>
    %402 = vector.extract_strided_slice %398 {offsets = [16, 0], sizes = [8, 64], strides = [1, 1]} : vector<32x64xf32> to vector<8x64xf32>
    %403 = arith.addf %401, %402 : vector<8x64xf32>
    %404 = vector.extract_strided_slice %398 {offsets = [24, 0], sizes = [8, 64], strides = [1, 1]} : vector<32x64xf32> to vector<8x64xf32>
    %405 = arith.addf %403, %404 : vector<8x64xf32>
    %c0_84 = arith.constant 0 : index
    %c0_85 = arith.constant 0 : index
    %406 = vector.load %arg9[%c0_84, %c0_85] : memref<8x64xf32, #tpu.memory_space<vmem>>, vector<8x64xf32>
    tpu.vector_store %arg9[%c0_84, %c0_85], %405 {strides = array<i32>} : memref<8x64xf32, #tpu.memory_space<vmem>>, vector<8x64xf32>,
    return
  }
  func.func @transform_0(%arg0: i32) -> (i32, i32) {
    %c0_i32 = arith.constant 0 : i32
    %c0_i32_0 = arith.constant 0 : i32
    %c0_i32_1 = arith.constant 0 : i32
    return %c0_i32, %c0_i32_0 : i32, i32
  }
  func.func @transform_1(%arg0: i32) -> (i32, i32) {
    %c0_i32 = arith.constant 0 : i32
    %c0_i32_0 = arith.constant 0 : i32
    %c0_i32_1 = arith.constant 0 : i32
    return %c0_i32, %c0_i32_0 : i32, i32
  }
  func.func @transform_2(%arg0: i32) -> (i32, i32) {
    %c0_i32 = arith.constant 0 : i32
    %c0_i32_0 = arith.constant 0 : i32
    %c0_i32_1 = arith.constant 0 : i32
    return %c0_i32, %c0_i32_0 : i32, i32
  }
  func.func @transform_3(%arg0: i32) -> (i32, i32) {
    %c0_i32 = arith.constant 0 : i32
    %c0_i32_0 = arith.constant 0 : i32
    %c0_i32_1 = arith.constant 0 : i32
    return %c0_i32, %c0_i32_0 : i32, i32
  }
  func.func @transform_4(%arg0: i32) -> (i32, i32) {
    %c0_i32 = arith.constant 0 : i32
    %c0_i32_0 = arith.constant 0 : i32
    %c0_i32_1 = arith.constant 0 : i32
    return %c0_i32, %c0_i32_0 : i32, i32
  }
  func.func @transform_5(%arg0: i32) -> (i32, i32) {
    %c0_i32 = arith.constant 0 : i32
    %c0_i32_0 = arith.constant 0 : i32
    %c0_i32_1 = arith.constant 0 : i32
    return %c0_i32, %c0_i32_0 : i32, i32
  }
  func.func @transform_6(%arg0: i32) -> (i32, i32) {
    %c0_i32 = arith.constant 0 : i32
    %c0_i32_0 = arith.constant 0 : i32
    %c0_i32_1 = arith.constant 0 : i32
    return %c0_i32, %c0_i32_0 : i32, i32
  }
  func.func @transform_7(%arg0: i32) -> (i32, i32) {
    %c0_i32 = arith.constant 0 : i32
    %c0_i32_0 = arith.constant 0 : i32
    %c0_i32_1 = arith.constant 0 : i32
    return %c0_i32, %c0_i32_0 : i32, i32
  }
  func.func @transform_8(%arg0: i32) -> (i32, i32) {
    %c0_i32 = arith.constant 0 : i32
    %c0_i32_0 = arith.constant 0 : i32
    %c0_i32_1 = arith.constant 0 : i32
    return %c0_i32, %c0_i32_0 : i32, i32
  }
}

</mosaic_0001>

<bundles_post_ra>
// kernel: net_forward.1
= control target key start
LH: loop header
LB: loop body
LE: loop exit
PB: predicated region body
PF: predicated region fallthrough
CT: control target
= control target key end

     0   :  { %v4662_v0 = vmov 0   ;;  %vm542_vm0 = vcmask 523264   ;;  %vm1313_vm1 = vcmask 261120   ;;  %s4665_s11 = smov 64   ;;  %s4666_s12 = smov 96   ;;  %vm2050_vm2 = vcmask 523520   ;;  %s7288_s1 = inlined_call_operand.vmem [shape: bf16[192,32], index: 1, kind: input, shape index: {}]   ;;  %s7289_s0 = inlined_call_operand.vmem [shape: bf16[512,192], index: 0, kind: input, shape index: {}]   ;;  %s7290_s7 = inlined_call_operand.vmem [shape: f32[512,1], index: 7, kind: input, shape index: {}]   ;;  %s7291_s4 = inlined_call_operand.vmem [shape: f32[2,32], index: 4, kind: input, shape index: {}]   ;;  %s7292_s2 = inlined_call_operand.vmem [shape: bf16[512,64], index: 2, kind: input, shape index: {}]   ;;  %s7293_s3 = inlined_call_operand.vmem [shape: bf16[576,64], index: 3, kind: input, shape index: {}]   ;;  %s7294_s5 = inlined_call_operand.vmem [shape: f32[2,64], index: 5, kind: input, shape index: {}]   ;;  %s7295_s6 = inlined_call_operand.vmem [shape: f32[2,64], index: 6, kind: input, shape index: {}]   ;;  %s7296_s8 = inlined_call_operand.vmem [shape: f32[8,64], index: 8, kind: output, shape index: {}]  }
   0x1   :  { %639 = vmatprep.subr.bf16.mxu0 %v4662_v0  ;;  %v4460_v1 = vld [vmem:[%s7288_s1 + $0x38] sm:$0xff]   ;;  %4429 = vmatprep.subr.bf16.mxu1 %v4662_v0  ;;  %v4461_v2 = vld [vmem:[%s7288_s1 + $0x30] sm:$0xff]   ;;  %v4462_v3 = vld [vmem:[%s7288_s1 + $0x28] sm:$0xff]   ;;  %vm2118_vm3 = vcmask 785920   ;;  %vm2165_vm4 = vcmask 1048320   ;;  %vm3414_vm5 = vcmask 1048064  }
   0x2   :  { %4458 = vset.pattern.permute.xlu0 %v4662_v0  ;;  %4459 = vset.pattern.permute.xlu1 %v4662_v0  ;;  %v4463_v4 = vld [vmem:[%s7288_s1 + $0x20] sm:$0xff]   ;;  %v4464_v6 = vld [vmem:[%s7288_s1 + $0x18] sm:$0xff]   ;;  %v4465_v7 = vld [vmem:[%s7288_s1 + $0x10] sm:$0xff]  }
   0x3   :  { %640 = vmatpush1.bf16.msra.mxu0 %v4460_v1  ;;  %4441 = vmatpush1.bf16.msra.mxu1 %v4460_v1  ;;  %v4474_v5 = vld [vmem:[%s7289_s0 + $0x4] ss:$8 sps:$4 sm:$0xff]   ;;  %v32_v10 = vld [vmem:[%s7290_s7 + $0x10] sm:$0xff]  ;;  %v33_v12 = vld [vmem:[%s7290_s7 + $0x18] sm:$0xff] }
   0x4   :  { %641 = vmatprep.subr.bf16.mxu0 %v4662_v0  ;;  %4430 = vmatprep.subr.bf16.mxu1 %v4662_v0  ;;  %v30_v8 = vld [vmem:[%s7290_s7] sm:$0xff]  ;;  %v4466_v9 = vld [vmem:[%s7288_s1 + $0x8] sm:$0xff]   ;;  %v4468_v16 = vld [vmem:[%s7288_s1 + $0x58] sm:$0xff]  }
   0x5   :  { %4125 = vmatprep.mubr.msk.bf16.mxu0 %vm542_vm0, %v4474_v5  ;;  %931 = vperm.xlu0 %4458, %v30_v8   ;;  %v31_v11 = vld [vmem:[%s7290_s7 + $0x8] sm:$0xff]  ;;  %v4467_v13 = vld [vmem:[%s7288_s1] sm:$0xff]   ;;  %v36_v17 = vld [vmem:[%s7290_s7 + $0x30] sm:$0xff] }
   0x6   :  { %941 = vperm.xlu1 %4459, %v32_v10   ;;  %v34_v14 = vld [vmem:[%s7290_s7 + $0x20] sm:$0xff]  ;;  %v35_v15 = vld [vmem:[%s7290_s7 + $0x28] sm:$0xff]  ;;  %v37_v18 = vld [vmem:[%s7290_s7 + $0x38] sm:$0xff] }
   0x7   :  { %642 = vmatpush1.bf16.msra.mxu0 %v4461_v2  ;;  %4442 = vmatpush1.bf16.msra.mxu1 %v4461_v2  ;;  %v4507_v19 = vld [vmem:[%s7289_s0 + $0x1c4] ss:$8 sps:$4 sm:$0xff]   ;;  %v4469_v20 = vld [vmem:[%s7288_s1 + $0x50] sm:$0xff]   ;;  %v41_v25 = vld [vmem:[%s7290_s7 + $0x58] sm:$0xff] }
   0x8   :  { %643 = vmatprep.subr.bf16.mxu0 %v4662_v0  ;;  %4431 = vmatprep.subr.bf16.mxu1 %v4662_v0  ;;  %v38_v21 = vld [vmem:[%s7290_s7 + $0x40] sm:$0xff]  ;;  %v39_v22 = vld [vmem:[%s7290_s7 + $0x48] sm:$0xff]  ;;  %v40_v24 = vld [vmem:[%s7290_s7 + $0x50] sm:$0xff] }
   0x9   :  { %936 = vperm.xlu0 %4458, %v31_v11   ;;  %4153 = vmatprep.mubr.msk.bf16.mxu1 %vm542_vm0, %v4507_v19  ;;  %v4470_v23 = vld [vmem:[%s7288_s1 + $0x48] sm:$0xff]   ;;  %v4471_v26 = vld [vmem:[%s7288_s1 + $0x40] sm:$0xff]   ;;  %v4475_v30 = vld [vmem:[%s7289_s0 + $0x14] ss:$8 sps:$4 sm:$0xff]  }
   0xa   :  { %946 = vperm.xlu1 %4459, %v33_v12   ;;  %v42_v27 = vld [vmem:[%s7290_s7 + $0x60] sm:$0xff]  ;;  %v43_v29 = vld [vmem:[%s7290_s7 + $0x68] sm:$0xff]  ;;  %v44_v31 = vld [vmem:[%s7290_s7 + $0x70] sm:$0xff] }
   0xb   :  { %644 = vmatpush1.bf16.msra.mxu0 %v4462_v3  ;;  %4443 = vmatpush1.bf16.msra.mxu1 %v4462_v3  ;;  %v4472_v28 = vld [vmem:[%s7289_s0] ss:$8 sps:$4 sm:$0xff]   ;;  %v4511_v33 = vld [vmem:[%s7289_s0 + $0x1d4] ss:$8 sps:$4 sm:$0xff]   ;;  %v4477_v36 = vld [vmem:[%s7289_s0 + $0x10] ss:$8 sps:$4 sm:$0xff]  }
   0xc   :  { %645 = vmatprep.subr.bf16.mxu0 %v4662_v0  ;;  %4432 = vmatprep.subr.bf16.mxu1 %v4662_v0  ;;  %v4505_v32 = vld [vmem:[%s7289_s0 + $0x1c0] ss:$8 sps:$4 sm:$0xff]   ;;  %v45_v34 = vld [vmem:[%s7290_s7 + $0x78] sm:$0xff]  ;;  %v4478_v37 = vld [vmem:[%s7289_s0 + $0x24] ss:$8 sps:$4 sm:$0xff]  }
   0xd   :  { %951 = vperm.xlu0 %4458, %v34_v14   ;;  %v46_v35 = vld [vmem:[%s7290_s7 + $0x80] sm:$0xff]  ;;  %v47_v38 = vld [vmem:[%s7290_s7 + $0x88] sm:$0xff]  ;;  %v48_v39 = vld [vmem:[%s7290_s7 + $0x90] sm:$0xff] }
   0xe   :  { %956 = vperm.xlu1 %4459, %v35_v15   ;;  %v4513_v40 = vld [vmem:[%s7289_s0 + $0x1d0] ss:$8 sps:$4 sm:$0xff]   ;;  %v4517_v41 = vld [vmem:[%s7289_s0 + $0x1e4] ss:$8 sps:$4 sm:$0xff]   ;;  %v4480_v44 = vld [vmem:[%s7289_s0 + $0x20] ss:$8 sps:$4 sm:$0xff]  }
   0xf   :  { %646 = vmatpush1.bf16.msra.mxu0 %v4463_v4  ;;  %4444 = vmatpush1.bf16.msra.mxu1 %v4463_v4  ;;  %v49_v42 = vld [vmem:[%s7290_s7 + $0x98] sm:$0xff]  ;;  %v50_v43 = vld [vmem:[%s7290_s7 + $0xa0] sm:$0xff]  ;;  %v51_v45 = vld [vmem:[%s7290_s7 + $0xa8] sm:$0xff] }
  0x10   :  { %647 = vmatprep.subr.bf16.mxu0 %v4662_v0  ;;  %4433 = vmatprep.subr.bf16.mxu1 %v4662_v0  ;;  %v4481_v46 = vld [vmem:[%s7289_s0 + $0x34] ss:$8 sps:$4 sm:$0xff]   ;;  %v4519_v48 = vld [vmem:[%s7289_s0 + $0x1e0] ss:$8 sps:$4 sm:$0xff]   ;;  %v4483_v52 = vld [vmem:[%s7289_s0 + $0x30] ss:$8 sps:$4 sm:$0xff]  }
  0x11   :  { %961 = vperm.xlu0 %4458, %v36_v17   ;;  %v52_v47 = vld [vmem:[%s7290_s7 + $0xb0] sm:$0xff]  ;;  %v53_v50 = vld [vmem:[%s7290_s7 + $0xb8] sm:$0xff]  ;;  %v54_v51 = vld [vmem:[%s7290_s7 + $0xc0] sm:$0xff] }
  0x12   :  { %966 = vperm.xlu1 %4459, %v37_v18   ;;  %v4523_v49 = vld [vmem:[%s7289_s0 + $0x1f4] ss:$8 sps:$4 sm:$0xff]   ;;  %v55_v53 = vld [vmem:[%s7290_s7 + $0xc8] sm:$0xff]  ;;  %v4525_v56 = vld [vmem:[%s7289_s0 + $0x1f0] ss:$8 sps:$4 sm:$0xff]  }
  0x13   :  { %648 = vmatpush1.bf16.msra.mxu0 %v4464_v6  ;;  %4445 = vmatpush1.bf16.msra.mxu1 %v4464_v6  ;;  %v4484_v54 = vld [vmem:[%s7289_s0 + $0x44] ss:$8 sps:$4 sm:$0xff]   ;;  %v56_v55 = vld [vmem:[%s7290_s7 + $0xd0] sm:$0xff]  ;;  %v57_v57 = vld [vmem:[%s7290_s7 + $0xd8] sm:$0xff] }
  0x14   :  { %649 = vmatprep.subr.bf16.mxu0 %v4662_v0  ;;  %4434 = vmatprep.subr.bf16.mxu1 %v4662_v0  ;;  %v58_v58 = vld [vmem:[%s7290_s7 + $0xe0] sm:$0xff]  ;;  %v59_v60 = vld [vmem:[%s7290_s7 + $0xe8] sm:$0xff]  ;;  %v4487_v61 = vld [vmem:[%s7289_s0 + $0x54] ss:$8 sps:$4 sm:$0xff]  }
  0x15   :  { %971 = vperm.xlu0 %4458, %v38_v21   ;;  %v4486_v59 = vld [vmem:[%s7289_s0 + $0x40] ss:$8 sps:$4 sm:$0xff]   ;;  %v60_v62 = vld [vmem:[%s7290_s7 + $0xf0] sm:$0xff]  ;;  %v61_v63 = vld [vmem:[%s7290_s7 + $0xf8] sm:$0xff] }
  0x16   :  { %976 = vperm.xlu1 %4459, %v39_v22   ;;  %v4489_v1 = vld [vmem:[%s7289_s0 + $0x50] ss:$8 sps:$4 sm:$0xff]   ;;  %v63_v2 = vld [vmem:[%s7290_s7 + $0x108] sm:$0xff]  ;;  %v66_v6 = vld [vmem:[%s7290_s7 + $0x120] sm:$0xff] }
  0x17   :  { %650 = vmatpush1.bf16.msra.mxu0 %v4465_v7  ;;  %4446 = vmatpush1.bf16.msra.mxu1 %v4465_v7  ;;  %v4490_v3 = vld [vmem:[%s7289_s0 + $0x64] ss:$8 sps:$4 sm:$0xff]   ;;  %v64_v4 = vld [vmem:[%s7290_s7 + $0x110] sm:$0xff]  ;;  %v65_v5 = vld [vmem:[%s7290_s7 + $0x118] sm:$0xff] }
  0x18   :  { %651 = vmatprep.subr.bf16.mxu0 %v4662_v0  ;;  %4435 = vmatprep.subr.bf16.mxu1 %v4662_v0  ;;  %v4492_v7 = vld [vmem:[%s7289_s0 + $0x60] ss:$8 sps:$4 sm:$0xff]   ;;  %v68_v10 = vld [vmem:[%s7290_s7 + $0x130] sm:$0xff]  ;;  %v69_v11 = vld [vmem:[%s7290_s7 + $0x138] sm:$0xff] }
  0x19   :  { %981 = vperm.xlu0 %4458, %v40_v24   ;;  %v67_v8 = vld [vmem:[%s7290_s7 + $0x128] sm:$0xff]  ;;  %v70_v12 = vld [vmem:[%s7290_s7 + $0x140] sm:$0xff]  ;;  %v73_v17 = vld [vmem:[%s7290_s7 + $0x158] sm:$0xff] }
  0x1a   :  { %986 = vperm.xlu1 %4459, %v41_v25   ;;  %v71_v14 = vld [vmem:[%s7290_s7 + $0x148] sm:$0xff]  ;;  %v74_v18 = vld [vmem:[%s7290_s7 + $0x160] sm:$0xff]  ;;  %v4499_v21 = vld [vmem:[%s7289_s0 + $0x94] ss:$8 sps:$4 sm:$0xff]  }
  0x1b   :  { %652 = vmatpush1.bf16.msra.mxu0 %v4466_v9  ;;  %4447 = vmatpush1.bf16.msra.mxu1 %v4466_v9  ;;  %v4493_v9 = vld [vmem:[%s7289_s0 + $0x74] ss:$8 sps:$4 sm:$0xff]   ;;  %v4496_v15 = vld [vmem:[%s7289_s0 + $0x84] ss:$8 sps:$4 sm:$0xff]   ;;  %v4498_v19 = vld [vmem:[%s7289_s0 + $0x80] ss:$8 sps:$4 sm:$0xff]  }
  0x1c   :  { %653 = vmatprep.subr.bf16.mxu0 %v4662_v0  ;;  %4436 = vmatprep.subr.bf16.mxu1 %v4662_v0  ;;  %v76_v22 = vld [vmem:[%s7290_s7 + $0x170] sm:$0xff]  ;;  %v78_v24 = vld [vmem:[%s7290_s7 + $0x180] sm:$0xff] }
  0x1d   :  { %991 = vperm.xlu0 %4458, %v42_v27   ;;  %v4501_v25 = vld [vmem:[%s7289_s0 + $0x90] ss:$8 sps:$4 sm:$0xff]   ;;  %v4502_v27 = vld [vmem:[%s7289_s0 + $0xa4] ss:$8 sps:$4 sm:$0xff]  }
  0x1e   :  { %996 = vperm.xlu1 %4459, %v43_v29   ;;  %v81_v29 = vld [vmem:[%s7290_s7 + $0x198] sm:$0xff] }
  0x1f   :  { %654 = vmatpush1.bf16.msra.mxu0 %v4467_v13  ;;  %4448 = vmatpush1.bf16.msra.mxu1 %v4467_v13  ;;  %v4495_v13 = vld [vmem:[%s7289_s0 + $0x70] ss:$8 sps:$4 sm:$0xff]  }
  0x20   :  { %663 = vmatprep.subr.bf16.mxu0 %v4662_v0  ;;  %4437 = vmatprep.subr.bf16.mxu1 %v4662_v0 }
  0x21   :  { %1001 = vperm.xlu0 %4458, %v44_v31   ;;  %v4504_v31 = vld [vmem:[%s7289_s0 + $0xa0] ss:$8 sps:$4 sm:$0xff]  }
  0x22   :  { %1006 = vperm.xlu1 %4459, %v45_v34   ;;  %v84_v34 = vld [vmem:[%s7290_s7 + $0x1b0] sm:$0xff] }
  0x23   :  { %664 = vmatpush2.bf16.msra.mxu0 %v4468_v16  ;;  %4449 = vmatpush2.bf16.msra.mxu1 %v4468_v16  ;;  %v72_v16 = vld [vmem:[%s7290_s7 + $0x150] sm:$0xff] }
  0x24   :  { %665 = vmatprep.subr.bf16.mxu0 %v4662_v0  ;;  %4438 = vmatprep.subr.bf16.mxu1 %v4662_v0 }
  0x25   :  { %1011 = vperm.xlu0 %4458, %v46_v35   ;;  %v85_v35 = vld [vmem:[%s7290_s7 + $0x1b8] sm:$0xff] }
  0x26   :  { %1016 = vperm.xlu1 %4459, %v47_v38   ;;  %v87_v38 = vld [vmem:[%s7290_s7 + $0x1c8] sm:$0xff] }
  0x27   :  { %666 = vmatpush2.bf16.msra.mxu0 %v4469_v20  ;;  %4450 = vmatpush2.bf16.msra.mxu1 %v4469_v20  ;;  %v75_v20 = vld [vmem:[%s7290_s7 + $0x168] sm:$0xff] }
  0x28   :  { %667 = vmatprep.subr.bf16.mxu0 %v4662_v0  ;;  %4439 = vmatprep.subr.bf16.mxu1 %v4662_v0 }
  0x29   :  { %1021 = vperm.xlu0 %4458, %v48_v39   ;;  %v4514_v39 = vld [vmem:[%s7289_s0 + $0xc4] ss:$8 sps:$4 sm:$0xff]  }
  0x2a   :  { %1026 = vperm.xlu1 %4459, %v49_v42   ;;  %v90_v42 = vld [vmem:[%s7290_s7 + $0x1e0] sm:$0xff] }
  0x2b   :  { %668 = vmatpush2.bf16.msra.mxu0 %v4470_v23  ;;  %4451 = vmatpush2.bf16.msra.mxu1 %v4470_v23  ;;  %v77_v23 = vld [vmem:[%s7290_s7 + $0x178] sm:$0xff] }
  0x2c   :  { %669 = vmatprep.subr.bf16.mxu0 %v4662_v0  ;;  %4440 = vmatprep.subr.bf16.mxu1 %v4662_v0  ;;  %v62_v0 = vld [vmem:[%s7290_s7 + $0x100] sm:$0xff] }
  0x2d   :  { %1031 = vperm.xlu0 %4458, %v50_v43   ;;  %v4516_v43 = vld [vmem:[%s7289_s0 + $0xc0] ss:$8 sps:$4 sm:$0xff]  }
  0x2e   :  { %1036 = vperm.xlu1 %4459, %v51_v45   ;;  %v4520_v45 = vld [vmem:[%s7289_s0 + $0xd4] ss:$8 sps:$4 sm:$0xff]  }
  0x2f   :  { %670 = vmatpush2.bf16.msra.mxu0 %v4471_v26  ;;  %4452 = vmatpush2.bf16.msra.mxu1 %v4471_v26  ;;  %v79_v26 = vld [vmem:[%s7290_s7 + $0x188] sm:$0xff] }
  0x31   :  { %1041 = vperm.xlu0 %4458, %v52_v47   ;;  %v93_v47 = vld [vmem:[%s7290_s7 + $0x1f8] sm:$0xff] }
  0x32   :  { %672 = vmatmul.mubr.bf16.vlgmr.msra.gmra.mxu0 %v4472_v28  ;;  %896 = vmatmul.mubr.bf16.vlgmr.msra.gmra.mxu1 %v4505_v32  ;;  %v80_v28 = vld [vmem:[%s7290_s7 + $0x190] sm:$0xff]  ;;  %v83_v32 = vld [vmem:[%s7290_s7 + $0x1a8] sm:$0xff] }
  0x33   :  { %4126 = vmatprep.mubr.msk.bf16.mxu0 %vm542_vm0, %v4475_v30  ;;  %4154 = vmatprep.mubr.msk.bf16.mxu1 %vm542_vm0, %v4511_v33  ;;  %v82_v30 = vld [vmem:[%s7290_s7 + $0x1a0] sm:$0xff]  ;;  %v4508_v33 = vld [vmem:[%s7289_s0 + $0xb4] ss:$8 sps:$4 sm:$0xff]  }
  0x34   :  { %1046 = vperm.xlu1 %4459, %v53_v50   ;;  %v4528_v50 = vld [vmem:[%s7289_s0 + $0xe0] ss:$8 sps:$4 sm:$0xff]  }
  0x35   :  { %1051 = vperm.xlu0 %4458, %v54_v51   ;;  %v4529_v51 = vld [vmem:[%s7289_s0 + $0xf4] ss:$8 sps:$4 sm:$0xff]  }
  0x38   :  { %1056 = vperm.xlu1 %4459, %v55_v53   ;;  %v4532_v53 = vld [vmem:[%s7289_s0 + $0x104] ss:$8 sps:$4 sm:$0xff]  }
  0x39   :  { %1061 = vperm.xlu0 %4458, %v56_v55   ;;  %v4535_v55 = vld [vmem:[%s7289_s0 + $0x114] ss:$8 sps:$4 sm:$0xff]  }
  0x3a   :  { %680 = vmatmul.mubr.bf16.gmra.mxu0 %v4477_v36  ;;  %904 = vmatmul.mubr.bf16.gmra.mxu1 %v4513_v40  ;;  %v86_v36 = vld [vmem:[%s7290_s7 + $0x1c0] sm:$0xff]  ;;  %v88_v40 = vld [vmem:[%s7290_s7 + $0x1d0] sm:$0xff] }
  0x3b   :  { %4127 = vmatprep.mubr.msk.bf16.mxu0 %vm542_vm0, %v4478_v37  ;;  %4155 = vmatprep.mubr.msk.bf16.mxu1 %vm542_vm0, %v4517_v41  ;;  %v4510_v37 = vld [vmem:[%s7289_s0 + $0xb0] ss:$8 sps:$4 sm:$0xff]  }
  0x3c   :  { %1066 = vperm.xlu1 %4459, %v57_v57   ;;  %v89_v41 = vld [vmem:[%s7290_s7 + $0x1d8] sm:$0xff]  ;;  %v4538_v57 = vld [vmem:[%s7289_s0 + $0x124] ss:$8 sps:$4 sm:$0xff]  }
  0x3d   :  { %1071 = vperm.xlu0 %4458, %v58_v58   ;;  %v4540_v58 = vld [vmem:[%s7289_s0 + $0x120] ss:$8 sps:$4 sm:$0xff]  }
  0x40   :  { %1076 = vperm.xlu1 %4459, %v59_v60   ;;  %v4543_v60 = vld [vmem:[%s7289_s0 + $0x130] ss:$8 sps:$4 sm:$0xff]  }
  0x41   :  { %1081 = vperm.xlu0 %4458, %v60_v62   ;;  %v4546_v62 = vld [vmem:[%s7289_s0 + $0x140] ss:$8 sps:$4 sm:$0xff]  }
  0x42   :  { %688 = vmatmul.mubr.bf16.gmra.mxu0 %v4480_v44  ;;  %912 = vmatmul.mubr.bf16.gmra.mxu1 %v4519_v48  ;;  %v91_v44 = vld [vmem:[%s7290_s7 + $0x1e8] sm:$0xff]  ;;  %v4522_v48 = vld [vmem:[%s7289_s0 + $0xd0] ss:$8 sps:$4 sm:$0xff]  }
  0x43   :  { %4128 = vmatprep.mubr.msk.bf16.mxu0 %vm542_vm0, %v4481_v46  ;;  %4156 = vmatprep.mubr.msk.bf16.mxu1 %vm542_vm0, %v4523_v49  ;;  %v92_v46 = vld [vmem:[%s7290_s7 + $0x1f0] sm:$0xff]  ;;  %v4526_v49 = vld [vmem:[%s7289_s0 + $0xe4] ss:$8 sps:$4 sm:$0xff]  }
  0x44   :  { %1086 = vperm.xlu1 %4459, %v61_v63   ;;  %v4547_v63 = vld [vmem:[%s7289_s0 + $0x154] ss:$8 sps:$4 sm:$0xff]  }
  0x45   :  { %1091 = vperm.xlu0 %4458, %v62_v0   ;;  %v4549_v0 = vld [vmem:[%s7289_s0 + $0x150] ss:$8 sps:$4 sm:$0xff]  }
  0x48   :  { %1096 = vperm.xlu1 %4459, %v63_v2   ;;  %v4552_v2 = vld [vmem:[%s7289_s0 + $0x160] ss:$8 sps:$4 sm:$0xff]  }
  0x49   :  { %1101 = vperm.xlu0 %4458, %v64_v4   ;;  %v4555_v4 = vld [vmem:[%s7289_s0 + $0x170] ss:$8 sps:$4 sm:$0xff]  }
  0x4a   :  { %696 = vmatmul.mubr.bf16.gmra.mxu0 %v4483_v52  ;;  %920 = vmatmul.mubr.bf16.gmra.mxu1 %v4525_v56  ;;  %v4531_v52 = vld [vmem:[%s7289_s0 + $0xf0] ss:$8 sps:$4 sm:$0xff]  }
  0x4b   :  { %4129 = vmatprep.mubr.msk.bf16.mxu0 %vm542_vm0, %v4484_v54  ;;  %v4534_v54 = vld [vmem:[%s7289_s0 + $0x100] ss:$8 sps:$4 sm:$0xff]   ;;  %v4537_v56 = vld [vmem:[%s7289_s0 + $0x110] ss:$8 sps:$4 sm:$0xff]  }
  0x4c   :  { %1106 = vperm.xlu1 %4459, %v65_v5   ;;  %v4556_v5 = vld [vmem:[%s7289_s0 + $0x184] ss:$8 sps:$4 sm:$0xff]  }
  0x4d   :  { %1111 = vperm.xlu0 %4458, %v66_v6   ;;  %v4558_v6 = vld [vmem:[%s7289_s0 + $0x180] ss:$8 sps:$4 sm:$0xff]  }
  0x50   :  { %1116 = vperm.xlu1 %4459, %v67_v8  }
  0x51   :  { %1121 = vperm.xlu0 %4458, %v68_v10  }
  0x52   :  { %704 = vmatmul.mubr.bf16.gmra.mxu0 %v4486_v59  ;;  %v4541_v59 = vld [vmem:[%s7289_s0 + $0x134] ss:$8 sps:$4 sm:$0xff]  }
  0x53   :  { %4130 = vmatprep.mubr.msk.bf16.mxu0 %vm542_vm0, %v4487_v61  ;;  %v4544_v61 = vld [vmem:[%s7289_s0 + $0x144] ss:$8 sps:$4 sm:$0xff]  }
  0x54   :  { %1126 = vperm.xlu1 %4459, %v69_v11  }
  0x55   :  { %1131 = vperm.xlu0 %4458, %v70_v12   ;;  %v4561_v12 = vld [vmem:[%s7289_s0 + $0x190] ss:$8 sps:$4 sm:$0xff]  }
  0x58   :  { %1136 = vperm.xlu1 %4459, %v71_v14  }
  0x59   :  { %1141 = vperm.xlu0 %4458, %v72_v16  }
  0x5a   :  { %712 = vmatmul.mubr.bf16.gmra.mxu0 %v4489_v1  ;;  %v4550_v1 = vld [vmem:[%s7289_s0 + $0x164] ss:$8 sps:$4 sm:$0xff]  }
  0x5b   :  { %4131 = vmatprep.mubr.msk.bf16.mxu0 %vm542_vm0, %v4490_v3  ;;  %v4553_v3 = vld [vmem:[%s7289_s0 + $0x174] ss:$8 sps:$4 sm:$0xff]  }
  0x5c   :  { %1146 = vperm.xlu1 %4459, %v73_v17  }
  0x5d   :  { %1151 = vperm.xlu0 %4458, %v74_v18  }
  0x60   :  { %1156 = vperm.xlu1 %4459, %v75_v20  }
  0x61   :  { %1161 = vperm.xlu0 %4458, %v76_v22   ;;  %v4564_v22 = vld [vmem:[%s7289_s0 + $0x1a0] ss:$8 sps:$4 sm:$0xff]  }
  0x62   :  { %720 = vmatmul.mubr.bf16.gmra.mxu0 %v4492_v7  ;;  %v4559_v7 = vld [vmem:[%s7289_s0 + $0x194] ss:$8 sps:$4 sm:$0xff]  }
  0x63   :  { %4132 = vmatprep.mubr.msk.bf16.mxu0 %vm542_vm0, %v4493_v9 }
  0x64   :  { %1166 = vperm.xlu1 %4459, %v77_v23   ;;  %v4565_v23 = vld [vmem:[%s7289_s0 + $0x1b4] ss:$8 sps:$4 sm:$0xff]  }
  0x65   :  { %1171 = vperm.xlu0 %4458, %v78_v24  }
  0x68   :  { %1176 = vperm.xlu1 %4459, %v79_v26  }
  0x69   :  { %1181 = vperm.xlu0 %4458, %v80_v28  }
  0x6a   :  { %728 = vmatmul.mubr.bf16.gmra.mxu0 %v4495_v13  ;;  %v4562_v13 = vld [vmem:[%s7289_s0 + $0x1a4] ss:$8 sps:$4 sm:$0xff]  }
  0x6b   :  { %4133 = vmatprep.mubr.msk.bf16.mxu0 %vm542_vm0, %v4496_v15 }
  0x6c   :  { %1186 = vperm.xlu1 %4459, %v81_v29  }
  0x6d   :  { %1191 = vperm.xlu0 %4458, %v82_v30  }
  0x70   :  { %1196 = vperm.xlu1 %4459, %v83_v32   ;;  %v4567_v32 = vld [vmem:[%s7289_s0 + $0x1b0] ss:$8 sps:$4 sm:$0xff]   ;;  %s4664_s0 = smov 32  }
  0x71   :  { %1201 = vperm.xlu0 %4458, %v84_v34  }
  0x72   :  { %736 = vmatmul.mubr.bf16.gmra.mxu0 %v4498_v19 }
  0x73   :  { %4134 = vmatprep.mubr.msk.bf16.mxu0 %vm542_vm0, %v4499_v21 }
  0x74   :  { %1206 = vperm.xlu1 %4459, %v85_v35  }
  0x75   :  { %1211 = vperm.xlu0 %4458, %v86_v36  }
  0x78   :  { %1216 = vperm.xlu1 %4459, %v87_v38  }
  0x79   :  { %1221 = vperm.xlu0 %4458, %v88_v40  }
  0x7a   :  { %744 = vmatmul.mubr.bf16.gmra.mxu0 %v4501_v25 }
  0x7b   :  { %4135 = vmatprep.mubr.msk.bf16.mxu0 %vm542_vm0, %v4502_v27 }
  0x7c   :  { %1226 = vperm.xlu1 %4459, %v89_v41  }
  0x7d   :  { %1231 = vperm.xlu0 %4458, %v90_v42  }
  0x80   :  { %1236 = vperm.xlu1 %4459, %v91_v44  }
  0x81   :  { %1241 = vperm.xlu0 %4458, %v92_v46  }
  0x82   :  { %752 = vmatmul.mubr.bf16.gmra.mxu0 %v4504_v31 }
  0x83   :  { %4136 = vmatprep.mubr.msk.bf16.mxu0 %vm542_vm0, %v4508_v33 }
  0x84   :  { %1246 = vperm.xlu1 %4459, %v93_v47  }
  0x8a   :  { %760 = vmatmul.mubr.bf16.gmra.mxu0 %v4510_v37 }
  0x8b   :  { %4137 = vmatprep.mubr.msk.bf16.mxu0 %vm542_vm0, %v4514_v39 }
  0x92   :  { %768 = vmatmul.mubr.bf16.gmra.mxu0 %v4516_v43 }
  0x93   :  { %4138 = vmatprep.mubr.msk.bf16.mxu0 %vm542_vm0, %v4520_v45 }
  0x9a   :  { %776 = vmatmul.mubr.bf16.gmra.mxu0 %v4522_v48 }
  0x9b   :  { %4139 = vmatprep.mubr.msk.bf16.mxu0 %vm542_vm0, %v4526_v49 }
  0xa2   :  { %784 = vmatmul.mubr.bf16.gmra.mxu0 %v4528_v50 }
  0xa3   :  { %4140 = vmatprep.mubr.msk.bf16.mxu0 %vm542_vm0, %v4529_v51 }
  0xaa   :  { %792 = vmatmul.mubr.bf16.gmra.mxu0 %v4531_v52 }
  0xab   :  { %4141 = vmatprep.mubr.msk.bf16.mxu0 %vm542_vm0, %v4532_v53 }
  0xb2   :  { %800 = vmatmul.mubr.bf16.gmra.mxu0 %v4534_v54 }
  0xb3   :  { %4142 = vmatprep.mubr.msk.bf16.mxu0 %vm542_vm0, %v4535_v55 }
  0xba   :  { %808 = vmatmul.mubr.bf16.gmra.mxu0 %v4537_v56 }
  0xbb   :  { %4143 = vmatprep.mubr.msk.bf16.mxu0 %vm542_vm0, %v4538_v57  ;;  %v5234_v57 = vpop.permute.xlu0 %931 }
  0xbc   :  { %7446 = vst [vmem:[#allocation26_spill] sm:$0xff] %v5234_v57 }
  0xc2   :  { %816 = vmatmul.mubr.bf16.gmra.mxu0 %v4540_v58 }
  0xc3   :  { %4144 = vmatprep.mubr.msk.bf16.mxu0 %vm542_vm0, %v4541_v59  ;;  %v5238_v59 = vpop.permute.xlu1 %941 }
  0xc4   :  { %7448 = vst [vmem:[#allocation28_spill] sm:$0xff] %v5238_v59 }
  0xca   :  { %824 = vmatmul.mubr.bf16.gmra.mxu0 %v4543_v60 }
  0xcb   :  { %4145 = vmatprep.mubr.msk.bf16.mxu0 %vm542_vm0, %v4544_v61 }
  0xd2   :  { %832 = vmatmul.mubr.bf16.gmra.mxu0 %v4546_v62  ;;  %v5242_v62 = vpop.permute.xlu0 %936 }
  0xd3   :  { %4146 = vmatprep.mubr.msk.bf16.mxu0 %vm542_vm0, %v4547_v63  ;;  %7450 = vst [vmem:[#allocation30_spill] sm:$0xff] %v5242_v62 }
  0xda   :  { %840 = vmatmul.mubr.bf16.gmra.mxu0 %v4549_v0  ;;  %v5244_v0 = vpop.permute.xlu1 %946 }
  0xdb   :  { %4147 = vmatprep.mubr.msk.bf16.mxu0 %vm542_vm0, %v4550_v1  ;;  %7451 = vst [vmem:[#allocation31_spill] sm:$0xff] %v5244_v0 }
  0xe2   :  { %848 = vmatmul.mubr.bf16.gmra.mxu0 %v4552_v2 }
  0xe3   :  { %4148 = vmatprep.mubr.msk.bf16.mxu0 %vm542_vm0, %v4553_v3  ;;  %v5248_v3 = vpop.permute.xlu0 %951 }
  0xe4   :  { %7453 = vst [vmem:[#allocation33_spill] sm:$0xff] %v5248_v3 }
  0xea   :  { %856 = vmatmul.mubr.bf16.gmra.mxu0 %v4555_v4 }
  0xeb   :  { %4149 = vmatprep.mubr.msk.bf16.mxu0 %vm542_vm0, %v4556_v5  ;;  %v5252_v5 = vpop.permute.xlu1 %956 }
  0xec   :  { %7455 = vst [vmem:[#allocation35_spill] sm:$0xff] %v5252_v5 }
  0xf2   :  { %v5172_v8 = vpop.f32.mrf.mxu0  ;;  %864 = vmatmul.mubr.bf16.gmra.mxu0 %v4558_v6  ;;  %v5175_v10 = vpop.f32.mrf.mxu1 }
  0xf3   :  { %7424 = vst [vmem:[#allocation4_spill] sm:$0xff] %v5172_v8  ;;  %4150 = vmatprep.mubr.msk.bf16.mxu0 %vm542_vm0, %v4559_v7  ;;  %7425 = vst [vmem:[#allocation5_spill] sm:$0xff] %v5175_v10 }
  0xf4   :  { %v675_v9 = vpop.f32.mrf.mxu0  ;;  %v899_v14 = vpop.f32.mrf.mxu1 }
  0xf5   :  { %v5256_v9 = vpop.permute.xlu0 %961 }
  0xf6   :  { %v5177_v11 = vpop.f32.mrf.mxu0  ;;  %v5185_v16 = vpop.f32.mrf.mxu1  ;;  %7457 = vst [vmem:[#allocation37_spill] sm:$0xff] %v5256_v9 }
  0xf7   :  { %7426 = vst [vmem:[#allocation6_spill] sm:$0xff] %v5177_v11  ;;  %7427 = vst [vmem:[#allocation7_spill] sm:$0xff] %v5185_v16 }
  0xf8   :  { %v678_v15 = vpop.f32.mrf.mxu0  ;;  %v902_v18 = vpop.f32.mrf.mxu1 }
  0xf9   :  { %v5262_v18 = vpop.permute.xlu0 %971 }
  0xfa   :  { %v5187_v17 = vpop.f32.mrf.mxu0  ;;  %872 = vmatmul.mubr.bf16.gmra.mxu0 %v4561_v12  ;;  %v5190_v20 = vpop.f32.mrf.mxu1  ;;  %7460 = vst [vmem:[#allocation40_spill] sm:$0xff] %v5262_v18 }
  0xfb   :  { %7428 = vst [vmem:[#allocation8_spill] sm:$0xff] %v5187_v17  ;;  %4151 = vmatprep.mubr.msk.bf16.mxu0 %vm542_vm0, %v4562_v13  ;;  %7429 = vst [vmem:[#allocation9_spill] sm:$0xff] %v5190_v20  ;;  %v5258_v13 = vpop.permute.xlu1 %966 }
  0xfc   :  { %v683_v19 = vpop.f32.mrf.mxu0  ;;  %v907_v24 = vpop.f32.mrf.mxu1  ;;  %7458 = vst [vmem:[#allocation38_spill] sm:$0xff] %v5258_v13 }
  0xfe   :  { %v5192_v21 = vpop.f32.mrf.mxu0  ;;  %v5200_v26 = vpop.f32.mrf.mxu1 }
  0xff   :  { %7430 = vst [vmem:[#allocation10_spill] sm:$0xff] %v5192_v21  ;;  %7431 = vst [vmem:[#allocation11_spill] sm:$0xff] %v5200_v26 }
 0x100   :  { %v686_v25 = vpop.f32.mrf.mxu0  ;;  %v910_v28 = vpop.f32.mrf.mxu1 }
 0x101   :  { %v5270_v25 = vpop.permute.xlu0 %981 }
 0x102   :  { %v5202_v27 = vpop.f32.mrf.mxu0  ;;  %880 = vmatmul.mubr.bf16.gmra.mxu0 %v4564_v22  ;;  %v5205_v30 = vpop.f32.mrf.mxu1  ;;  %7464 = vst [vmem:[#allocation44_spill] sm:$0xff] %v5270_v25 }
 0x103   :  { %7432 = vst [vmem:[#allocation12_spill] sm:$0xff] %v5202_v27  ;;  %4152 = vmatprep.mubr.msk.bf16.mxu0 %vm542_vm0, %v4565_v23  ;;  %7433 = vst [vmem:[#allocation13_spill] sm:$0xff] %v5205_v30  ;;  %v5266_v22 = vpop.permute.xlu1 %976 }
 0x104   :  { %v691_v29 = vpop.f32.mrf.mxu0  ;;  %v915_v33 = vpop.f32.mrf.mxu1  ;;  %7462 = vst [vmem:[#allocation42_spill] sm:$0xff] %v5266_v22 }
 0x106   :  { %v5207_v31 = vpop.f32.mrf.mxu0  ;;  %v5212_v35 = vpop.f32.mrf.mxu1 }
 0x107   :  { %7434 = vst [vmem:[#allocation14_spill] sm:$0xff] %v5207_v31  ;;  %7435 = vst [vmem:[#allocation15_spill] sm:$0xff] %v5212_v35  ;;  %v5272_v29 = vpop.permute.xlu1 %986 }
 0x108   :  { %v694_v34 = vpop.f32.mrf.mxu0  ;;  %v918_v37 = vpop.f32.mrf.mxu1  ;;  %7465 = vst [vmem:[#allocation45_spill] sm:$0xff] %v5272_v29 }
 0x109   :  { %v5276_v34 = vpop.permute.xlu0 %991 }
 0x10a   :  { %v5214_v36 = vpop.f32.mrf.mxu0  ;;  %888 = vmatmul.mubr.bf16.gmra.mxu0 %v4567_v32  ;;  %v5216_v39 = vpop.f32.mrf.mxu1  ;;  %7467 = vst [vmem:[#allocation47_spill] sm:$0xff] %v5276_v34 }
 0x10b   :  { %7436 = vst [vmem:[#allocation16_spill] sm:$0xff] %v5214_v36  ;;  %7437 = vst [vmem:[#allocation17_spill] sm:$0xff] %v5216_v39 }
 0x10c   :  { %v699_v38 = vpop.f32.mrf.mxu0  ;;  %v923_v41 = vpop.f32.mrf.mxu1 }
 0x10d   :  { %v5280_v38 = vpop.permute.xlu1 %996 }
 0x10e   :  { %v5218_v40 = vpop.f32.mrf.mxu0  ;;  %v5220_v43 = vpop.f32.mrf.mxu1  ;;  %7469 = vst [vmem:[#allocation49_spill] sm:$0xff] %v5280_v38 }
 0x10f   :  { %7438 = vst [vmem:[#allocation18_spill] sm:$0xff] %v5218_v40  ;;  %7439 = vst [vmem:[#allocation19_spill] sm:$0xff] %v5220_v43  ;;  %v1252_v43 = vmul.f32 %v5244_v0, %v5192_v21 }
 0x110   :  { %v702_v42 = vpop.f32.mrf.mxu0  ;;  %v926_v45 = vpop.f32.mrf.mxu1 }
 0x111   :  { %v5284_v45 = vpop.permute.xlu0 %1001 }
 0x112   :  { %v5222_v44 = vpop.f32.mrf.mxu0  ;;  %7470 = vst [vmem:[#allocation50_spill] sm:$0xff] %v5284_v45 }
 0x113   :  { %7440 = vst [vmem:[#allocation20_spill] sm:$0xff] %v5222_v44 }
 0x114   :  { %v707_v46 = vpop.f32.mrf.mxu0 }
 0x116   :  { %v5224_v47 = vpop.f32.mrf.mxu0 }
 0x117   :  { %7441 = vst [vmem:[#allocation21_spill] sm:$0xff] %v5224_v47 }
 0x118   :  { %v710_v48 = vpop.f32.mrf.mxu0 }
 0x119   :  { %v5286_v48 = vpop.permute.xlu1 %1006 }
 0x11a   :  { %v5226_v49 = vpop.f32.mrf.mxu0  ;;  %7471 = vst [vmem:[#allocation51_spill] sm:$0xff] %v5286_v48 }
 0x11b   :  { %7442 = vst [vmem:[#allocation22_spill] sm:$0xff] %v5226_v49 }
 0x11c   :  { %v715_v50 = vpop.f32.mrf.mxu0 }
 0x11e   :  { %v5228_v51 = vpop.f32.mrf.mxu0 }
 0x11f   :  { %7443 = vst [vmem:[#allocation23_spill] sm:$0xff] %v5228_v51 }
 0x120   :  { %v718_v52 = vpop.f32.mrf.mxu0 }
 0x122   :  { %v5230_v53 = vpop.f32.mrf.mxu0 }
 0x123   :  { %7444 = vst [vmem:[#allocation24_spill] sm:$0xff] %v5230_v53 }
 0x124   :  { %v723_v54 = vpop.f32.mrf.mxu0 }
 0x125   :  { %v5290_v54 = vpop.permute.xlu0 %1011 }
 0x126   :  { %v5232_v55 = vpop.f32.mrf.mxu0  ;;  %7472 = vst [vmem:[#allocation52_spill] sm:$0xff] %v5290_v54 }
 0x127   :  { %7445 = vst [vmem:[#allocation25_spill] sm:$0xff] %v5232_v55 }
 0x128   :  { %v726_v56 = vpop.f32.mrf.mxu0 }
 0x12a   :  { %v5236_v58 = vpop.f32.mrf.mxu0 }
 0x12b   :  { %7447 = vst [vmem:[#allocation27_spill] sm:$0xff] %v5236_v58 }
 0x12c   :  { %v731_v60 = vpop.f32.mrf.mxu0 }
 0x12d   :  { %v5294_v60 = vpop.permute.xlu1 %1016 }
 0x12e   :  { %v5240_v61 = vpop.f32.mrf.mxu0  ;;  %7473 = vst [vmem:[#allocation53_spill] sm:$0xff] %v5294_v60 }
 0x12f   :  { %7449 = vst [vmem:[#allocation29_spill] sm:$0xff] %v5240_v61 }
 0x130   :  { %v734_v63 = vpop.f32.mrf.mxu0 }
 0x132   :  { %v5246_v1 = vpop.f32.mrf.mxu0 }
 0x133   :  { %7452 = vst [vmem:[#allocation32_spill] sm:$0xff] %v5246_v1 }
 0x134   :  { %v739_v2 = vpop.f32.mrf.mxu0 }
 0x136   :  { %v5250_v4 = vpop.f32.mrf.mxu0 }
 0x137   :  { %7454 = vst [vmem:[#allocation34_spill] sm:$0xff] %v5250_v4 }
 0x138   :  { %v742_v6 = vpop.f32.mrf.mxu0 }
 0x139   :  { %v5298_v6 = vpop.permute.xlu0 %1021 }
 0x13a   :  { %v5254_v7 = vpop.f32.mrf.mxu0  ;;  %7475 = vst [vmem:[#allocation55_spill] sm:$0xff] %v5298_v6 }
 0x13b   :  { %7456 = vst [vmem:[#allocation36_spill] sm:$0xff] %v5254_v7 }
 0x13c   :  { %v747_v12 = vpop.f32.mrf.mxu0 }
 0x13e   :  { %v5260_v14 = vpop.f32.mrf.mxu0 }
 0x13f   :  { %7459 = vst [vmem:[#allocation39_spill] sm:$0xff] %v5260_v14 }
 0x140   :  { %v750_v15 = vpop.f32.mrf.mxu0 }
 0x141   :  { %v5300_v15 = vpop.permute.xlu1 %1026 }
 0x142   :  { %v5264_v19 = vpop.f32.mrf.mxu0  ;;  %7476 = vst [vmem:[#allocation56_spill] sm:$0xff] %v5300_v15 }
 0x143   :  { %7461 = vst [vmem:[#allocation41_spill] sm:$0xff] %v5264_v19 }
 0x144   :  { %v755_v23 = vpop.f32.mrf.mxu0 }
 0x145   :  { %v5317_v39 = vpop.permute.xlu1 %1036 }
 0x146   :  { %v5268_v24 = vpop.f32.mrf.mxu0  ;;  %7478 = vst [vmem:[#allocation58_spill] sm:$0xff] %v5317_v39 }
 0x147   :  { %7463 = vst [vmem:[#allocation43_spill] sm:$0xff] %v5268_v24 }
 0x148   :  { %v758_v28 = vpop.f32.mrf.mxu0 }
 0x149   :  { %v1250_v28 = vmul.f32 %v5242_v62, %v5177_v11  ;;  %v5333_v30 = vpop.permute.xlu1 %1046 }
 0x14a   :  { %v5274_v32 = vpop.f32.mrf.mxu0  ;;  %7480 = vst [vmem:[#allocation60_spill] sm:$0xff] %v5333_v30 }
 0x14b   :  { %7466 = vst [vmem:[#allocation46_spill] sm:$0xff] %v5274_v32 }
 0x14c   :  { %v763_v33 = vpop.f32.mrf.mxu0 }
 0x14e   :  { %v5278_v37 = vpop.f32.mrf.mxu0 }
 0x14f   :  { %7468 = vst [vmem:[#allocation48_spill] sm:$0xff] %v5278_v37 }
 0x150   :  { %v766_v41 = vpop.f32.mrf.mxu0 }
 0x151   :  { %v1249_v41 = vmul.f32 %v5234_v57, %v5172_v8  ;;  %v1319_v8 = vsel %vm1313_vm1, %v1252_v43, 0.0  ;;  %v1256_v43 = vmul.f32 %v5258_v13, %v5218_v40 }
 0x152   :  { %v5282_v42 = vpop.f32.mrf.mxu0 }
 0x154   :  { %v771_v46 = vpop.f32.mrf.mxu0 }
 0x155   :  { %v1251_v46 = vmul.f32 %v5238_v59, %v5187_v17  ;;  %v1253_v59 = vmul.f32 %v5248_v3, %v5202_v27 }
 0x156   :  { %v5288_v50 = vpop.f32.mrf.mxu0 }
 0x157   :  { %v1317_v57 = vsel %vm1313_vm1, %v1251_v46, 0.0 }
 0x158   :  { %v774_v52 = vpop.f32.mrf.mxu0 }
 0x159   :  { %v5310_v52 = vpop.permute.xlu0 %1031 }
 0x15a   :  { %v5292_v56 = vpop.f32.mrf.mxu0  ;;  %7477 = vst [vmem:[#allocation57_spill] sm:$0xff] %v5310_v52 }
 0x15c   :  { %v779_v63 = vpop.f32.mrf.mxu0 }
 0x15d   :  { %v5328_v0 = vpop.permute.xlu0 %1041 }
 0x15e   :  { %v5296_v2 = vpop.f32.mrf.mxu0  ;;  %7479 = vst [vmem:[#allocation59_spill] sm:$0xff] %v5328_v0 }
 0x15f   :  { %7474 = vst [vmem:[#allocation54_spill] sm:$0xff] %v5296_v2 }
 0x160   :  { %v782_v12 = vpop.f32.mrf.mxu0 }
 0x161   :  { %v1315_v12 = vsel %vm1313_vm1, %v1250_v28, 0.0  ;;  %v1254_v28 = vmul.f32 %v5252_v5, %v5207_v31  ;;  %v5343_v3 = vpop.permute.xlu0 %1051 }
 0x162   :  { %v5302_v23 = vpop.f32.mrf.mxu0  ;;  %7481 = vst [vmem:[#allocation61_spill] sm:$0xff] %v5343_v3 }
 0x164   :  { %v787_v33 = vpop.f32.mrf.mxu0 }
 0x165   :  { %v1314_v33 = vsel %vm1313_vm1, %v1249_v41, 0.0  ;;  %v1255_v41 = vmul.f32 %v5256_v9, %v5214_v36  ;;  %v5350_v36 = vpop.permute.xlu1 %1056  ;;  %v5360_v13 = vpop.permute.xlu0 %1061 }
 0x166   :  { %v5312_v63 = vpop.f32.mrf.mxu0  ;;  %v1316_v17 = vadd.f32 %v1315_v12, %v1314_v33  ;;  %v1323_v33 = vsel %vm1313_vm1, %v1254_v28, 0.0  ;;  %v1258_v28 = vmul.f32 %v5266_v22, %v5224_v47  ;;  %7482 = vst [vmem:[#allocation62_spill] sm:$0xff] %v5350_v36  ;;  %7484 = vst [vmem:[#allocation64_spill] sm:$0xff] %v5360_v13 }
 0x168   :  { %v790_v62 = vpop.f32.mrf.mxu0  ;;  %v1318_v35 = vadd.f32 %v1317_v57, %v1316_v17  ;;  %v1325_v57 = vsel %vm1313_vm1, %v1255_v41, 0.0  ;;  %v1259_v41 = vmul.f32 %v5270_v25, %v5226_v49 }
 0x169   :  { %v1321_v62 = vsel %vm1313_vm1, %v1253_v59, 0.0  ;;  %v5365_v22 = vpop.permute.xlu1 %1066 }
 0x16a   :  { %v5323_v11 = vpop.f32.mrf.mxu0  ;;  %v1320_v46 = vadd.f32 %v1319_v8, %v1318_v35  ;;  %v1327_v35 = vsel %vm1313_vm1, %v1256_v43, 0.0  ;;  %v1260_v43 = vmul.f32 %v5272_v29, %v5228_v51  ;;  %7485 = vst [vmem:[#allocation65_spill] sm:$0xff] %v5365_v22 }
 0x16c   :  { %v795_v21 = vpop.f32.mrf.mxu0  ;;  %v1322_v5 = vadd.f32 %v1321_v62, %v1320_v46 }
 0x16d   :  { %v1257_v21 = vmul.f32 %v5262_v18, %v5222_v44  ;;  %v5382_v25 = vpop.permute.xlu1 %1076 }
 0x16e   :  { %v5335_v12 = vpop.f32.mrf.mxu0  ;;  %v1324_v59 = vadd.f32 %v1323_v33, %v1322_v5  ;;  %v1331_v33 = vsel %vm1313_vm1, %v1258_v28, 0.0  ;;  %v1262_v28 = vmul.f32 %v5280_v38, %v5232_v55  ;;  %7487 = vst [vmem:[#allocation67_spill] sm:$0xff] %v5382_v25 }
 0x16f   :  { %v1329_v46 = vsel %vm1313_vm1, %v1257_v21, 0.0  ;;  %v1261_v21 = vmul.f32 %v5276_v34, %v5230_v53 }
 0x170   :  { %v798_v17 = vpop.f32.mrf.mxu0  ;;  %v1326_v9 = vadd.f32 %v1325_v57, %v1324_v59  ;;  %v1333_v59 = vsel %vm1313_vm1, %v1259_v41, 0.0  ;;  %v1263_v41 = vmul.f32 %v5284_v45, %v5236_v58 }
 0x172   :  { %v5345_v8 = vpop.f32.mrf.mxu0  ;;  %v1328_v17 = vadd.f32 %v1327_v35, %v1326_v9  ;;  %v1335_v35 = vsel %vm1313_vm1, %v1260_v43, 0.0  ;;  %v1264_v43 = vmul.f32 %v5286_v48, %v5240_v61 }
 0x174   :  { %v803_v62 = vpop.f32.mrf.mxu0  ;;  %v1330_v18 = vadd.f32 %v1329_v46, %v1328_v17  ;;  %v1337_v17 = vsel %vm1313_vm1, %v1261_v21, 0.0  ;;  %v1265_v21 = vmul.f32 %v5290_v54, %v5246_v1 }
 0x176   :  { %v5355_v5 = vpop.f32.mrf.mxu0  ;;  %v1332_v62 = vadd.f32 %v1331_v33, %v1330_v18  ;;  %v1339_v33 = vsel %vm1313_vm1, %v1262_v28, 0.0 }
 0x177   :  { %7483 = vst [vmem:[#allocation63_spill] sm:$0xff] %v5355_v5 }
 0x178   :  { %v806_v57 = vpop.f32.mrf.mxu0  ;;  %v1334_v29 = vadd.f32 %v1333_v59, %v1332_v62  ;;  %v1341_v62 = vsel %vm1313_vm1, %v1263_v41, 0.0  ;;  %v5397_v41 = vpop.permute.xlu1 %1086 }
 0x179   :  { %v5375_v57 = vpop.permute.xlu0 %1071  ;;  %7489 = vst [vmem:[#allocation69_spill] sm:$0xff] %v5397_v41 }
 0x17a   :  { %v5367_v9 = vpop.f32.mrf.mxu0  ;;  %7486 = vst [vmem:[#allocation66_spill] sm:$0xff] %v5375_v57  ;;  %v1336_v34 = vadd.f32 %v1335_v35, %v1334_v29  ;;  %v1343_v29 = vsel %vm1313_vm1, %v1264_v43, 0.0  ;;  %v1266_v35 = vmul.f32 %v5294_v60, %v5250_v4  ;;  %v1268_v43 = vmul.f32 %v5300_v15, %v5260_v14 }
 0x17c   :  { %v811_v46 = vpop.f32.mrf.mxu0  ;;  %v1338_v38 = vadd.f32 %v1337_v17, %v1336_v34  ;;  %v1345_v34 = vsel %vm1313_vm1, %v1265_v21, 0.0  ;;  %v1267_v17 = vmul.f32 %v5298_v6, %v5254_v7 }
 0x17d   :  { %v5392_v28 = vpop.permute.xlu0 %1081 }
 0x17e   :  { %v5377_v18 = vpop.f32.mrf.mxu0  ;;  %v1340_v46 = vadd.f32 %v1339_v33, %v1338_v38  ;;  %7488 = vst [vmem:[#allocation68_spill] sm:$0xff] %v5392_v28  ;;  %v1347_v33 = vsel %vm1313_vm1, %v1266_v35, 0.0  ;;  %v5414_v35 = vpop.permute.xlu1 %1096 }
 0x17f   :  { %7491 = vst [vmem:[#allocation71_spill] sm:$0xff] %v5414_v35 }
 0x180   :  { %v814_v59 = vpop.f32.mrf.mxu0  ;;  %v1342_v48 = vadd.f32 %v1341_v62, %v1340_v46  ;;  %v1349_v62 = vsel %vm1313_vm1, %v1267_v17, 0.0  ;;  %v1271_v17 = vmul.f32 %v5328_v0, %v5274_v32 }
 0x181   :  { %v5407_v21 = vpop.permute.xlu0 %1091 }
 0x182   :  { %v5387_v45 = vpop.f32.mrf.mxu0  ;;  %v1344_v59 = vadd.f32 %v1343_v29, %v1342_v48  ;;  %7490 = vst [vmem:[#allocation70_spill] sm:$0xff] %v5407_v21  ;;  %v1351_v48 = vsel %vm1313_vm1, %v1268_v43, 0.0  ;;  %v1270_v29 = vmul.f32 %v5317_v39, %v5268_v24 }
 0x184   :  { %v819_v61 = vpop.f32.mrf.mxu0  ;;  %v1346_v60 = vadd.f32 %v1345_v34, %v1344_v59 }
 0x185   :  { %v1269_v61 = vmul.f32 %v5310_v52, %v5264_v19  ;;  %v5424_v43 = vpop.permute.xlu0 %1101 }
 0x186   :  { %v5399_v38 = vpop.f32.mrf.mxu0  ;;  %v1348_v46 = vadd.f32 %v1347_v33, %v1346_v60  ;;  %v1355_v60 = vsel %vm1313_vm1, %v1270_v29, 0.0  ;;  %v1272_v33 = vmul.f32 %v5333_v30, %v5278_v37  ;;  %7493 = vst [vmem:[#allocation73_spill] sm:$0xff] %v5424_v43  ;;  %v1274_v29 = vmul.f32 %v5350_v36, %v5288_v50 }
 0x188   :  { %v822_v54 = vpop.f32.mrf.mxu0  ;;  %v1350_v15 = vadd.f32 %v1349_v62, %v1348_v46  ;;  %v1357_v62 = vsel %vm1313_vm1, %v1271_v17, 0.0  ;;  %v5429_v46 = vpop.permute.xlu1 %1106 }
 0x189   :  { %v1353_v54 = vsel %vm1313_vm1, %v1269_v61, 0.0  ;;  %v1273_v61 = vmul.f32 %v5343_v3, %v5282_v42  ;;  %7494 = vst [vmem:[#allocation74_spill] sm:$0xff] %v5429_v46  ;;  %v5439_v17 = vpop.permute.xlu0 %1111 }
 0x18a   :  { %v5409_v6 = vpop.f32.mrf.mxu0  ;;  %v1352_v59 = vadd.f32 %v1351_v48, %v1350_v15  ;;  %v1359_v48 = vsel %vm1313_vm1, %v1272_v33, 0.0  ;;  %7495 = vst [vmem:[#allocation75_spill] sm:$0xff] %v5439_v17 }
 0x18c   :  { %v827_v34 = vpop.f32.mrf.mxu0  ;;  %v1354_v39 = vadd.f32 %v1353_v54, %v1352_v59  ;;  %v1361_v54 = vsel %vm1313_vm1, %v1273_v61, 0.0  ;;  %v5446_v33 = vpop.permute.xlu1 %1116  ;;  %v1277_v61 = vmul.f32 %v5375_v57, %v5302_v23 }
 0x18d   :  { %7496 = vst [vmem:[#allocation76_spill] sm:$0xff] %v5446_v33 }
 0x18e   :  { %v5419_v52 = vpop.f32.mrf.mxu0  ;;  %v1356_v34 = vadd.f32 %v1355_v60, %v1354_v39  ;;  %v1363_v39 = vsel %vm1313_vm1, %v1274_v29, 0.0  ;;  %v1276_v60 = vmul.f32 %v5365_v22, %v5296_v2  ;;  %v5456_v29 = vpop.permute.xlu0 %1121 }
 0x18f   :  { %7492 = vst [vmem:[#allocation72_spill] sm:$0xff] %v5419_v52  ;;  %7497 = vst [vmem:[#allocation77_spill] sm:$0xff] %v5456_v29 }
 0x190   :  { %v830_v24 = vpop.f32.mrf.mxu0  ;;  %v1358_v30 = vadd.f32 %v1357_v62, %v1356_v34 }
 0x191   :  { %v1275_v24 = vmul.f32 %v5360_v13, %v5292_v56 }
 0x192   :  { %v5431_v15 = vpop.f32.mrf.mxu0  ;;  %v1360_v59 = vadd.f32 %v1359_v48, %v1358_v30  ;;  %v1367_v30 = vsel %vm1313_vm1, %v1276_v60, 0.0  ;;  %v1278_v48 = vmul.f32 %v5382_v25, %v5312_v63  ;;  %v1280_v60 = vmul.f32 %v5397_v41, %v5335_v12 }
 0x194   :  { %v835_v0 = vpop.f32.mrf.mxu0  ;;  %v1362_v36 = vadd.f32 %v1361_v54, %v1360_v59  ;;  %v1369_v54 = vsel %vm1313_vm1, %v1277_v61, 0.0  ;;  %v5461_v59 = vpop.permute.xlu1 %1126 }
 0x195   :  { %v1365_v0 = vsel %vm1313_vm1, %v1275_v24, 0.0  ;;  %v1279_v24 = vmul.f32 %v5392_v28, %v5323_v11  ;;  %7498 = vst [vmem:[#allocation78_spill] sm:$0xff] %v5461_v59  ;;  %v5471_v61 = vpop.permute.xlu0 %1131 }
 0x196   :  { %v5441_v3 = vpop.f32.mrf.mxu0  ;;  %v1364_v34 = vadd.f32 %v1363_v39, %v1362_v36  ;;  %v1371_v39 = vsel %vm1313_vm1, %v1278_v48, 0.0  ;;  %7499 = vst [vmem:[#allocation79_spill] sm:$0xff] %v5471_v61 }
 0x198   :  { %v838_v62 = vpop.f32.mrf.mxu0  ;;  %v1366_v22 = vadd.f32 %v1365_v0, %v1364_v34  ;;  %v1373_v0 = vsel %vm1313_vm1, %v1279_v24, 0.0  ;;  %v5478_v48 = vpop.permute.xlu1 %1136  ;;  %v1283_v24 = vmul.f32 %v5424_v43, %v5367_v9 }
 0x199   :  { %7500 = vst [vmem:[#allocation80_spill] sm:$0xff] %v5478_v48 }
 0x19a   :  { %v5451_v13 = vpop.f32.mrf.mxu0  ;;  %v1368_v62 = vadd.f32 %v1367_v30, %v1366_v22  ;;  %v1375_v22 = vsel %vm1313_vm1, %v1280_v60, 0.0  ;;  %v1282_v30 = vmul.f32 %v5414_v35, %v5355_v5  ;;  %v5488_v60 = vpop.permute.xlu0 %1141 }
 0x19b   :  { %7502 = vst [vmem:[#allocation82_spill] sm:$0xff] %v5488_v60 }
 0x19c   :  { %v843_v2 = vpop.f32.mrf.mxu0  ;;  %v1370_v25 = vadd.f32 %v1369_v54, %v1368_v62 }
 0x19d   :  { %v1281_v2 = vmul.f32 %v5407_v21, %v5345_v8 }
 0x19e   :  { %v5463_v36 = vpop.f32.mrf.mxu0  ;;  %v1372_v34 = vadd.f32 %v1371_v39, %v1370_v25  ;;  %v1379_v25 = vsel %vm1313_vm1, %v1282_v30, 0.0  ;;  %v1284_v39 = vmul.f32 %v5429_v46, %v5377_v18  ;;  %v1286_v30 = vmul.f32 %v5446_v33, %v5399_v38 }
 0x1a0   :  { %v846_v57 = vpop.f32.mrf.mxu0  ;;  %v1374_v41 = vadd.f32 %v1373_v0, %v1372_v34  ;;  %v1381_v0 = vsel %vm1313_vm1, %v1283_v24, 0.0  ;;  %v5493_v34 = vpop.permute.xlu1 %1146 }
 0x1a1   :  { %v1377_v57 = vsel %vm1313_vm1, %v1281_v2, 0.0  ;;  %v1285_v2 = vmul.f32 %v5439_v17, %v5387_v45  ;;  %7503 = vst [vmem:[#allocation83_spill] sm:$0xff] %v5493_v34  ;;  %v5503_v24 = vpop.permute.xlu0 %1151 }
 0x1a2   :  { %v5473_v28 = vpop.f32.mrf.mxu0  ;;  %v1376_v62 = vadd.f32 %v1375_v22, %v1374_v41  ;;  %v1383_v22 = vsel %vm1313_vm1, %v1284_v39, 0.0  ;;  %7504 = vst [vmem:[#allocation84_spill] sm:$0xff] %v5503_v24 }
 0x1a4   :  { %v851_v54 = vpop.f32.mrf.mxu0  ;;  %v1378_v35 = vadd.f32 %v1377_v57, %v1376_v62  ;;  %v1385_v57 = vsel %vm1313_vm1, %v1285_v2, 0.0  ;;  %v5510_v39 = vpop.permute.xlu1 %1156  ;;  %v1289_v2 = vmul.f32 %v5471_v61, %v5431_v15 }
 0x1a5   :  { %7505 = vst [vmem:[#allocation85_spill] sm:$0xff] %v5510_v39 }
 0x1a6   :  { %v5483_v21 = vpop.f32.mrf.mxu0  ;;  %v1380_v54 = vadd.f32 %v1379_v25, %v1378_v35  ;;  %v1387_v35 = vsel %vm1313_vm1, %v1286_v30, 0.0  ;;  %v1288_v25 = vmul.f32 %v5461_v59, %v5419_v52  ;;  %v5520_v30 = vpop.permute.xlu0 %1161 }
 0x1a7   :  { %7501 = vst [vmem:[#allocation81_spill] sm:$0xff] %v5483_v21  ;;  %7506 = vst [vmem:[#allocation86_spill] sm:$0xff] %v5520_v30 }
 0x1a8   :  { %v854_v5 = vpop.f32.mrf.mxu0  ;;  %v1382_v46 = vadd.f32 %v1381_v0, %v1380_v54 }
 0x1a9   :  { %v1287_v5 = vmul.f32 %v5456_v29, %v5409_v6 }
 0x1aa   :  { %v5495_v41 = vpop.f32.mrf.mxu0  ;;  %v1384_v62 = vadd.f32 %v1383_v22, %v1382_v46  ;;  %v1391_v46 = vsel %vm1313_vm1, %v1288_v25, 0.0  ;;  %v1290_v22 = vmul.f32 %v5478_v48, %v5441_v3  ;;  %v1292_v25 = vmul.f32 %v5493_v34, %v5463_v36 }
 0x1ac   :  { %v859_v43 = vpop.f32.mrf.mxu0  ;;  %v1386_v33 = vadd.f32 %v1385_v57, %v1384_v62  ;;  %v1393_v57 = vsel %vm1313_vm1, %v1289_v2, 0.0  ;;  %v5525_v62 = vpop.permute.xlu1 %1166 }
 0x1ad   :  { %v1389_v43 = vsel %vm1313_vm1, %v1287_v5, 0.0  ;;  %v1291_v5 = vmul.f32 %v5488_v60, %v5451_v13  ;;  %7507 = vst [vmem:[#allocation87_spill] sm:$0xff] %v5525_v62  ;;  %v5535_v2 = vpop.permute.xlu0 %1171 }
 0x1ae   :  { %v5505_v17 = vpop.f32.mrf.mxu0  ;;  %v1388_v54 = vadd.f32 %v1387_v35, %v1386_v33  ;;  %v1395_v35 = vsel %vm1313_vm1, %v1290_v22, 0.0  ;;  %7508 = vst [vmem:[#allocation88_spill] sm:$0xff] %v5535_v2 }
 0x1b0   :  { %v862_v0 = vpop.f32.mrf.mxu0  ;;  %v1390_v59 = vadd.f32 %v1389_v43, %v1388_v54  ;;  %v1397_v43 = vsel %vm1313_vm1, %v1291_v5, 0.0  ;;  %v5542_v22 = vpop.permute.xlu1 %1176  ;;  %v1295_v5 = vmul.f32 %v5520_v30, %v5495_v41 }
 0x1b1   :  { %7509 = vst [vmem:[#allocation89_spill] sm:$0xff] %v5542_v22 }
 0x1b2   :  { %v5515_v29 = vpop.f32.mrf.mxu0  ;;  %v1392_v0 = vadd.f32 %v1391_v46, %v1390_v59  ;;  %v1399_v59 = vsel %vm1313_vm1, %v1292_v25, 0.0  ;;  %v1294_v46 = vmul.f32 %v5510_v39, %v5483_v21  ;;  %v5552_v25 = vpop.permute.xlu0 %1181 }
 0x1b3   :  { %7511 = vst [vmem:[#allocation91_spill] sm:$0xff] %v5552_v25 }
 0x1b4   :  { %v867_v52 = vpop.f32.mrf.mxu0  ;;  %v1394_v48 = vadd.f32 %v1393_v57, %v1392_v0 }
 0x1b5   :  { %v1293_v52 = vmul.f32 %v5503_v24, %v5473_v28 }
 0x1b6   :  { %v5527_v33 = vpop.f32.mrf.mxu0  ;;  %v1396_v54 = vadd.f32 %v1395_v35, %v1394_v48  ;;  %v1403_v48 = vsel %vm1313_vm1, %v1294_v46, 0.0  ;;  %v1296_v35 = vmul.f32 %v5525_v62, %v5505_v17 }
 0x1b7   :  { %v1298_v46 = vmul.f32 %v5542_v22, %v5527_v33 }
 0x1b8   :  { %v870_v61 = vpop.f32.mrf.mxu0  ;;  %v1398_v34 = vadd.f32 %v1397_v43, %v1396_v54  ;;  %v1405_v43 = vsel %vm1313_vm1, %v1295_v5, 0.0  ;;  %v5557_v54 = vpop.permute.xlu1 %1186 }
 0x1b9   :  { %v1401_v61 = vsel %vm1313_vm1, %v1293_v52, 0.0  ;;  %v1297_v52 = vmul.f32 %v5535_v2, %v5515_v29  ;;  %7512 = vst [vmem:[#allocation92_spill] sm:$0xff] %v5557_v54  ;;  %v5567_v5 = vpop.permute.xlu0 %1191 }
 0x1ba   :  { %v5537_v60 = vpop.f32.mrf.mxu0  ;;  %v1400_v0 = vadd.f32 %v1399_v59, %v1398_v34  ;;  %v1407_v59 = vsel %vm1313_vm1, %v1296_v35, 0.0  ;;  %7513 = vst [vmem:[#allocation93_spill] sm:$0xff] %v5567_v5 }
 0x1bc   :  { %v875_v57 = vpop.f32.mrf.mxu0  ;;  %v1402_v39 = vadd.f32 %v1401_v61, %v1400_v0  ;;  %v1409_v61 = vsel %vm1313_vm1, %v1297_v52, 0.0  ;;  %v5574_v35 = vpop.permute.xlu1 %1196 }
 0x1bd   :  { %7514 = vst [vmem:[#allocation94_spill] sm:$0xff] %v5574_v35 }
 0x1be   :  { %v5547_v24 = vpop.f32.mrf.mxu0  ;;  %v1404_v57 = vadd.f32 %v1403_v48, %v1402_v39  ;;  %v1411_v39 = vsel %vm1313_vm1, %v1298_v46, 0.0  ;;  %v5584_v46 = vpop.permute.xlu0 %1201 }
 0x1bf   :  { %7510 = vst [vmem:[#allocation90_spill] sm:$0xff] %v5547_v24  ;;  %v1300_v48 = vmul.f32 %v5557_v54, %v5547_v24  ;;  %7516 = vst [vmem:[#allocation96_spill] sm:$0xff] %v5584_v46 }
 0x1c0   :  { %v878_v21 = vpop.f32.mrf.mxu0  ;;  %v1406_v62 = vadd.f32 %v1405_v43, %v1404_v57 }
 0x1c1   :  { %v1299_v21 = vmul.f32 %v5552_v25, %v5537_v60 }
 0x1c2   :  { %v5559_v34 = vpop.f32.mrf.mxu0  ;;  %v1408_v0 = vadd.f32 %v1407_v59, %v1406_v62  ;;  %v1415_v62 = vsel %vm1313_vm1, %v1300_v48, 0.0 }
 0x1c3   :  { %v1301_v52 = vmul.f32 %v5567_v5, %v5559_v34 }
 0x1c4   :  { %v883_v30 = vpop.f32.mrf.mxu0  ;;  %v1410_v22 = vadd.f32 %v1409_v61, %v1408_v0  ;;  %v5589_v0 = vpop.permute.xlu1 %1206 }
 0x1c5   :  { %v1413_v30 = vsel %vm1313_vm1, %v1299_v21, 0.0  ;;  %v1417_v61 = vsel %vm1313_vm1, %v1301_v52, 0.0  ;;  %7517 = vst [vmem:[#allocation97_spill] sm:$0xff] %v5589_v0 }
 0x1c6   :  { %v5569_v2 = vpop.f32.mrf.mxu0  ;;  %v1412_v57 = vadd.f32 %v1411_v39, %v1410_v22 }
 0x1c7   :  { %v1302_v59 = vmul.f32 %v5574_v35, %v5569_v2 }
 0x1c8   :  { %v886_v43 = vpop.f32.mrf.mxu0  ;;  %v1414_v54 = vadd.f32 %v1413_v30, %v1412_v57  ;;  %v5598_v57 = vpop.permute.xlu0 %1211 }
 0x1c9   :  { %v1419_v39 = vsel %vm1313_vm1, %v1302_v59, 0.0  ;;  %7518 = vst [vmem:[#allocation98_spill] sm:$0xff] %v5598_v57 }
 0x1ca   :  { %v5579_v25 = vpop.f32.mrf.mxu0  ;;  %v1416_v43 = vadd.f32 %v1415_v62, %v1414_v54  ;;  %v1305_v54 = vmul.f32 %v5598_v57, %v5175_v10 }
 0x1cb   :  { %7515 = vst [vmem:[#allocation95_spill] sm:$0xff] %v5579_v25  ;;  %v1303_v21 = vmul.f32 %v5584_v46, %v5579_v25  ;;  %v5602_v25 = vpop.permute.xlu1 %1216 }
 0x1cc   :  { %v891_v24 = vpop.f32.mrf.mxu0  ;;  %v1418_v35 = vadd.f32 %v1417_v61, %v1416_v43  ;;  %7519 = vst [vmem:[#allocation99_spill] sm:$0xff] %v5602_v25  ;;  %v1425_v59 = vsel %vm1313_vm1, %v1305_v54, 0.0  ;;  %v1306_v61 = vmul.f32 %v5602_v25, %v5185_v16  ;;  %v5607_v43 = vpop.permute.xlu0 %1221 }
 0x1cd   :  { %v1421_v30 = vsel %vm1313_vm1, %v1303_v21, 0.0  ;;  %7520 = vst [vmem:[#allocation100_spill] sm:$0xff] %v5607_v43  ;;  %v1307_v21 = vmul.f32 %v5607_v43, %v5190_v20 }
 0x1ce   :  { %v5591_v22 = vpop.f32.mrf.mxu0  ;;  %v1420_v24 = vadd.f32 %v1419_v39, %v1418_v35  ;;  %v1427_v35 = vsel %vm1313_vm1, %v1306_v61, 0.0 }
 0x1cf   :  { %v1304_v48 = vmul.f32 %v5589_v0, %v5591_v22 }
 0x1d0   :  { %v894_v5 = vpop.f32.mrf.mxu0  ;;  %v1422_v46 = vadd.f32 %v1421_v30, %v1420_v24 }
 0x1d1   :  { %v1423_v52 = vsel %vm1313_vm1, %v1304_v48, 0.0  ;;  %v5612_v48 = vpop.permute.xlu1 %1226 }
 0x1d2   :  { %v1424_v62 = vadd.f32 %v1423_v52, %v1422_v46  ;;  %7521 = vst [vmem:[#allocation101_spill] sm:$0xff] %v5612_v48  ;;  %v1429_v46 = vsel %vm1313_vm1, %v1307_v21, 0.0  ;;  %v1308_v30 = vmul.f32 %v5612_v48, %v5200_v26  ;;  %v5617_v52 = vpop.permute.xlu0 %1231 }
 0x1d3   :  { %7522 = vst [vmem:[#allocation102_spill] sm:$0xff] %v5617_v52 }
 0x1d4   :  { %v1426_v5 = vadd.f32 %v1425_v59, %v1424_v62  ;;  %v1431_v54 = vsel %vm1313_vm1, %v1308_v30, 0.0  ;;  %v7523_v62 = vld [vmem:[#allocation13_spill] sm:$0xff] }
 0x1d5   :  { %v1309_v59 = vmul.f32 %v5617_v52, %v7523_v62  ;;  %v5622_v25 = vpop.permute.xlu1 %1236 }
 0x1d6   :  { %v1428_v39 = vadd.f32 %v1427_v35, %v1426_v5  ;;  %7524 = vst [vmem:[#allocation103_spill] sm:$0xff] %v5622_v25  ;;  %v7525_v35 = vld [vmem:[#allocation15_spill] sm:$0xff]  ;;  %v5627_v21 = vpop.permute.xlu0 %1241 }
 0x1d7   :  { %v1433_v5 = vsel %vm1313_vm1, %v1309_v59, 0.0  ;;  %v1310_v43 = vmul.f32 %v5622_v25, %v7525_v35  ;;  %7526 = vst [vmem:[#allocation104_spill] sm:$0xff] %v5627_v21 }
 0x1d8   :  { %v1430_v24 = vadd.f32 %v1429_v46, %v1428_v39  ;;  %v7527_v46 = vld [vmem:[#allocation17_spill] sm:$0xff] }
 0x1d9   :  { %v1435_v39 = vsel %vm1313_vm1, %v1310_v43, 0.0  ;;  %v1311_v48 = vmul.f32 %v5627_v21, %v7527_v46  ;;  %v5632_v30 = vpop.permute.xlu1 %1246  ;;  %v7530_v21 = vld [vmem:[#allocation4_spill] sm:$0xff] }
 0x1da   :  { %v1432_v61 = vadd.f32 %v1431_v54, %v1430_v24  ;;  %7528 = vst [vmem:[#allocation105_spill] sm:$0xff] %v5632_v30  ;;  %v7529_v54 = vld [vmem:[#allocation19_spill] sm:$0xff] }
 0x1db   :  { %v1437_v24 = vsel %vm1313_vm1, %v1311_v48, 0.0  ;;  %v1312_v52 = vmul.f32 %v5632_v30, %v7529_v54  ;;  %v7531_v48 = vld [vmem:[#allocation6_spill] sm:$0xff]  ;;  %v7532_v30 = vld [vmem:[#allocation8_spill] sm:$0xff] }
 0x1dc   :  { %v1434_v57 = vadd.f32 %v1433_v5, %v1432_v61 }
 0x1dd   :  { %v1439_v62 = vsel %vm1313_vm1, %v1312_v52, 0.0  ;;  %v7533_v52 = vld [vmem:[#allocation10_spill] sm:$0xff] }
 0x1de   :  { %v1436_v26 = vadd.f32 %v1435_v39, %v1434_v57 }
 0x1e0   :  { %v1438_v59 = vadd.f32 %v1437_v24, %v1436_v26  ;;  %v7534_v24 = vld [vmem:[#allocation26_spill] sm:$0xff] }
 0x1e2   :  { %v1440_v25 = vadd.f32 %v1439_v62, %v1438_v59  ;;  %v7536_v59 = vld [vmem:[#allocation28_spill] sm:$0xff] }
 0x1e4   :  { %v1441_v35 = vrot.slane %v1440_v25, 4 }
 0x1e6   :  { %v1442_v20 = vadd.f32 %v1441_v35, %v1440_v25  ;;  %v7535_v35 = vld [vmem:[#allocation30_spill] sm:$0xff] }
 0x1e8   :  { %v1443_v61 = vrot.slane %v1442_v20, 2 }
 0x1ea   :  { %v1444_v5 = vadd.f32 %v1443_v61, %v1442_v20 }
 0x1ec   :  { %v1445_v43 = vrot.slane %v1444_v5, 1 }
 0x1ee   :  { %v1446_v0 = vadd.f32 %v1445_v43, %v1444_v5  ;;  %v7537_v43 = vld [vmem:[#allocation31_spill] sm:$0xff] }
 0x1f0   :  { %v5638_v16 = vmul.f32 0.0078125, %v1446_v0 }
 0x1f2   :  { %v1448_v57 = vsub.f32 %v7530_v21, %v5638_v16  ;;  %v1449_v39 = vsub.f32 %v7531_v48, %v5638_v16  ;;  %v1450_v26 = vsub.f32 %v7532_v30, %v5638_v16  ;;  %v1451_v62 = vsub.f32 %v7533_v52, %v5638_v16  ;;  %v7538_v30 = vld [vmem:[#allocation16_spill] sm:$0xff]  ;;  %v7539_v52 = vld [vmem:[#allocation33_spill] sm:$0xff] }
 0x1f3   :  { %v1452_v0 = vsub.f32 %v5202_v27, %v5638_v16  ;;  %v1453_v5 = vsub.f32 %v5207_v31, %v5638_v16  ;;  %v1454_v46 = vsub.f32 %v7538_v30, %v5638_v16 }
 0x1f4   :  { %v1512_v25 = vmul.f32 %v1448_v57, %v7534_v24  ;;  %v1513_v20 = vmul.f32 %v1449_v39, %v7535_v35  ;;  %v1514_v61 = vmul.f32 %v1450_v26, %v7536_v59  ;;  %v1515_v48 = vmul.f32 %v1451_v62, %v7537_v43  ;;  %v7540_v24 = vld [vmem:[#allocation35_spill] sm:$0xff] }
 0x1f5   :  { %v1516_v10 = vmul.f32 %v1452_v0, %v7539_v52  ;;  %v1455_v39 = vsub.f32 %v5218_v40, %v5638_v16  ;;  %v1517_v35 = vmul.f32 %v1453_v5, %v7540_v24  ;;  %v1456_v62 = vsub.f32 %v5222_v44, %v5638_v16  ;;  %v7542_v40 = vld [vmem:[#allocation38_spill] sm:$0xff] }
 0x1f6   :  { %v1576_v21 = vmul.f32 %v1512_v25, %v1512_v25  ;;  %v1577_v54 = vmul.f32 %v1513_v20, %v1513_v20  ;;  %v1578_v57 = vmul.f32 %v1514_v61, %v1514_v61  ;;  %v1579_v27 = vmul.f32 %v1515_v48, %v1515_v48  ;;  %v7541_v25 = vld [vmem:[#allocation37_spill] sm:$0xff] }
 0x1f7   :  { %v1518_v20 = vmul.f32 %v1454_v46, %v7541_v25  ;;  %v1580_v43 = vmul.f32 %v1516_v10, %v1516_v10  ;;  %v1457_v61 = vsub.f32 %v5224_v47, %v5638_v16  ;;  %v1519_v5 = vmul.f32 %v1455_v39, %v7542_v40 }
 0x1f8   :  { %v1640_v26 = vsel %vm1313_vm1, %v1576_v21, 0.0  ;;  %v1641_v59 = vsel %vm1313_vm1, %v1577_v54, 0.0  ;;  %v1643_v52 = vsel %vm1313_vm1, %v1578_v57, 0.0  ;;  %v1581_v48 = vmul.f32 %v1517_v35, %v1517_v35  ;;  %v7544_v57 = vld [vmem:[#allocation42_spill] sm:$0xff]  ;;  %v7545_v35 = vld [vmem:[#allocation44_spill] sm:$0xff] }
 0x1f9   :  { %v1642_v31 = vadd.f32 %v1641_v59, %v1640_v26  ;;  %v1645_v21 = vsel %vm1313_vm1, %v1579_v27, 0.0  ;;  %v1458_v54 = vsub.f32 %v5226_v49, %v5638_v16  ;;  %v7543_v26 = vld [vmem:[#allocation40_spill] sm:$0xff]  ;;  %v1582_v44 = vmul.f32 %v1518_v20, %v1518_v20 }
 0x1fa   :  { %v1520_v59 = vmul.f32 %v1456_v62, %v7543_v26  ;;  %v1647_v10 = vsel %vm1313_vm1, %v1580_v43, 0.0  ;;  %v1521_v25 = vmul.f32 %v1457_v61, %v7544_v57  ;;  %v1649_v40 = vsel %vm1313_vm1, %v1581_v48, 0.0 }
 0x1fb   :  { %v1644_v0 = vadd.f32 %v1643_v52, %v1642_v31  ;;  %v1459_v31 = vsub.f32 %v5228_v51, %v5638_v16  ;;  %v1583_v52 = vmul.f32 %v1519_v5, %v1519_v5  ;;  %v1460_v27 = vsub.f32 %v5230_v53, %v5638_v16 }
 0x1fc   :  { %v1651_v62 = vsel %vm1313_vm1, %v1582_v44, 0.0  ;;  %v1461_v43 = vsub.f32 %v5232_v55, %v5638_v16  ;;  %v1462_v48 = vsub.f32 %v5236_v58, %v5638_v16  ;;  %v7548_v44 = vld [vmem:[#allocation29_spill] sm:$0xff] }
 0x1fd   :  { %v1646_v24 = vadd.f32 %v1645_v21, %v1644_v0  ;;  %v1522_v0 = vmul.f32 %v1458_v54, %v7545_v35  ;;  %v1584_v21 = vmul.f32 %v1520_v59, %v1520_v59  ;;  %v1653_v61 = vsel %vm1313_vm1, %v1583_v52, 0.0  ;;  %v7549_v35 = vld [vmem:[#allocation49_spill] sm:$0xff] }
 0x1fe   :  { %v1464_v52 = vsub.f32 %v5246_v1, %v5638_v16 }
 0x1ff   :  { %v1648_v46 = vadd.f32 %v1647_v10, %v1646_v24  ;;  %v7546_v24 = vld [vmem:[#allocation45_spill] sm:$0xff]  ;;  %v1585_v10 = vmul.f32 %v1521_v25, %v1521_v25  ;;  %v1655_v54 = vsel %vm1313_vm1, %v1584_v21, 0.0  ;;  %v1465_v21 = vsub.f32 %v5250_v4, %v5638_v16 }
 0x200   :  { %v1523_v26 = vmul.f32 %v1459_v31, %v7546_v24 }
 0x201   :  { %v1650_v39 = vadd.f32 %v1649_v40, %v1648_v46  ;;  %v7547_v46 = vld [vmem:[#allocation47_spill] sm:$0xff]  ;;  %v1586_v40 = vmul.f32 %v1522_v0, %v1522_v0  ;;  %v1657_v31 = vsel %vm1313_vm1, %v1585_v10, 0.0  ;;  %v1466_v10 = vsub.f32 %v5254_v7, %v5638_v16 }
 0x202   :  { %v1524_v57 = vmul.f32 %v1460_v27, %v7547_v46  ;;  %v1587_v53 = vmul.f32 %v1523_v26, %v1523_v26 }
 0x203   :  { %v1652_v20 = vadd.f32 %v1651_v62, %v1650_v39  ;;  %v1463_v39 = vsub.f32 %v7548_v44, %v5638_v16  ;;  %v1525_v62 = vmul.f32 %v1461_v43, %v7549_v35  ;;  %v1659_v27 = vsel %vm1313_vm1, %v1586_v40, 0.0 }
 0x204   :  { %v1661_v43 = vsel %vm1313_vm1, %v1587_v53, 0.0  ;;  %v1467_v40 = vsub.f32 %v5260_v14, %v5638_v16  ;;  %v1468_v53 = vsub.f32 %v5264_v19, %v5638_v16 }
 0x205   :  { %v1654_v5 = vadd.f32 %v1653_v61, %v1652_v20  ;;  %v7550_v20 = vld [vmem:[#allocation50_spill] sm:$0xff]  ;;  %v1588_v61 = vmul.f32 %v1524_v57, %v1524_v57 }
 0x206   :  { %v1526_v24 = vmul.f32 %v1462_v48, %v7550_v20 }
 0x207   :  { %v1656_v59 = vadd.f32 %v1655_v54, %v1654_v5  ;;  %v7551_v5 = vld [vmem:[#allocation51_spill] sm:$0xff]  ;;  %v1589_v54 = vmul.f32 %v1525_v62, %v1525_v62  ;;  %v1663_v48 = vsel %vm1313_vm1, %v1588_v61, 0.0 }
 0x208   :  { %v1527_v46 = vmul.f32 %v1463_v39, %v7551_v5  ;;  %v7555_v61 = vld [vmem:[#allocation43_spill] sm:$0xff] }
 0x209   :  { %v1658_v25 = vadd.f32 %v1657_v31, %v1656_v59  ;;  %v7552_v59 = vld [vmem:[#allocation52_spill] sm:$0xff]  ;;  %v1590_v31 = vmul.f32 %v1526_v24, %v1526_v24  ;;  %v1665_v39 = vsel %vm1313_vm1, %v1589_v54, 0.0  ;;  %v1470_v54 = vsub.f32 %v5274_v32, %v5638_v16 }
 0x20a   :  { %v1528_v35 = vmul.f32 %v1464_v52, %v7552_v59  ;;  %v7556_v59 = vld [vmem:[#allocation56_spill] sm:$0xff] }
 0x20b   :  { %v1660_v0 = vadd.f32 %v1659_v27, %v1658_v25  ;;  %v7553_v25 = vld [vmem:[#allocation53_spill] sm:$0xff]  ;;  %v1591_v27 = vmul.f32 %v1527_v46, %v1527_v46  ;;  %v1667_v52 = vsel %vm1313_vm1, %v1590_v31, 0.0  ;;  %v1471_v31 = vsub.f32 %v5278_v37, %v5638_v16 }
 0x20c   :  { %v1529_v20 = vmul.f32 %v1465_v21, %v7553_v25 }
 0x20d   :  { %v1662_v26 = vadd.f32 %v1661_v43, %v1660_v0  ;;  %v7554_v0 = vld [vmem:[#allocation55_spill] sm:$0xff]  ;;  %v1592_v43 = vmul.f32 %v1528_v35, %v1528_v35  ;;  %v1669_v21 = vsel %vm1313_vm1, %v1591_v27, 0.0  ;;  %v1472_v27 = vsub.f32 %v5282_v42, %v5638_v16 }
 0x20e   :  { %v1530_v5 = vmul.f32 %v1466_v10, %v7554_v0  ;;  %v1593_v49 = vmul.f32 %v1529_v20, %v1529_v20 }
 0x20f   :  { %v1664_v57 = vadd.f32 %v1663_v48, %v1662_v26  ;;  %v1469_v26 = vsub.f32 %v7555_v61, %v5638_v16  ;;  %v1531_v48 = vmul.f32 %v1467_v40, %v7556_v59  ;;  %v1671_v10 = vsel %vm1313_vm1, %v1592_v43, 0.0 }
 0x210   :  { %v1673_v40 = vsel %vm1313_vm1, %v1593_v49, 0.0  ;;  %v1473_v43 = vsub.f32 %v5288_v50, %v5638_v16  ;;  %v1474_v49 = vsub.f32 %v5292_v56, %v5638_v16 }
 0x211   :  { %v1666_v62 = vadd.f32 %v1665_v39, %v1664_v57  ;;  %v7557_v57 = vld [vmem:[#allocation57_spill] sm:$0xff]  ;;  %v1594_v39 = vmul.f32 %v1530_v5, %v1530_v5 }
 0x212   :  { %v1532_v25 = vmul.f32 %v1468_v53, %v7557_v57 }
 0x213   :  { %v1668_v24 = vadd.f32 %v1667_v52, %v1666_v62  ;;  %v7558_v62 = vld [vmem:[#allocation58_spill] sm:$0xff]  ;;  %v1595_v52 = vmul.f32 %v1531_v48, %v1531_v48  ;;  %v1675_v53 = vsel %vm1313_vm1, %v1594_v39, 0.0 }
 0x214   :  { %v1533_v0 = vmul.f32 %v1469_v26, %v7558_v62  ;;  %v7562_v39 = vld [vmem:[#allocation54_spill] sm:$0xff] }
 0x215   :  { %v1670_v46 = vadd.f32 %v1669_v21, %v1668_v24  ;;  %v7559_v24 = vld [vmem:[#allocation59_spill] sm:$0xff]  ;;  %v1596_v21 = vmul.f32 %v1532_v25, %v1532_v25  ;;  %v1677_v26 = vsel %vm1313_vm1, %v1595_v52, 0.0  ;;  %v1476_v52 = vsub.f32 %v5302_v23, %v5638_v16 }
 0x216   :  { %v1534_v59 = vmul.f32 %v1470_v54, %v7559_v24  ;;  %v7563_v24 = vld [vmem:[#allocation62_spill] sm:$0xff] }
 0x217   :  { %v1672_v35 = vadd.f32 %v1671_v10, %v1670_v46  ;;  %v7560_v46 = vld [vmem:[#allocation60_spill] sm:$0xff]  ;;  %v1597_v10 = vmul.f32 %v1533_v0, %v1533_v0  ;;  %v1679_v54 = vsel %vm1313_vm1, %v1596_v21, 0.0  ;;  %v1477_v21 = vsub.f32 %v5312_v63, %v5638_v16 }
 0x218   :  { %v1535_v57 = vmul.f32 %v1471_v31, %v7560_v46 }
 0x219   :  { %v1674_v20 = vadd.f32 %v1673_v40, %v1672_v35  ;;  %v7561_v35 = vld [vmem:[#allocation61_spill] sm:$0xff]  ;;  %v1598_v40 = vmul.f32 %v1534_v59, %v1534_v59  ;;  %v1681_v31 = vsel %vm1313_vm1, %v1597_v10, 0.0  ;;  %v1478_v10 = vsub.f32 %v5323_v11, %v5638_v16 }
 0x21a   :  { %v1536_v62 = vmul.f32 %v1472_v27, %v7561_v35  ;;  %v1599_v32 = vmul.f32 %v1535_v57, %v1535_v57 }
 0x21b   :  { %v1676_v5 = vadd.f32 %v1675_v53, %v1674_v20  ;;  %v1475_v20 = vsub.f32 %v7562_v39, %v5638_v16  ;;  %v1537_v53 = vmul.f32 %v1473_v43, %v7563_v24  ;;  %v1683_v27 = vsel %vm1313_vm1, %v1598_v40, 0.0 }
 0x21c   :  { %v1685_v43 = vsel %vm1313_vm1, %v1599_v32, 0.0  ;;  %v1479_v40 = vsub.f32 %v5335_v12, %v5638_v16  ;;  %v1480_v32 = vsub.f32 %v5345_v8, %v5638_v16 }
 0x21d   :  { %v1678_v48 = vadd.f32 %v1677_v26, %v1676_v5  ;;  %v7564_v5 = vld [vmem:[#allocation64_spill] sm:$0xff]  ;;  %v1600_v26 = vmul.f32 %v1536_v62, %v1536_v62 }
 0x21e   :  { %v1538_v46 = vmul.f32 %v1474_v49, %v7564_v5 }
 0x21f   :  { %v1680_v25 = vadd.f32 %v1679_v54, %v1678_v48  ;;  %v7565_v48 = vld [vmem:[#allocation65_spill] sm:$0xff]  ;;  %v1601_v54 = vmul.f32 %v1537_v53, %v1537_v53  ;;  %v1687_v49 = vsel %vm1313_vm1, %v1600_v26, 0.0  ;;  %v7569_v26 = vld [vmem:[#allocation63_spill] sm:$0xff] }
 0x220   :  { %v1539_v35 = vmul.f32 %v1475_v20, %v7565_v48 }
 0x221   :  { %v1682_v0 = vadd.f32 %v1681_v31, %v1680_v25  ;;  %v7566_v25 = vld [vmem:[#allocation66_spill] sm:$0xff]  ;;  %v1602_v31 = vmul.f32 %v1538_v46, %v1538_v46  ;;  %v1689_v20 = vsel %vm1313_vm1, %v1601_v54, 0.0  ;;  %v1482_v54 = vsub.f32 %v5367_v9, %v5638_v16 }
 0x222   :  { %v1540_v24 = vmul.f32 %v1476_v52, %v7566_v25  ;;  %v7570_v25 = vld [vmem:[#allocation69_spill] sm:$0xff] }
 0x223   :  { %v1684_v59 = vadd.f32 %v1683_v27, %v1682_v0  ;;  %v7567_v0 = vld [vmem:[#allocation67_spill] sm:$0xff]  ;;  %v1603_v27 = vmul.f32 %v1539_v35, %v1539_v35  ;;  %v1691_v52 = vsel %vm1313_vm1, %v1602_v31, 0.0  ;;  %v1483_v31 = vsub.f32 %v5377_v18, %v5638_v16 }
 0x224   :  { %v1541_v5 = vmul.f32 %v1477_v21, %v7567_v0 }
 0x225   :  { %v1686_v57 = vadd.f32 %v1685_v43, %v1684_v59  ;;  %v7568_v59 = vld [vmem:[#allocation68_spill] sm:$0xff]  ;;  %v1604_v43 = vmul.f32 %v1540_v24, %v1540_v24  ;;  %v1693_v21 = vsel %vm1313_vm1, %v1603_v27, 0.0  ;;  %v1484_v27 = vsub.f32 %v5387_v45, %v5638_v16 }
 0x226   :  { %v1542_v48 = vmul.f32 %v1478_v10, %v7568_v59  ;;  %v1605_v19 = vmul.f32 %v1541_v5, %v1541_v5 }
 0x227   :  { %v1688_v62 = vadd.f32 %v1687_v49, %v1686_v57  ;;  %v1481_v57 = vsub.f32 %v7569_v26, %v5638_v16  ;;  %v1543_v49 = vmul.f32 %v1479_v40, %v7570_v25  ;;  %v1695_v10 = vsel %vm1313_vm1, %v1604_v43, 0.0 }
 0x228   :  { %v1697_v40 = vsel %vm1313_vm1, %v1605_v19, 0.0  ;;  %v1485_v43 = vsub.f32 %v5399_v38, %v5638_v16  ;;  %v1486_v19 = vsub.f32 %v5409_v6, %v5638_v16 }
 0x229   :  { %v1690_v53 = vadd.f32 %v1689_v20, %v1688_v62  ;;  %v7571_v62 = vld [vmem:[#allocation70_spill] sm:$0xff]  ;;  %v1606_v20 = vmul.f32 %v1542_v48, %v1542_v48 }
 0x22a   :  { %v1544_v0 = vmul.f32 %v1480_v32, %v7571_v62 }
 0x22b   :  { %v1692_v46 = vadd.f32 %v1691_v52, %v1690_v53  ;;  %v7572_v53 = vld [vmem:[#allocation71_spill] sm:$0xff]  ;;  %v1607_v52 = vmul.f32 %v1543_v49, %v1543_v49  ;;  %v1699_v32 = vsel %vm1313_vm1, %v1606_v20, 0.0  ;;  %v4663_v20 = vmov 0.0  }
 0x22c   :  { %v1545_v59 = vmul.f32 %v1481_v57, %v7572_v53  ;;  %2011 = vrot.lane.b32.xlu0 %v4663_v20, %s4664_s0  ;;  %1982 = vst.msk [vmem:[#allocation2] sm:$0xff] %vm1313_vm1, %v4663_v20  ;;  %1983 = vst.msk [vmem:[#allocation2 + $0x20] sm:$0xff] %vm1313_vm1, %v4663_v20  ;;  %2079 = vrot.lane.b32.xlu1 %v4663_v20, %s4665_s11 }
 0x22d   :  { %v1694_v35 = vadd.f32 %v1693_v21, %v1692_v46  ;;  %v7573_v46 = vld [vmem:[#allocation73_spill] sm:$0xff]  ;;  %v1608_v21 = vmul.f32 %v1544_v0, %v1544_v0  ;;  %v1701_v57 = vsel %vm1313_vm1, %v1607_v52, 0.0  ;;  %1984 = vst.msk [vmem:[#allocation2 + $0x40] sm:$0xff] %vm1313_vm1, %v4663_v20  ;;  %1985 = vst.msk [vmem:[#allocation2 + $0x60] sm:$0xff] %vm1313_vm1, %v4663_v20  ;;  %v7577_v52 = vld [vmem:[#allocation76_spill] sm:$0xff] }
 0x22e   :  { %v1546_v25 = vmul.f32 %v1482_v54, %v7573_v46  ;;  %1986 = vst.msk [vmem:[#allocation2 + $0x80] sm:$0xff] %vm1313_vm1, %v4663_v20  ;;  %1990 = vst.msk [vmem:[#allocation2 + $0x100] sm:$0xff] %vm1313_vm1, %v4663_v20 }
 0x22f   :  { %v1696_v24 = vadd.f32 %v1695_v10, %v1694_v35  ;;  %v7574_v35 = vld [vmem:[#allocation74_spill] sm:$0xff]  ;;  %v1609_v10 = vmul.f32 %v1545_v59, %v1545_v59  ;;  %v1703_v54 = vsel %vm1313_vm1, %v1608_v21, 0.0  ;;  %1994 = vst.msk [vmem:[#allocation2 + $0x180] sm:$0xff] %vm1313_vm1, %v4663_v20  ;;  %2182 = vst.msk [vmem:[#allocation2 + $0x8] sm:$0xff] %vm1313_vm1, %v4663_v20  ;;  %v1488_v21 = vsub.f32 %v5431_v15, %v5638_v16 }
 0x230   :  { %v1547_v62 = vmul.f32 %v1483_v31, %v7574_v35  ;;  %2186 = vst.msk [vmem:[#allocation2 + $0x88] sm:$0xff] %vm1313_vm1, %v4663_v20  ;;  %2190 = vst.msk [vmem:[#allocation2 + $0x108] sm:$0xff] %vm1313_vm1, %v4663_v20  ;;  %v7576_v31 = vld [vmem:[#allocation72_spill] sm:$0xff]  ;;  %2135 = vrot.lane.b32.xlu0 %v4663_v20, %s4666_s12 }
 0x231   :  { %v1698_v5 = vadd.f32 %v1697_v40, %v1696_v24  ;;  %v7575_v24 = vld [vmem:[#allocation75_spill] sm:$0xff]  ;;  %v1610_v40 = vmul.f32 %v1546_v25, %v1546_v25  ;;  %2194 = vst.msk [vmem:[#allocation2 + $0x188] sm:$0xff] %vm1313_vm1, %v4663_v20  ;;  %2410 = vst.msk [vmem:[#allocation2 + $0x10] sm:$0xff] %vm1313_vm1, %v4663_v20  ;;  %v1487_v59 = vsub.f32 %v7576_v31, %v5638_v16  ;;  %v1705_v46 = vsel %vm1313_vm1, %v1609_v10, 0.0 }
 0x232   :  { %v1548_v53 = vmul.f32 %v1484_v27, %v7575_v24  ;;  %2414 = vst.msk [vmem:[#allocation2 + $0x90] sm:$0xff] %vm1313_vm1, %v4663_v20  ;;  %2418 = vst.msk [vmem:[#allocation2 + $0x110] sm:$0xff] %vm1313_vm1, %v4663_v20  ;;  %v1611_v27 = vmul.f32 %v1547_v62, %v1547_v62  ;;  %v7579_v62 = vld [vmem:[#allocation78_spill] sm:$0xff] }
 0x233   :  { %v1700_v48 = vadd.f32 %v1699_v32, %v1698_v5  ;;  %2422 = vst.msk [vmem:[#allocation2 + $0x190] sm:$0xff] %vm1313_vm1, %v4663_v20  ;;  %2515 = vst.msk [vmem:[#allocation2 + $0x18] sm:$0xff] %vm1313_vm1, %v4663_v20  ;;  %v1549_v5 = vmul.f32 %v1485_v43, %v7577_v52  ;;  %v7578_v32 = vld [vmem:[#allocation77_spill] sm:$0xff]  ;;  %v1489_v43 = vsub.f32 %v5441_v3, %v5638_v16 }
 0x234   :  { %2519 = vst.msk [vmem:[#allocation2 + $0x98] sm:$0xff] %vm1313_vm1, %v4663_v20  ;;  %2523 = vst.msk [vmem:[#allocation2 + $0x118] sm:$0xff] %vm1313_vm1, %v4663_v20  ;;  %v1612_v35 = vmul.f32 %v1548_v53, %v1548_v53  ;;  %v1551_v10 = vmul.f32 %v1487_v59, %v7579_v62  ;;  %v7580_v53 = vld [vmem:[#allocation79_spill] sm:$0xff] }
 0x235   :  { %v1702_v49 = vadd.f32 %v1701_v57, %v1700_v48  ;;  %2527 = vst.msk [vmem:[#allocation2 + $0x198] sm:$0xff] %vm1313_vm1, %v4663_v20  ;;  %2528 = vst.msk [vmem:[#allocation2 + $0x1b8] sm:$0xff] %vm1313_vm1, %v4663_v20  ;;  %v1550_v48 = vmul.f32 %v1486_v19, %v7578_v32  ;;  %v1707_v57 = vsel %vm1313_vm1, %v1610_v40, 0.0  ;;  %v1613_v24 = vmul.f32 %v1549_v5, %v1549_v5  ;;  %v7581_v32 = vld [vmem:[#allocation80_spill] sm:$0xff] }
 0x236   :  { %2529 = vst.msk [vmem:[#allocation2 + $0x1d8] sm:$0xff] %vm1313_vm1, %v4663_v20  ;;  %2530 = vst.msk [vmem:[#allocation2 + $0x1f8] sm:$0xff] %vm1313_vm1, %v4663_v20  ;;  %v1490_v19 = vsub.f32 %v5451_v13, %v5638_v16  ;;  %v1552_v40 = vmul.f32 %v1488_v21, %v7580_v53  ;;  %v1491_v20 = vsub.f32 %v5463_v36, %v5638_v16  ;;  %v7584_v53 = vld [vmem:[#allocation83_spill] sm:$0xff] }
 0x237   :  { %v1704_v0 = vadd.f32 %v1703_v54, %v1702_v49  ;;  %v1709_v54 = vsel %vm1313_vm1, %v1611_v27, 0.0  ;;  %v1614_v52 = vmul.f32 %v1550_v48, %v1550_v48  ;;  %v1615_v7 = vmul.f32 %v1551_v10, %v1551_v10 }
 0x238   :  { %v1713_v59 = vsel %vm1313_vm1, %v1613_v24, 0.0  ;;  %v1492_v27 = vsub.f32 %v5473_v28, %v5638_v16  ;;  %v1494_v24 = vsub.f32 %v5495_v41, %v5638_v16 }
 0x239   :  { %v1706_v25 = vadd.f32 %v1705_v46, %v1704_v0  ;;  %v1711_v46 = vsel %vm1313_vm1, %v1612_v35, 0.0  ;;  %v1715_v21 = vsel %vm1313_vm1, %v1614_v52, 0.0  ;;  %v7583_v35 = vld [vmem:[#allocation81_spill] sm:$0xff]  ;;  %v1495_v52 = vsub.f32 %v5505_v17, %v5638_v16 }
 0x23b   :  { %v1708_v49 = vadd.f32 %v1707_v57, %v1706_v25  ;;  %v1553_v57 = vmul.f32 %v1489_v43, %v7581_v32  ;;  %v1717_v43 = vsel %vm1313_vm1, %v1615_v7, 0.0  ;;  %v1496_v7 = vsub.f32 %v5515_v29, %v5638_v16 }
 0x23d   :  { %v1710_v0 = vadd.f32 %v1709_v54, %v1708_v49  ;;  %v7582_v49 = vld [vmem:[#allocation82_spill] sm:$0xff]  ;;  %v1616_v54 = vmul.f32 %v1552_v40, %v1552_v40  ;;  %v1617_v1 = vmul.f32 %v1553_v57, %v1553_v57 }
 0x23e   :  { %v1554_v62 = vmul.f32 %v1490_v19, %v7582_v49 }
 0x23f   :  { %v1712_v25 = vadd.f32 %v1711_v46, %v1710_v0  ;;  %v1493_v0 = vsub.f32 %v7583_v35, %v5638_v16  ;;  %v1555_v46 = vmul.f32 %v1491_v20, %v7584_v53  ;;  %v1719_v19 = vsel %vm1313_vm1, %v1616_v54, 0.0 }
 0x240   :  { %v1721_v20 = vsel %vm1313_vm1, %v1617_v1, 0.0  ;;  %v1497_v54 = vsub.f32 %v5527_v33, %v5638_v16  ;;  %v1498_v1 = vsub.f32 %v5537_v60, %v5638_v16 }
 0x241   :  { %v1714_v5 = vadd.f32 %v1713_v59, %v1712_v25  ;;  %v7585_v25 = vld [vmem:[#allocation84_spill] sm:$0xff]  ;;  %v1618_v59 = vmul.f32 %v1554_v62, %v1554_v62 }
 0x242   :  { %v1556_v32 = vmul.f32 %v1492_v27, %v7585_v25 }
 0x243   :  { %v1716_v48 = vadd.f32 %v1715_v21, %v1714_v5  ;;  %v7586_v5 = vld [vmem:[#allocation85_spill] sm:$0xff]  ;;  %v1619_v21 = vmul.f32 %v1555_v46, %v1555_v46  ;;  %v1723_v27 = vsel %vm1313_vm1, %v1618_v59, 0.0  ;;  %v7590_v59 = vld [vmem:[#allocation90_spill] sm:$0xff] }
 0x244   :  { %v1557_v49 = vmul.f32 %v1493_v0, %v7586_v5 }
 0x245   :  { %v1718_v10 = vadd.f32 %v1717_v43, %v1716_v48  ;;  %v7587_v48 = vld [vmem:[#allocation86_spill] sm:$0xff]  ;;  %v1620_v43 = vmul.f32 %v1556_v32, %v1556_v32  ;;  %v1725_v0 = vsel %vm1313_vm1, %v1619_v21, 0.0  ;;  %v1500_v21 = vsub.f32 %v5559_v34, %v5638_v16 }
 0x246   :  { %v1558_v53 = vmul.f32 %v1494_v24, %v7587_v48  ;;  %v7591_v48 = vld [vmem:[#allocation89_spill] sm:$0xff] }
 0x247   :  { %v1720_v40 = vadd.f32 %v1719_v19, %v1718_v10  ;;  %v7588_v10 = vld [vmem:[#allocation87_spill] sm:$0xff]  ;;  %v1621_v19 = vmul.f32 %v1557_v49, %v1557_v49  ;;  %v1727_v24 = vsel %vm1313_vm1, %v1620_v43, 0.0  ;;  %v1501_v43 = vsub.f32 %v5569_v2, %v5638_v16 }
 0x248   :  { %v1559_v25 = vmul.f32 %v1495_v52, %v7588_v10 }
 0x249   :  { %v1722_v57 = vadd.f32 %v1721_v20, %v1720_v40  ;;  %v7589_v40 = vld [vmem:[#allocation88_spill] sm:$0xff]  ;;  %v1622_v20 = vmul.f32 %v1558_v53, %v1558_v53  ;;  %v1729_v52 = vsel %vm1313_vm1, %v1621_v19, 0.0  ;;  %v7594_v19 = vld [vmem:[#allocation95_spill] sm:$0xff] }
 0x24a   :  { %v1560_v5 = vmul.f32 %v1496_v7, %v7589_v40  ;;  %v1623_v37 = vmul.f32 %v1559_v25, %v1559_v25 }
 0x24b   :  { %v1724_v62 = vadd.f32 %v1723_v27, %v1722_v57  ;;  %v1499_v57 = vsub.f32 %v7590_v59, %v5638_v16  ;;  %v1561_v27 = vmul.f32 %v1497_v54, %v7591_v48  ;;  %v1731_v7 = vsel %vm1313_vm1, %v1622_v20, 0.0  ;;  %v7595_v48 = vld [vmem:[#allocation93_spill] sm:$0xff] }
 0x24c   :  { %v1733_v54 = vsel %vm1313_vm1, %v1623_v37, 0.0  ;;  %v1503_v20 = vsub.f32 %v5591_v22, %v5638_v16  ;;  %v7597_v37 = vld [vmem:[#allocation5_spill] sm:$0xff] }
 0x24d   :  { %v1726_v46 = vadd.f32 %v1725_v0, %v1724_v62  ;;  %v7592_v62 = vld [vmem:[#allocation91_spill] sm:$0xff]  ;;  %v1624_v0 = vmul.f32 %v1560_v5, %v1560_v5 }
 0x24e   :  { %v1562_v10 = vmul.f32 %v1498_v1, %v7592_v62 }
 0x24f   :  { %v1728_v32 = vadd.f32 %v1727_v24, %v1726_v46  ;;  %v7593_v46 = vld [vmem:[#allocation92_spill] sm:$0xff]  ;;  %v1625_v24 = vmul.f32 %v1561_v27, %v1561_v27  ;;  %v1735_v1 = vsel %vm1313_vm1, %v1624_v0, 0.0  ;;  %v7599_v0 = vld [vmem:[#allocation7_spill] sm:$0xff] }
 0x250   :  { %v1563_v40 = vmul.f32 %v1499_v57, %v7593_v46  ;;  %v1626_v61 = vmul.f32 %v1562_v10, %v1562_v10  ;;  %v7598_v46 = vld [vmem:[#allocation96_spill] sm:$0xff] }
 0x251   :  { %v1730_v49 = vadd.f32 %v1729_v52, %v1728_v32  ;;  %v1502_v32 = vsub.f32 %v7594_v19, %v5638_v16  ;;  %v1564_v52 = vmul.f32 %v1500_v21, %v7595_v48  ;;  %v1737_v57 = vsel %vm1313_vm1, %v1625_v24, 0.0  ;;  %v7600_v48 = vld [vmem:[#allocation97_spill] sm:$0xff] }
 0x252   :  { %v1739_v21 = vsel %vm1313_vm1, %v1626_v61, 0.0  ;;  %v7601_v24 = vld [vmem:[#allocation9_spill] sm:$0xff]  ;;  %v7603_v61 = vld [vmem:[#allocation11_spill] sm:$0xff] }
 0x253   :  { %v1732_v53 = vadd.f32 %v1731_v7, %v1730_v49  ;;  %v7596_v49 = vld [vmem:[#allocation94_spill] sm:$0xff]  ;;  %v1627_v7 = vmul.f32 %v1563_v40, %v1563_v40  ;;  %v1628_v44 = vmul.f32 %v1564_v52, %v1564_v52 }
 0x254   :  { %v1565_v62 = vmul.f32 %v1501_v43, %v7596_v49  ;;  %v7602_v49 = vld [vmem:[#allocation98_spill] sm:$0xff] }
 0x255   :  { %v1734_v25 = vadd.f32 %v1733_v54, %v1732_v53  ;;  %v1504_v53 = vsub.f32 %v7597_v37, %v5638_v16  ;;  %v1566_v54 = vmul.f32 %v1502_v32, %v7598_v46  ;;  %v1741_v43 = vsel %vm1313_vm1, %v1627_v7, 0.0  ;;  %v7604_v46 = vld [vmem:[#allocation99_spill] sm:$0xff]  ;;  %v7605_v7 = vld [vmem:[#allocation13_spill] sm:$0xff] }
 0x256   :  { %v1629_v58 = vmul.f32 %v1565_v62, %v1565_v62  ;;  %v1743_v32 = vsel %vm1313_vm1, %v1628_v44, 0.0  ;;  %v7607_v44 = vld [vmem:[#allocation15_spill] sm:$0xff] }
 0x257   :  { %v1736_v5 = vadd.f32 %v1735_v1, %v1734_v25  ;;  %v1505_v25 = vsub.f32 %v7599_v0, %v5638_v16  ;;  %v1567_v1 = vmul.f32 %v1503_v20, %v7600_v48  ;;  %v1630_v55 = vmul.f32 %v1566_v54, %v1566_v54  ;;  %v7606_v48 = vld [vmem:[#allocation100_spill] sm:$0xff] }
 0x258   :  { %v1745_v20 = vsel %vm1313_vm1, %v1629_v58, 0.0  ;;  %v7609_v58 = vld [vmem:[#allocation17_spill] sm:$0xff] }
 0x259   :  { %v1738_v27 = vadd.f32 %v1737_v57, %v1736_v5  ;;  %v1506_v5 = vsub.f32 %v7601_v24, %v5638_v16  ;;  %v1568_v57 = vmul.f32 %v1504_v53, %v7602_v49  ;;  %v1631_v30 = vmul.f32 %v1567_v1, %v1567_v1  ;;  %v7608_v49 = vld [vmem:[#allocation101_spill] sm:$0xff] }
 0x25a   :  { %v1747_v53 = vsel %vm1313_vm1, %v1630_v55, 0.0  ;;  %v7611_v55 = vld [vmem:[#allocation19_spill] sm:$0xff] }
 0x25b   :  { %v1740_v10 = vadd.f32 %v1739_v21, %v1738_v27  ;;  %v1507_v27 = vsub.f32 %v7603_v61, %v5638_v16  ;;  %v1569_v21 = vmul.f32 %v1505_v25, %v7604_v46  ;;  %v1632_v14 = vmul.f32 %v1568_v57, %v1568_v57  ;;  %v7610_v46 = vld [vmem:[#allocation102_spill] sm:$0xff] }
 0x25c   :  { %v1749_v25 = vsel %vm1313_vm1, %v1631_v30, 0.0  ;;  %v7613_v30 = vld [vmem:[#allocation104_spill] sm:$0xff] }
 0x25d   :  { %v1742_v40 = vadd.f32 %v1741_v43, %v1740_v10  ;;  %v1508_v10 = vsub.f32 %v7605_v7, %v5638_v16  ;;  %v1570_v43 = vmul.f32 %v1506_v5, %v7606_v48  ;;  %v1633_v51 = vmul.f32 %v1569_v21, %v1569_v21  ;;  %v7612_v48 = vld [vmem:[#allocation103_spill] sm:$0xff] }
 0x25e   :  { %v1751_v5 = vsel %vm1313_vm1, %v1632_v14, 0.0 }
 0x25f   :  { %v1744_v52 = vadd.f32 %v1743_v32, %v1742_v40  ;;  %v1509_v40 = vsub.f32 %v7607_v44, %v5638_v16  ;;  %v1571_v32 = vmul.f32 %v1507_v27, %v7608_v49  ;;  %v1634_v47 = vmul.f32 %v1570_v43, %v1570_v43 }
 0x260   :  { %v1753_v27 = vsel %vm1313_vm1, %v1633_v51, 0.0 }
 0x261   :  { %v1746_v62 = vadd.f32 %v1745_v20, %v1744_v52  ;;  %v1510_v52 = vsub.f32 %v7609_v58, %v5638_v16  ;;  %v1572_v20 = vmul.f32 %v1508_v10, %v7610_v46  ;;  %v1635_v4 = vmul.f32 %v1571_v32, %v1571_v32  ;;  %v7614_v10 = vld [vmem:[#allocation105_spill] sm:$0xff] }
 0x263   :  { %v1748_v54 = vadd.f32 %v1747_v53, %v1746_v62  ;;  %v1511_v62 = vsub.f32 %v7611_v55, %v5638_v16  ;;  %v1573_v53 = vmul.f32 %v1509_v40, %v7612_v48  ;;  %v1636_v49 = vmul.f32 %v1572_v20, %v1572_v20 }
 0x264   :  { %v1757_v14 = vsel %vm1313_vm1, %v1635_v4, 0.0 }
 0x265   :  { %v1750_v1 = vadd.f32 %v1749_v25, %v1748_v54  ;;  %v1574_v54 = vmul.f32 %v1510_v52, %v7613_v30  ;;  %v1755_v25 = vsel %vm1313_vm1, %v1634_v47, 0.0  ;;  %v1575_v43 = vmul.f32 %v1511_v62, %v7614_v10 }
 0x266   :  { %v1637_v46 = vmul.f32 %v1573_v53, %v1573_v53  ;;  %v1759_v61 = vsel %vm1313_vm1, %v1636_v49, 0.0 }
 0x267   :  { %v1752_v57 = vadd.f32 %v1751_v5, %v1750_v1  ;;  %v1638_v5 = vmul.f32 %v1574_v54, %v1574_v54  ;;  %v1639_v32 = vmul.f32 %v1575_v43, %v1575_v43 }
 0x268   :  { %v1761_v51 = vsel %vm1313_vm1, %v1637_v46, 0.0 }
 0x269   :  { %v1754_v21 = vadd.f32 %v1753_v27, %v1752_v57  ;;  %v1763_v52 = vsel %vm1313_vm1, %v1638_v5, 0.0  ;;  %v1765_v47 = vsel %vm1313_vm1, %v1639_v32, 0.0 }
 0x26b   :  { %v1756_v44 = vadd.f32 %v1755_v25, %v1754_v21  ;;  %v928_v25 = vld [vmem:[%s7291_s4] sm:$0x3] }
 0x26d   :  { %v1758_v1 = vadd.f32 %v1757_v14, %v1756_v44 }
 0x26f   :  { %v1760_v40 = vadd.f32 %v1759_v61, %v1758_v1  ;;  %v1782_v61 = vlaneseq }
 0x271   :  { %v1762_v57 = vadd.f32 %v1761_v51, %v1760_v40  ;;  %v1783_v49 = vshrl.u32 %v1782_v61, 7 }
 0x273   :  { %v1764_v20 = vadd.f32 %v1763_v52, %v1762_v57  ;;  %v5924_v46 = vsub.s32 0, %v1783_v49  ;;  %v5930_v40 = vsub.s32 1, %v1783_v49 }
 0x275   :  { %v1766_v48 = vadd.f32 %v1765_v47, %v1764_v20  ;;  %7615 = vst [vmem:[#allocation26_spill] sm:$0xff] %v5924_v46  ;;  %7616 = vst [vmem:[#allocation30_spill] sm:$0xff] %v5930_v40 }
 0x277   :  { %v1767_v27 = vrot.slane %v1766_v48, 4 }
 0x279   :  { %v1768_v62 = vadd.f32 %v1767_v27, %v1766_v48 }
 0x27b   :  { %v1769_v53 = vrot.slane %v1768_v62, 2 }
 0x27d   :  { %v1770_v21 = vadd.f32 %v1769_v53, %v1768_v62 }
 0x27f   :  { %v1771_v4 = vrot.slane %v1770_v21, 1 }
 0x281   :  { %v1772_v44 = vadd.f32 %v1771_v4, %v1770_v21 }
 0x283   :  { %v1773_v30 = vmul.f32 0.0078125, %v1772_v44 }
 0x285   :  { %v1774_v54 = vadd.f32 1e-05, %v1773_v30 }
 0x287   :  { %4636 = vrsqrt.f32 %v1774_v54 }
 0x294   :  { %v4637_v10 = vpop.eup %4636 }
 0x295   :  { %v1776_v43 = vmul.f32 %v4637_v10, %v928_v25 }
 0x297   :  { %v1777_v14 = vmul.f32 %v1776_v43, %v5638_v16  ;;  %v5928_v5 = vrot.slane %v1776_v43, %v5924_v46  ;;  %v7637_v46 = vld [vmem:[#allocation43_spill] sm:$0xff] }
 0x299   :  { %v1779_v1 = vrot.slane %v1777_v14, 7  ;;  %v1841_v51 = vmul.f32 %v5928_v5, %v5591_v22  ;;  %v1810_v20 = vmul.f32 %v5928_v5, %v5282_v42  ;;  %v1811_v16 = vmul.f32 %v5928_v5, %v5288_v50  ;;  %v4573_v14 = vld [vmem:[%s7292_s2 + $0x28] sm:$0xff]  }
 0x29a   :  { %v1812_v47 = vmul.f32 %v5928_v5, %v5292_v56  ;;  %v1813_v48 = vmul.f32 %v5928_v5, %v7562_v39  ;;  %v1814_v22 = vmul.f32 %v5928_v5, %v5302_v23  ;;  %v1815_v27 = vmul.f32 %v5928_v5, %v5312_v63 }
 0x29b   :  { %v1781_v32 = vsub.f32 %v928_v25, %v1779_v1  ;;  %v1816_v62 = vmul.f32 %v5928_v5, %v5323_v11  ;;  %v1817_v42 = vmul.f32 %v5928_v5, %v5335_v12  ;;  %v1818_v50 = vmul.f32 %v5928_v5, %v5345_v8 }
 0x29c   :  { %v1819_v56 = vmul.f32 %v5928_v5, %v7569_v26  ;;  %v1820_v39 = vmul.f32 %v5928_v5, %v5367_v9  ;;  %v1821_v23 = vmul.f32 %v5928_v5, %v5377_v18  ;;  %v1822_v63 = vmul.f32 %v5928_v5, %v5387_v45  ;;  %v4568_v45 = vld [vmem:[%s7292_s2 + $0x78] sm:$0xff]  }
 0x29d   :  { %v5935_v57 = vrot.slane %v1781_v32, %v5930_v40  ;;  %v5968_v11 = vmul.f32 %v5928_v5, %v5399_v38  ;;  %v1824_v12 = vmul.f32 %v5928_v5, %v5409_v6  ;;  %v1825_v8 = vmul.f32 %v5928_v5, %v7576_v31  ;;  %4227 = vmatprep.subr.bf16.mxu1 %v4568_v45  ;;  %v7636_v40 = vld [vmem:[#allocation29_spill] sm:$0xff] }
 0x29e   :  { %v1826_v26 = vmul.f32 %v5928_v5, %v5431_v15  ;;  %v1827_v9 = vmul.f32 %v5928_v5, %v5441_v3  ;;  %v1828_v18 = vmul.f32 %v5928_v5, %v5451_v13  ;;  %v1829_v38 = vmul.f32 %v5928_v5, %v5463_v36  ;;  %v4569_v3 = vld [vmem:[%s7292_s2 + $0x38] sm:$0xff]  }
 0x29f   :  { %v5938_v52 = vadd.f32 %v5935_v57, %v1841_v51  ;;  %v1830_v6 = vmul.f32 %v5928_v5, %v5473_v28  ;;  %v5989_v31 = vmul.f32 %v5928_v5, %v7583_v35  ;;  %v1832_v15 = vmul.f32 %v5928_v5, %v5495_v41  ;;  %4228 = vmatpush3.bf16.msra.mxu1 %v4569_v3  ;;  %v7619_v3 = vld [vmem:[#allocation11_spill] sm:$0xff] }
 0x2a0   :  { %v1833_v13 = vmul.f32 %v5928_v5, %v5505_v17  ;;  %v1834_v36 = vmul.f32 %v5928_v5, %v5515_v29  ;;  %v1835_v28 = vmul.f32 %v5928_v5, %v5527_v33  ;;  %v1836_v35 = vmul.f32 %v5928_v5, %v5537_v60  ;;  %v4570_v17 = vld [vmem:[%s7292_s2 + $0x70] sm:$0xff]  }
 0x2a1   :  { %v1837_v53 = vmul.f32 %v5928_v5, %v7590_v59  ;;  %v6007_v21 = vadd.f32 %v5935_v57, %v1810_v20  ;;  %v6010_v41 = vadd.f32 %v5935_v57, %v1812_v47  ;;  %v4571_v29 = vld [vmem:[%s7292_s2 + $0x30] sm:$0xff]   ;;  %v1838_v60 = vmul.f32 %v5928_v5, %v5559_v34  ;;  %4229 = vmatprep.subr.bf16.mxu1 %v4570_v17 }
 0x2a2   :  { %v1839_v33 = vmul.f32 %v5928_v5, %v5569_v2  ;;  %v6023_v59 = vadd.f32 %v5935_v57, %v1814_v22  ;;  %v6026_v4 = vadd.f32 %v5935_v57, %v1816_v62  ;;  %v1840_v44 = vmul.f32 %v5928_v5, %v7594_v19 }
 0x2a3   :  { %v6031_v30 = vadd.f32 %v5935_v57, %v1817_v42  ;;  %v6034_v54 = vadd.f32 %v5935_v57, %v1818_v50  ;;  %v6037_v34 = vadd.f32 %v5935_v57, %v1820_v39  ;;  %v1842_v2 = vmul.f32 %v5928_v5, %v7597_v37  ;;  %4230 = vmatpush3.bf16.msra.mxu1 %v4571_v29 }
 0x2a4   :  { %v1844_v61 = vmul.f32 %v5928_v5, %v7601_v24  ;;  %v6044_v49 = vadd.f32 %v5935_v57, %v1822_v63  ;;  %v6047_v19 = vadd.f32 %v5935_v57, %v1824_v12  ;;  %v1846_v25 = vmul.f32 %v5928_v5, %v7605_v7  ;;  %v4572_v24 = vld [vmem:[%s7292_s2 + $0x68] sm:$0xff]  }
 0x2a5   :  { %v6052_v10 = vadd.f32 %v5935_v57, %v1825_v8  ;;  %v6055_v43 = vadd.f32 %v5935_v57, %v1826_v26  ;;  %v6058_v37 = vadd.f32 %v5935_v57, %v1828_v18  ;;  %v1848_v7 = vmul.f32 %v5928_v5, %v7609_v58  ;;  %4231 = vmatprep.subr.bf16.mxu1 %v4572_v24 }
 0x2a6   :  { %v1879_v1 = vadd.f32 %v5935_v57, %v1811_v16  ;;  %v6070_v32 = vadd.f32 %v5935_v57, %v1830_v6  ;;  %v6073_v51 = vadd.f32 %v5935_v57, %v1832_v15  ;;  %v1881_v20 = vadd.f32 %v5935_v57, %v1813_v48 }
 0x2a7   :  { %v6077_v47 = vadd.f32 %v5935_v57, %v1833_v13  ;;  %v6080_v22 = vadd.f32 %v5935_v57, %v1834_v36  ;;  %v6083_v62 = vadd.f32 %v5935_v57, %v1836_v35  ;;  %v1849_v58 = vmul.f32 %v5928_v5, %v7611_v55  ;;  %4232 = vmatpush3.bf16.msra.mxu1 %v4573_v14  ;;  %v4574_v55 = vld [vmem:[%s7292_s2 + $0x60] sm:$0xff]   ;;  %v4577_v14 = vld [vmem:[%s7292_s2 + $0x18] sm:$0xff]  }
 0x2a8   :  { %v1883_v16 = vadd.f32 %v5935_v57, %v1815_v27  ;;  %v6089_v42 = vadd.f32 %v5935_v57, %v1838_v60  ;;  %v6092_v48 = vadd.f32 %v5935_v57, %v1840_v44  ;;  %v1887_v50 = vadd.f32 %v5935_v57, %v1819_v56  ;;  %4233 = vmatprep.subr.bf16.mxu1 %v4574_v55 }
 0x2a9   :  { %v1889_v39 = vadd.f32 %v5935_v57, %v1821_v23  ;;  %v6097_v63 = vadd.f32 %v5935_v57, %v1842_v2  ;;  %v6100_v12 = vadd.f32 %v5935_v57, %v1844_v61  ;;  %v1891_v27 = vadd.f32 %v5935_v57, %v5968_v11 }
 0x2aa   :  { %v6108_v8 = vadd.f32 %v5935_v57, %v1846_v25  ;;  %v6111_v56 = vadd.f32 %v5935_v57, %v1848_v7  ;;  %v6114_v23 = vadd.f32 %v5935_v57, %v1849_v58  ;;  %v1895_v26 = vadd.f32 %v5935_v57, %v1827_v9  ;;  %v4575_v9 = vld [vmem:[%s7292_s2 + $0x20] sm:$0xff]  }
 0x2ab   :  { %v1897_v45 = vadd.f32 %v5935_v57, %v1829_v38  ;;  %v6118_v18 = vmax.f32 %v1879_v1, 0.0  ;;  %v6120_v6 = vmax.f32 %v1881_v20, 0.0  ;;  %v1843_v11 = vmul.f32 %v5928_v5, %v7599_v0  ;;  %v4576_v0 = vld [vmem:[%s7292_s2 + $0x58] sm:$0xff]   ;;  %4234 = vmatpush3.bf16.msra.mxu1 %v4575_v9  ;;  %v4578_v20 = vld [vmem:[%s7292_s2 + $0x50] sm:$0xff]   ;;  %v7622_v58 = vld [vmem:[#allocation4_spill] sm:$0xff] }
 0x2ac   :  { %7617 = vst [vmem:[#allocation28_spill] sm:$0xff] %v6111_v56  ;;  %7618 = vst [vmem:[#allocation31_spill] sm:$0xff] %v6114_v23  ;;  %v1845_v15 = vmul.f32 %v5928_v5, %v7619_v3  ;;  %v1899_v13 = vadd.f32 %v5935_v57, %v5989_v31  ;;  %v6128_v36 = vmax.f32 %v1883_v16, 0.0  ;;  %v1903_v38 = vadd.f32 %v5935_v57, %v1835_v28  ;;  %v7620_v31 = vld [vmem:[#allocation15_spill] sm:$0xff] }
 0x2ad   :  { %v1905_v35 = vadd.f32 %v5935_v57, %v1837_v53  ;;  %v6135_v17 = vmax.f32 %v1887_v50, 0.0  ;;  %v6137_v29 = vmax.f32 %v1889_v39, 0.0  ;;  %1991 = vst.msk [vmem:[#allocation2 + $0x120] sm:$0xff] %vm1313_vm1, %v6118_v18  ;;  %1992 = vst.msk [vmem:[#allocation2 + $0x140] sm:$0xff] %vm1313_vm1, %v6120_v6  ;;  %v1847_v28 = vmul.f32 %v5928_v5, %v7620_v31  ;;  %4235 = vmatprep.subr.bf16.mxu1 %v4576_v0  ;;  %v7623_v50 = vld [vmem:[#allocation8_spill] sm:$0xff]  ;;  %v4579_v0 = vld [vmem:[%s7292_s2 + $0x10] sm:$0xff]  }
 0x2ae   :  { %2415 = vst.msk [vmem:[#allocation2 + $0xb0] sm:$0xff] %vm1313_vm1, %v6118_v18  ;;  %2416 = vst.msk [vmem:[#allocation2 + $0xd0] sm:$0xff] %vm1313_vm1, %v6120_v6  ;;  %v1907_v53 = vadd.f32 %v5935_v57, %v1839_v33  ;;  %v6153_v60 = vmax.f32 %v1891_v27, 0.0  ;;  %v6160_v44 = vadd.f32 %v5935_v57, %v1843_v11  ;;  %v6163_v2 = vadd.f32 %v5935_v57, %v1845_v15  ;;  %v7624_v27 = vld [vmem:[#allocation6_spill] sm:$0xff] }
 0x2af   :  { %1993 = vst.msk [vmem:[#allocation2 + $0x160] sm:$0xff] %vm1313_vm1, %v6128_v36  ;;  %2417 = vst.msk [vmem:[#allocation2 + $0xf0] sm:$0xff] %vm1313_vm1, %v6128_v36  ;;  %v6165_v61 = vmax.f32 %v1895_v26, 0.0  ;;  %v6167_v25 = vmax.f32 %v1897_v45, 0.0  ;;  %v6178_v33 = vadd.f32 %v5935_v57, %v1847_v28  ;;  %v6180_v24 = vmax.f32 %v1899_v13, 0.0  ;;  %4236 = vmatpush3.bf16.msra.mxu1 %v4577_v14  ;;  %v7625_v45 = vld [vmem:[#allocation10_spill] sm:$0xff] }
 0x2b0   :  { %2191 = vst.msk [vmem:[#allocation2 + $0x128] sm:$0xff] %vm1313_vm1, %v6135_v17  ;;  %2192 = vst.msk [vmem:[#allocation2 + $0x148] sm:$0xff] %vm1313_vm1, %v6137_v29  ;;  %v6189_v7 = vmax.f32 %v1903_v38, 0.0  ;;  %v6191_v1 = vmax.f32 %v1905_v35, 0.0  ;;  %v1786_v16 = vmul.f32 %v5928_v5, %v7622_v58  ;;  %v1788_v39 = vmul.f32 %v5928_v5, %v7623_v50  ;;  %4237 = vmatprep.subr.bf16.mxu1 %v4578_v20  ;;  %v7626_v13 = vld [vmem:[#allocation14_spill] sm:$0xff]  ;;  %v4580_v14 = vld [vmem:[%s7292_s2 + $0x48] sm:$0xff]  }
 0x2b1   :  { %2520 = vst.msk [vmem:[#allocation2 + $0xb8] sm:$0xff] %vm1313_vm1, %v6135_v17  ;;  %2521 = vst.msk [vmem:[#allocation2 + $0xd8] sm:$0xff] %vm1313_vm1, %v6137_v29  ;;  %v6208_v55 = vmax.f32 %v1907_v53, 0.0  ;;  %v1787_v26 = vmul.f32 %v5928_v5, %v7624_v27  ;;  %v1789_v11 = vmul.f32 %v5928_v5, %v7625_v45  ;;  %v7417_v3 = vmax.f32 %v6160_v44, 0.0  ;;  %v7627_v20 = vld [vmem:[#allocation12_spill] sm:$0xff] }
 0x2b2   :  { %7621 = vst [vmem:[#allocation33_spill] sm:$0xff] %v6178_v33  ;;  %2193 = vst.msk [vmem:[#allocation2 + $0x168] sm:$0xff] %vm1313_vm1, %v6153_v60  ;;  %v7416_v15 = vmax.f32 %v6163_v2, 0.0  ;;  %v1791_v9 = vmul.f32 %v5928_v5, %v7626_v13  ;;  %v7418_v38 = vmax.f32 %v6178_v33, 0.0  ;;  %v6236_v35 = vadd.f32 %v5935_v57, %v1788_v39  ;;  %v7629_v13 = vld [vmem:[#allocation21_spill] sm:$0xff]  ;;  %v7638_v33 = vld [vmem:[#allocation48_spill] sm:$0xff] }
 0x2b3   :  { %2522 = vst.msk [vmem:[#allocation2 + $0xf8] sm:$0xff] %vm1313_vm1, %v6153_v60  ;;  %1995 = vst.msk [vmem:[#allocation2 + $0x1a0] sm:$0xff] %vm1313_vm1, %v6165_v61  ;;  %v1854_v31 = vadd.f32 %v5935_v57, %v1786_v16  ;;  %v1855_v28 = vadd.f32 %v5935_v57, %v1787_v26  ;;  %v1857_v53 = vadd.f32 %v5935_v57, %v1789_v11  ;;  %4238 = vmatpush3.bf16.msra.mxu1 %v4579_v0  ;;  %v7628_v16 = vld [vmem:[#allocation34_spill] sm:$0xff] }
 0x2b4   :  { %1996 = vst.msk [vmem:[#allocation2 + $0x1c0] sm:$0xff] %vm1313_vm1, %v6167_v25  ;;  %2419 = vst.msk [vmem:[#allocation2 + $0x130] sm:$0xff] %vm1313_vm1, %v6165_v61  ;;  %v1790_v58 = vmul.f32 %v5928_v5, %v7627_v20  ;;  %v6260_v39 = vadd.f32 %v5935_v57, %v1791_v9  ;;  %v1803_v27 = vmul.f32 %v5928_v5, %v7628_v16  ;;  %4239 = vmatprep.subr.bf16.mxu1 %v4580_v14  ;;  %v7634_v14 = vld [vmem:[#allocation25_spill] sm:$0xff] }
 0x2b5   :  { %2420 = vst.msk [vmem:[#allocation2 + $0x150] sm:$0xff] %vm1313_vm1, %v6167_v25  ;;  %1997 = vst.msk [vmem:[#allocation2 + $0x1e0] sm:$0xff] %vm1313_vm1, %v6180_v24  ;;  %v1918_v26 = vmax.f32 %v1854_v31, 0.0  ;;  %v1919_v45 = vmax.f32 %v1855_v28, 0.0  ;;  %v1921_v11 = vmax.f32 %v1857_v53, 0.0  ;;  %v1795_v20 = vmul.f32 %v5928_v5, %v7629_v13  ;;  %v4581_v31 = vld [vmem:[%s7292_s2 + $0x8] sm:$0xff]  }
 0x2b6   :  { %2421 = vst.msk [vmem:[#allocation2 + $0x170] sm:$0xff] %vm1313_vm1, %v6180_v24  ;;  %2195 = vst.msk [vmem:[#allocation2 + $0x1a8] sm:$0xff] %vm1313_vm1, %v6189_v7  ;;  %v7632_v9 = vmax.f32 %v6236_v35, 0.0  ;;  %v1923_v0 = vmax.f32 %v6260_v39, 0.0  ;;  %v7633_v28 = vld [vmem:[#allocation16_spill] sm:$0xff]  ;;  %v1799_v16 = vmul.f32 %v5928_v5, %v7634_v14  ;;  %v1807_v23 = vmul.f32 %v5928_v5, %v7637_v46 }
 0x2b7   :  { %2196 = vst.msk [vmem:[#allocation2 + $0x1c8] sm:$0xff] %vm1313_vm1, %v6191_v1  ;;  %2524 = vst.msk [vmem:[#allocation2 + $0x138] sm:$0xff] %vm1313_vm1, %v6189_v7  ;;  %v1792_v53 = vmul.f32 %v5928_v5, %v7633_v28  ;;  %2214 = vrot.lane.b32.xlu0 %v1918_v26, %s4664_s0  ;;  %v6291_v28 = vadd.f32 %v5935_v57, %v1790_v58  ;;  %v1863_v26 = vadd.f32 %v5935_v57, %v1795_v20 }
 0x2b8   :  { %2525 = vst.msk [vmem:[#allocation2 + $0x158] sm:$0xff] %vm1313_vm1, %v6191_v1  ;;  %2197 = vst.msk [vmem:[#allocation2 + $0x1e8] sm:$0xff] %vm1313_vm1, %v6208_v55  ;;  %2216 = vrot.lane.b32.xlu1 %v7632_v9, %s4664_s0  ;;  %v4582_v9 = vld [vmem:[%s7292_s2 + $0x40] sm:$0xff]   ;;  %4240 = vmatpush3.bf16.msra.mxu1 %v4581_v31  ;;  %v1809_v58 = vmul.f32 %v5928_v5, %v7638_v33  ;;  %v1875_v33 = vadd.f32 %v5935_v57, %v1807_v23 }
 0x2b9   :  { %2526 = vst.msk [vmem:[#allocation2 + $0x178] sm:$0xff] %vm1313_vm1, %v6208_v55  ;;  %2423 = vst.msk [vmem:[#allocation2 + $0x1b0] sm:$0xff] %vm1313_vm1, %v7417_v3  ;;  %4241 = vmatprep.subr.bf16.mxu1 %v4582_v9  ;;  %v2080_v9 = vpop.permute.xlu1 %2079 }
 0x2ba   :  { %2424 = vst.msk [vmem:[#allocation2 + $0x1d0] sm:$0xff] %vm1313_vm1, %v7416_v15  ;;  %2425 = vst.msk [vmem:[#allocation2 + $0x1f0] sm:$0xff] %vm1313_vm1, %v7418_v38  ;;  %v7630_v15 = vld [vmem:[#allocation23_spill] sm:$0xff]  ;;  %v6343_v23 = vadd.f32 %v5935_v57, %v1809_v58  ;;  %v7641_v58 = vld [vmem:[#allocation32_spill] sm:$0xff] }
 0x2bb   :  { %v1797_v3 = vmul.f32 %v5928_v5, %v7630_v15  ;;  %v7631_v38 = vld [vmem:[#allocation39_spill] sm:$0xff]  ;;  %2183 = vst.msk [vmem:[#allocation2 + $0x28] sm:$0xff] %vm1313_vm1, %v1919_v45  ;;  %2184 = vst.msk [vmem:[#allocation2 + $0x48] sm:$0xff] %vm1313_vm1, %v1921_v11  ;;  %2296 = vrot.lane.b32.xlu0 %v1921_v11, %s4665_s11  ;;  %v1867_v11 = vadd.f32 %v5935_v57, %v1799_v16  ;;  %v7640_v16 = vmax.f32 %v6236_v35, 0.0 }
 0x2bc   :  { %v1805_v50 = vmul.f32 %v5928_v5, %v7631_v38  ;;  %v7635_v15 = vld [vmem:[#allocation27_spill] sm:$0xff]  ;;  %v1871_v38 = vadd.f32 %v5935_v57, %v1803_v27  ;;  %2185 = vst.msk [vmem:[#allocation2 + $0x68] sm:$0xff] %vm1313_vm1, %v1923_v0  ;;  %v1801_v27 = vmul.f32 %v5928_v5, %v7636_v40  ;;  %2294 = vrot.lane.b32.xlu1 %v1919_v45, %s4665_s11  ;;  %v2012_v40 = vpop.permute.xlu0 %2011  ;;  %v4583_v45 = vld [vmem:[%s7292_s2] sm:$0xff]  }
 0x2bd   :  { %v1800_v13 = vmul.f32 %v5928_v5, %v7635_v15  ;;  %v1865_v15 = vadd.f32 %v5935_v57, %v1797_v3  ;;  %v6313_v3 = vmax.f32 %v1863_v26, 0.0  ;;  %4242 = vmatpush3.bf16.msra.mxu1 %v4583_v45  ;;  %v7639_v26 = vld [vmem:[#allocation18_spill] sm:$0xff]  ;;  %2051 = vst.msk [vmem:[#allocation2] sm:$0xff] %vm2050_vm2, %v2012_v40  ;;  %2052 = vst.msk [vmem:[#allocation2 + $0x20] sm:$0xff] %vm2050_vm2, %v2012_v40  ;;  %v7642_v45 = vld [vmem:[#allocation36_spill] sm:$0xff] }
 0x2be   :  { %v1873_v14 = vadd.f32 %v5935_v57, %v1805_v50  ;;  %v6305_v56 = vmax.f32 %v1871_v38, 0.0  ;;  %v6309_v50 = vadd.f32 %v5935_v57, %v1792_v53  ;;  %v1922_v53 = vmax.f32 %v6291_v28, 0.0  ;;  %2053 = vst.msk [vmem:[#allocation2 + $0x40] sm:$0xff] %vm2050_vm2, %v2012_v40  ;;  %2054 = vst.msk [vmem:[#allocation2 + $0x60] sm:$0xff] %vm2050_vm2, %v2012_v40 }
 0x2bf   :  { %v6315_v31 = vmax.f32 %v1865_v15, 0.0  ;;  %v6323_v46 = vadd.f32 %v5935_v57, %v1800_v13  ;;  %1987 = vst.msk [vmem:[#allocation2 + $0xa0] sm:$0xff] %vm1313_vm1, %v6313_v3  ;;  %2411 = vst.msk [vmem:[#allocation2 + $0x30] sm:$0xff] %vm1313_vm1, %v6313_v3  ;;  %v6347_v13 = vadd.f32 %v5935_v57, %v1801_v27  ;;  %v6349_v38 = vmax.f32 %v1875_v33, 0.0  ;;  %2358 = vrot.lane.b32.xlu0 %v7640_v16, %s4666_s12 }
 0x2c0   :  { %v6311_v20 = vmax.f32 %v1873_v14, 0.0  ;;  %2187 = vst.msk [vmem:[#allocation2 + $0xa8] sm:$0xff] %vm1313_vm1, %v6305_v56  ;;  %2516 = vst.msk [vmem:[#allocation2 + $0x38] sm:$0xff] %vm1313_vm1, %v6305_v56  ;;  %2360 = vrot.lane.b32.xlu1 %v1922_v53, %s4666_s12  ;;  %v1924_v28 = vmax.f32 %v6309_v50, 0.0  ;;  %v6353_v14 = vmax.f32 %v1867_v11, 0.0  ;;  %v1793_v15 = vmul.f32 %v5928_v5, %v7639_v26  ;;  %v6384_v35 = vpop.permute.xlu0 %2135 }
 0x2c1   :  { %1988 = vst.msk [vmem:[#allocation2 + $0xc0] sm:$0xff] %vm1313_vm1, %v6315_v31  ;;  %2412 = vst.msk [vmem:[#allocation2 + $0x50] sm:$0xff] %vm1313_vm1, %v6315_v31  ;;  %v1802_v50 = vmul.f32 %v5928_v5, %v7641_v58  ;;  %v1804_v11 = vmul.f32 %v5928_v5, %v7642_v45 }
 0x2c2   :  { %2188 = vst.msk [vmem:[#allocation2 + $0xc8] sm:$0xff] %vm1313_vm1, %v6311_v20  ;;  %2517 = vst.msk [vmem:[#allocation2 + $0x58] sm:$0xff] %vm1313_vm1, %v6311_v20  ;;  %v1861_v27 = vadd.f32 %v5935_v57, %v1793_v15 }
 0x2c3   :  { %2189 = vst.msk [vmem:[#allocation2 + $0xe8] sm:$0xff] %vm1313_vm1, %v6349_v38  ;;  %2518 = vst.msk [vmem:[#allocation2 + $0x78] sm:$0xff] %vm1313_vm1, %v6349_v38  ;;  %2220 = vrot.lane.b32.xlu0 %v1924_v28, %s4664_s0  ;;  %v1870_v33 = vadd.f32 %v5935_v57, %v1802_v50 }
 0x2c4   :  { %2543 = vst.msk [vmem:[#allocation2 + $0x198] sm:$0xff] %vm2050_vm2, %v2012_v40  ;;  %2544 = vst.msk [vmem:[#allocation2 + $0x1b8] sm:$0xff] %vm2050_vm2, %v2012_v40  ;;  %2218 = vrot.lane.b32.xlu1 %v1922_v53, %s4664_s0  ;;  %v1872_v53 = vadd.f32 %v5935_v57, %v1804_v11  ;;  %v7646_v11 = vld [vmem:[#allocation24_spill] sm:$0xff] }
 0x2c5   :  { %2545 = vst.msk [vmem:[#allocation2 + $0x1d8] sm:$0xff] %vm2050_vm2, %v2012_v40  ;;  %2546 = vst.msk [vmem:[#allocation2 + $0x1f8] sm:$0xff] %vm2050_vm2, %v2012_v40  ;;  %v1925_v40 = vmax.f32 %v1861_v27, 0.0  ;;  %v1934_v15 = vmax.f32 %v1870_v33, 0.0  ;;  %v7644_v27 = vld [vmem:[#allocation22_spill] sm:$0xff]  ;;  %v7645_v33 = vld [vmem:[#allocation41_spill] sm:$0xff] }
 0x2c6   :  { %1989 = vst.msk [vmem:[#allocation2 + $0xe0] sm:$0xff] %vm1313_vm1, %v6353_v14  ;;  %2413 = vst.msk [vmem:[#allocation2 + $0x70] sm:$0xff] %vm1313_vm1, %v6353_v14  ;;  %v1796_v58 = vmul.f32 %v5928_v5, %v7644_v27  ;;  %v1936_v50 = vmax.f32 %v1872_v53, 0.0  ;;  %v1806_v45 = vmul.f32 %v5928_v5, %v7645_v33  ;;  %v7647_v53 = vld [vmem:[#allocation46_spill] sm:$0xff] }
 0x2c7   :  { %2119 = vst.msk [vmem:[#allocation2] sm:$0xff] %vm2118_vm3, %v2080_v9  ;;  %2120 = vst.msk [vmem:[#allocation2 + $0x20] sm:$0xff] %vm2118_vm3, %v2080_v9  ;;  %2300 = vrot.lane.b32.xlu0 %v1925_v40, %s4665_s11 }
 0x2c8   :  { %2121 = vst.msk [vmem:[#allocation2 + $0x40] sm:$0xff] %vm2118_vm3, %v2080_v9  ;;  %2122 = vst.msk [vmem:[#allocation2 + $0x60] sm:$0xff] %vm2118_vm3, %v2080_v9  ;;  %2298 = vrot.lane.b32.xlu1 %v1923_v0, %s4665_s11  ;;  %v1864_v39 = vadd.f32 %v5935_v57, %v1796_v58 }
 0x2c9   :  { %2559 = vst.msk [vmem:[#allocation2 + $0x198] sm:$0xff] %vm2118_vm3, %v2080_v9  ;;  %2560 = vst.msk [vmem:[#allocation2 + $0x1b8] sm:$0xff] %vm2118_vm3, %v2080_v9 }
 0x2ca   :  { %2561 = vst.msk [vmem:[#allocation2 + $0x1d8] sm:$0xff] %vm2118_vm3, %v2080_v9  ;;  %2562 = vst.msk [vmem:[#allocation2 + $0x1f8] sm:$0xff] %vm2118_vm3, %v2080_v9  ;;  %v7643_v9 = vld [vmem:[#allocation20_spill] sm:$0xff]  ;;  %v1928_v40 = vmax.f32 %v1864_v39, 0.0  ;;  %v4586_v39 = vld [vmem:[%s7292_s2 + $0xf0] sm:$0xff]  }
 0x2cb   :  { %2166 = vst.msk [vmem:[#allocation2] sm:$0xff] %vm2165_vm4, %v6384_v35  ;;  %2167 = vst.msk [vmem:[#allocation2 + $0x20] sm:$0xff] %vm2165_vm4, %v6384_v35  ;;  %v1794_v26 = vmul.f32 %v5928_v5, %v7643_v9  ;;  %2222 = vrot.lane.b32.xlu0 %v1934_v15, %s4664_s0  ;;  %v1798_v9 = vmul.f32 %v5928_v5, %v7646_v11  ;;  %v1808_v15 = vmul.f32 %v5928_v5, %v7647_v53 }
 0x2cc   :  { %2168 = vst.msk [vmem:[#allocation2 + $0x40] sm:$0xff] %vm2165_vm4, %v6384_v35  ;;  %2169 = vst.msk [vmem:[#allocation2 + $0x60] sm:$0xff] %vm2165_vm4, %v6384_v35  ;;  %2362 = vrot.lane.b32.xlu1 %v1924_v28, %s4666_s12  ;;  %v1874_v28 = vadd.f32 %v5935_v57, %v1806_v45  ;;  %v1941_v5 = vmax.f32 %v6343_v23, 0.0  ;;  %v1942_v23 = vmax.f32 %v6007_v21, 0.0  ;;  %v1954_v21 = vmax.f32 %v6044_v49, 0.0  ;;  %v4587_v45 = vld [vmem:[%s7292_s2 + $0xb0] sm:$0xff]  }
 0x2cd   :  { %2575 = vst.msk [vmem:[#allocation2 + $0x198] sm:$0xff] %vm2165_vm4, %v6384_v35  ;;  %2576 = vst.msk [vmem:[#allocation2 + $0x1b8] sm:$0xff] %vm2165_vm4, %v6384_v35  ;;  %v1862_v16 = vadd.f32 %v5935_v57, %v1794_v26  ;;  %v1866_v26 = vadd.f32 %v5935_v57, %v1798_v9  ;;  %v1948_v49 = vmax.f32 %v6026_v4, 0.0  ;;  %v1966_v4 = vmax.f32 %v6080_v22, 0.0 }
 0x2ce   :  { %2577 = vst.msk [vmem:[#allocation2 + $0x1d8] sm:$0xff] %vm2165_vm4, %v6384_v35  ;;  %2578 = vst.msk [vmem:[#allocation2 + $0x1f8] sm:$0xff] %vm2165_vm4, %v6384_v35  ;;  %v1973_v53 = vmax.f32 %v5938_v52, 0.0 }
 0x2cf   :  { %v1926_v0 = vmax.f32 %v1862_v16, 0.0  ;;  %v1932_v16 = vmax.f32 %v6323_v46, 0.0  ;;  %v1950_v46 = vmax.f32 %v6034_v54, 0.0  ;;  %v1956_v54 = vmax.f32 %v6047_v19, 0.0 }
 0x2d0   :  { %2224 = vrot.lane.b32.xlu1 %v1936_v50, %s4664_s0  ;;  %v1949_v19 = vmax.f32 %v6031_v30, 0.0  ;;  %v1960_v30 = vmax.f32 %v6058_v37, 0.0 }
 0x2d1   :  { %2013 = vrot.lane.b32.xlu0 %v1926_v0, %s4664_s0  ;;  %v1972_v0 = vmax.f32 %v6092_v48, 0.0  ;;  %v4588_v48 = vld [vmem:[%s7292_s2 + $0xe8] sm:$0xff]  }
 0x2d4   :  { %2015 = vrot.lane.b32.xlu1 %v1928_v40, %s4664_s0 }
 0x2d5   :  { %2302 = vrot.lane.b32.xlu0 %v6305_v56, %s4665_s11  ;;  %v1938_v56 = vmax.f32 %v1874_v28, 0.0  ;;  %v1964_v28 = vmax.f32 %v6073_v51, 0.0  ;;  %v2587_v51 = vld [vmem:[#allocation2 + $0x40] sm:$0xff] }
 0x2d8   :  { %2304 = vrot.lane.b32.xlu1 %v6311_v20, %s4665_s11  ;;  %v1930_v20 = vmax.f32 %v1866_v26, 0.0  ;;  %v2591_v26 = vld [vmem:[#allocation2 + $0x60] sm:$0xff] }
 0x2d9   :  { %2081 = vrot.lane.b32.xlu0 %v6313_v3, %s4665_s11  ;;  %v1876_v3 = vadd.f32 %v5935_v57, %v1808_v15  ;;  %v1933_v57 = vmax.f32 %v6347_v13, 0.0  ;;  %v1944_v13 = vmax.f32 %v6010_v41, 0.0  ;;  %v1946_v41 = vmax.f32 %v6023_v59, 0.0 }
 0x2da   :  { %v1957_v59 = vmax.f32 %v6052_v10, 0.0  ;;  %v1958_v10 = vmax.f32 %v6055_v43, 0.0  ;;  %v2647_v52 = vpack.c.bf16 %v2591_v26, %v2587_v51  ;;  %v4646_v51 = vld [vmem:[%s7290_s7 + $0x20] sm:$0xff] }
 0x2dc   :  { %2083 = vrot.lane.b32.xlu1 %v6315_v31, %s4665_s11  ;;  %v1940_v31 = vmax.f32 %v1876_v3, 0.0 }
 0x2dd   :  { %2364 = vrot.lane.b32.xlu0 %v1936_v50, %s4666_s12  ;;  %v4585_v50 = vld [vmem:[%s7292_s2 + $0xb8] sm:$0xff]  }
 0x2e0   :  { %2366 = vrot.lane.b32.xlu1 %v1938_v56, %s4666_s12 }
 0x2e1   :  { %2137 = vrot.lane.b32.xlu0 %v1928_v40, %s4666_s12 }
 0x2e4   :  { %2139 = vrot.lane.b32.xlu1 %v1930_v20, %s4666_s12 }
 0x2e5   :  { %2226 = vrot.lane.b32.xlu0 %v1938_v56, %s4664_s0  ;;  %v4589_v56 = vld [vmem:[%s7292_s2 + $0xa8] sm:$0xff]  }
 0x2e8   :  { %2228 = vrot.lane.b32.xlu1 %v1940_v31, %s4664_s0 }
 0x2e9   :  { %2017 = vrot.lane.b32.xlu0 %v1930_v20, %s4664_s0 }
 0x2ec   :  { %2019 = vrot.lane.b32.xlu1 %v1932_v16, %s4664_s0 }
 0x2ed   :  { %2306 = vrot.lane.b32.xlu0 %v6349_v38, %s4665_s11  ;;  %v1952_v38 = vmax.f32 %v6037_v34, 0.0  ;;  %v4584_v34 = vld [vmem:[%s7292_s2 + $0xf8] sm:$0xff]  }
 0x2ee   :  { %4291 = vmatprep.subr.bf16.mxu1 %v4584_v34  ;;  %v1976_v34 = vmax.f32 %v6100_v12, 0.0  ;;  %v7648_v12 = vmax.f32 %v6160_v44, 0.0  ;;  %v4599_v44 = vld [vmem:[%s7292_s2 + $0x80] sm:$0xff]  }
 0x2f0   :  { %2308 = vrot.lane.b32.xlu1 %v1941_v5, %s4665_s11 }
 0x2f1   :  { %2085 = vrot.lane.b32.xlu0 %v6353_v14, %s4665_s11  ;;  %v2579_v14 = vld [vmem:[#allocation2] sm:$0xff] }
 0x2f4   :  { %2087 = vrot.lane.b32.xlu1 %v1933_v57, %s4665_s11  ;;  %v4592_v57 = vld [vmem:[%s7292_s2 + $0xd8] sm:$0xff]  }
 0x2f5   :  { %2368 = vrot.lane.b32.xlu0 %v1940_v31, %s4666_s12  ;;  %v4590_v31 = vld [vmem:[%s7292_s2 + $0xe0] sm:$0xff]  }
 0x2f8   :  { %2141 = vrot.lane.b32.xlu1 %v1932_v16, %s4666_s12 }
 0x2f9   :  { %2230 = vrot.lane.b32.xlu0 %v1950_v46, %s4664_s0  ;;  %v1965_v46 = vmax.f32 %v6077_v47, 0.0  ;;  %v4594_v47 = vld [vmem:[%s7292_s2 + $0xd0] sm:$0xff]  }
 0x2fc   :  { %2232 = vrot.lane.b32.xlu1 %v1952_v38, %s4664_s0 }
 0x2fd   :  { %2021 = vrot.lane.b32.xlu0 %v1942_v23, %s4664_s0 }
 0x300   :  { %2023 = vrot.lane.b32.xlu1 %v1944_v13, %s4664_s0 }
 0x301   :  { %2310 = vrot.lane.b32.xlu0 %v6135_v17, %s4665_s11  ;;  %v1970_v17 = vmax.f32 %v6089_v42, 0.0 }
 0x304   :  { %2312 = vrot.lane.b32.xlu1 %v6137_v29, %s4665_s11 }
 0x305   :  { %2089 = vrot.lane.b32.xlu0 %v6118_v18, %s4665_s11  ;;  %v1968_v18 = vmax.f32 %v6083_v62, 0.0 }
 0x308   :  { %2091 = vrot.lane.b32.xlu1 %v6120_v6, %s4665_s11 }
 0x309   :  { %2370 = vrot.lane.b32.xlu0 %v1952_v38, %s4666_s12 }
 0x30c   :  { %2372 = vrot.lane.b32.xlu1 %v1954_v21, %s4666_s12 }
 0x30d   :  { %2143 = vrot.lane.b32.xlu0 %v1944_v13, %s4666_s12 }
 0x310   :  { %2145 = vrot.lane.b32.xlu1 %v1946_v41, %s4666_s12 }
 0x311   :  { %2234 = vrot.lane.b32.xlu0 %v1954_v21, %s4664_s0  ;;  %v1974_v21 = vmax.f32 %v6097_v63, 0.0  ;;  %v4596_v63 = vld [vmem:[%s7292_s2 + $0xc8] sm:$0xff]  }
 0x314   :  { %2236 = vrot.lane.b32.xlu1 %v1956_v54, %s4664_s0 }
 0x315   :  { %2025 = vrot.lane.b32.xlu0 %v1946_v41, %s4664_s0 }
 0x318   :  { %2027 = vrot.lane.b32.xlu1 %v1948_v49, %s4664_s0 }
 0x319   :  { %2314 = vrot.lane.b32.xlu0 %v6153_v60, %s4665_s11 }
 0x31c   :  { %2316 = vrot.lane.b32.xlu1 %v1957_v59, %s4665_s11 }
 0x31d   :  { %2093 = vrot.lane.b32.xlu0 %v6128_v36, %s4665_s11 }
 0x320   :  { %2095 = vrot.lane.b32.xlu1 %v1949_v19, %s4665_s11  ;;  %v4597_v19 = vld [vmem:[%s7292_s2 + $0x88] sm:$0xff]  }
 0x321   :  { %2374 = vrot.lane.b32.xlu0 %v1956_v54, %s4666_s12  ;;  %v4595_v54 = vld [vmem:[%s7292_s2 + $0x90] sm:$0xff]  }
 0x324   :  { %2147 = vrot.lane.b32.xlu1 %v1948_v49, %s4666_s12 }
 0x325   :  { %2238 = vrot.lane.b32.xlu0 %v1966_v4, %s4664_s0  ;;  %v4598_v4 = vld [vmem:[%s7292_s2 + $0xc0] sm:$0xff]  }
 0x328   :  { %2240 = vrot.lane.b32.xlu1 %v1968_v18, %s4664_s0 }
 0x329   :  { %2029 = vrot.lane.b32.xlu0 %v1958_v10, %s4664_s0  ;;  %v2215_v36 = vpop.permute.xlu0 %2214 }
 0x32a   :  { %v2217_v6 = vpop.permute.xlu1 %2216  ;;  %2262 = vst.msk [vmem:[#allocation2 + $0x8] sm:$0xff] %vm2050_vm2, %v2215_v36 }
 0x32b   :  { %2263 = vst.msk [vmem:[#allocation2 + $0x28] sm:$0xff] %vm2050_vm2, %v2217_v6  ;;  %v1978_v6 = vmax.f32 %v6108_v8, 0.0  ;;  %v7650_v8 = vld [vmem:[#allocation28_spill] sm:$0xff] }
 0x32c   :  { %2031 = vrot.lane.b32.xlu1 %v1960_v30, %s4664_s0 }
 0x32d   :  { %2318 = vrot.lane.b32.xlu0 %v6189_v7, %s4665_s11  ;;  %v2297_v43 = vpop.permute.xlu0 %2296 }
 0x32e   :  { %v2295_v22 = vpop.permute.xlu1 %2294  ;;  %2343 = vst.msk [vmem:[#allocation2 + $0x28] sm:$0xff] %vm2118_vm3, %v2297_v43 }
 0x32f   :  { %2342 = vst.msk [vmem:[#allocation2 + $0x8] sm:$0xff] %vm2118_vm3, %v2295_v22 }
 0x330   :  { %2320 = vrot.lane.b32.xlu1 %v6191_v1, %s4665_s11 }
 0x331   :  { %2097 = vrot.lane.b32.xlu0 %v6165_v61, %s4665_s11  ;;  %v2359_v62 = vpop.permute.xlu0 %2358  ;;  %v1962_v61 = vmax.f32 %v6070_v32, 0.0 }
 0x332   :  { %v2361_v37 = vpop.permute.xlu1 %2360  ;;  %2394 = vst.msk [vmem:[#allocation2 + $0x8] sm:$0xff] %vm2165_vm4, %v2359_v62  ;;  %v1980_v62 = vmax.f32 %v7650_v8, 0.0 }
 0x333   :  { %2395 = vst.msk [vmem:[#allocation2 + $0x28] sm:$0xff] %vm2165_vm4, %v2361_v37 }
 0x334   :  { %2099 = vrot.lane.b32.xlu1 %v6167_v25, %s4665_s11  ;;  %v2583_v25 = vld [vmem:[#allocation2 + $0x20] sm:$0xff] }
 0x335   :  { %2376 = vrot.lane.b32.xlu0 %v1968_v18, %s4666_s12  ;;  %v2221_v60 = vpop.permute.xlu0 %2220  ;;  %v2643_v32 = vpack.c.bf16 %v2583_v25, %v2579_v14  ;;  %v7653_v25 = vld [vmem:[#allocation31_spill] sm:$0xff] }
 0x336   :  { %v2219_v29 = vpop.permute.xlu1 %2218  ;;  %2265 = vst.msk [vmem:[#allocation2 + $0x68] sm:$0xff] %vm2050_vm2, %v2221_v60 }
 0x337   :  { %2264 = vst.msk [vmem:[#allocation2 + $0x48] sm:$0xff] %vm2050_vm2, %v2219_v29 }
 0x338   :  { %2378 = vrot.lane.b32.xlu1 %v1970_v17, %s4666_s12 }
 0x339   :  { %2149 = vrot.lane.b32.xlu0 %v1960_v30, %s4666_s12  ;;  %v2301_v27 = vpop.permute.xlu0 %2300  ;;  %v2580_v42 = vld [vmem:[#allocation2 + $0x8] sm:$0xff]  ;;  %v7649_v30 = vmax.f32 %v6163_v2, 0.0 }
 0x33a   :  { %v2299_v7 = vpop.permute.xlu1 %2298  ;;  %v2584_v1 = vld [vmem:[#allocation2 + $0x28] sm:$0xff]  ;;  %2345 = vst.msk [vmem:[#allocation2 + $0x68] sm:$0xff] %vm2118_vm3, %v2301_v27  ;;  %v1981_v27 = vmax.f32 %v7653_v25, 0.0 }
 0x33b   :  { %2344 = vst.msk [vmem:[#allocation2 + $0x48] sm:$0xff] %vm2118_vm3, %v2299_v7  ;;  %v2644_v58 = vpack.c.bf16 %v2584_v1, %v2580_v42  ;;  %v7651_v1 = vld [vmem:[#allocation33_spill] sm:$0xff] }
 0x33c   :  { %2151 = vrot.lane.b32.xlu1 %v1962_v61, %s4666_s12  ;;  %2397 = vst.msk [vmem:[#allocation2 + $0x68] sm:$0xff] %vm2165_vm4, %v6384_v35  ;;  %v7652_v14 = vmax.f32 %v7651_v1, 0.0 }
 0x33d   :  { %2242 = vrot.lane.b32.xlu0 %v1970_v17, %s4664_s0  ;;  %2963 = vmatprep.mubr.bf16.mxu1 %v2644_v58  ;;  %v2223_v33 = vpop.permute.xlu0 %2222 }
 0x33e   :  { %v2363_v40 = vpop.permute.xlu1 %2362  ;;  %2964 = vmatmul.mubr.bf16.vlgmr.msra.gmra.mxu1 %v2643_v32  ;;  %2266 = vst.msk [vmem:[#allocation2 + $0x88] sm:$0xff] %vm2050_vm2, %v2223_v33  ;;  %2531 = vst.msk [vmem:[#allocation2 + $0x18] sm:$0xff] %vm2050_vm2, %v2223_v33 }
 0x33f   :  { %2396 = vst.msk [vmem:[#allocation2 + $0x48] sm:$0xff] %vm2165_vm4, %v2363_v40  ;;  %4292 = vmatpush3.bf16.msra.mxu1 %v4585_v50 }
 0x340   :  { %2244 = vrot.lane.b32.xlu1 %v1972_v0, %s4664_s0  ;;  %4293 = vmatprep.subr.bf16.mxu1 %v4586_v39  ;;  %v4642_v39 = vld [vmem:[%s7290_s7] sm:$0xff] }
 0x341   :  { %2033 = vrot.lane.b32.xlu0 %v1962_v61, %s4664_s0 }
 0x342   :  { %v2225_v11 = vpop.permute.xlu1 %2224 }
 0x343   :  { %2267 = vst.msk [vmem:[#allocation2 + $0xa8] sm:$0xff] %vm2050_vm2, %v2225_v11  ;;  %2532 = vst.msk [vmem:[#allocation2 + $0x38] sm:$0xff] %vm2050_vm2, %v2225_v11  ;;  %v2014_v9 = vpop.permute.xlu0 %2013  ;;  %4294 = vmatpush3.bf16.msra.mxu1 %v4587_v45  ;;  %v2592_v3 = vld [vmem:[#allocation2 + $0x68] sm:$0xff]  ;;  %v4644_v45 = vld [vmem:[%s7290_s7 + $0x10] sm:$0xff] }
 0x344   :  { %2055 = vst.msk [vmem:[#allocation2 + $0x80] sm:$0xff] %vm2050_vm2, %v2014_v9  ;;  %2442 = vst.msk [vmem:[#allocation2 + $0x10] sm:$0xff] %vm2050_vm2, %v2014_v9  ;;  %2035 = vrot.lane.b32.xlu1 %v1964_v28, %s4664_s0  ;;  %4295 = vmatprep.subr.bf16.mxu1 %v4588_v48  ;;  %v4645_v48 = vld [vmem:[%s7290_s7 + $0x18] sm:$0xff] }
 0x345   :  { %2322 = vrot.lane.b32.xlu0 %v6208_v55, %s4665_s11  ;;  %v4591_v55 = vld [vmem:[%s7292_s2 + $0xa0] sm:$0xff]  }
 0x346   :  { %v2016_v15 = vpop.permute.xlu1 %2015  ;;  %v2588_v20 = vld [vmem:[#allocation2 + $0x48] sm:$0xff] }
 0x347   :  { %2056 = vst.msk [vmem:[#allocation2 + $0xa0] sm:$0xff] %vm2050_vm2, %v2016_v15  ;;  %2443 = vst.msk [vmem:[#allocation2 + $0x30] sm:$0xff] %vm2050_vm2, %v2016_v15  ;;  %v2303_v16 = vpop.permute.xlu0 %2302  ;;  %v2648_v5 = vpack.c.bf16 %v2592_v3, %v2588_v20  ;;  %4296 = vmatpush3.bf16.msra.mxu1 %v4589_v56 }
 0x348   :  { %2346 = vst.msk [vmem:[#allocation2 + $0x88] sm:$0xff] %vm2118_vm3, %v2303_v16  ;;  %2547 = vst.msk [vmem:[#allocation2 + $0x18] sm:$0xff] %vm2118_vm3, %v2303_v16  ;;  %2324 = vrot.lane.b32.xlu1 %v1973_v53, %s4665_s11  ;;  %4297 = vmatprep.subr.bf16.mxu1 %v4590_v31  ;;  %v4647_v53 = vld [vmem:[%s7290_s7 + $0x28] sm:$0xff] }
 0x349   :  { %2101 = vrot.lane.b32.xlu0 %v6180_v24, %s4665_s11  ;;  %2971 = vmatprep.mubr.bf16.mxu1 %v2648_v5  ;;  %v4593_v24 = vld [vmem:[%s7292_s2 + $0x98] sm:$0xff]   ;;  %v4648_v5 = vld [vmem:[%s7290_s7 + $0x30] sm:$0xff] }
 0x34a   :  { %v2305_v38 = vpop.permute.xlu1 %2304  ;;  %2972 = vmatmul.mubr.bf16.gmra.mxu1 %v2647_v52  ;;  %v4649_v52 = vld [vmem:[%s7290_s7 + $0x38] sm:$0xff] }
 0x34b   :  { %2347 = vst.msk [vmem:[#allocation2 + $0xa8] sm:$0xff] %vm2118_vm3, %v2305_v38  ;;  %2548 = vst.msk [vmem:[#allocation2 + $0x38] sm:$0xff] %vm2118_vm3, %v2305_v38  ;;  %v2082_v23 = vpop.permute.xlu0 %2081  ;;  %4298 = vmatpush3.bf16.msra.mxu1 %v4591_v55  ;;  %v4651_v38 = vld [vmem:[%s7290_s7 + $0x48] sm:$0xff] }
 0x34c   :  { %2123 = vst.msk [vmem:[#allocation2 + $0x80] sm:$0xff] %vm2118_vm3, %v2082_v23  ;;  %2474 = vst.msk [vmem:[#allocation2 + $0x10] sm:$0xff] %vm2118_vm3, %v2082_v23  ;;  %2103 = vrot.lane.b32.xlu1 %v1965_v46, %s4665_s11  ;;  %4299 = vmatprep.subr.bf16.mxu1 %v4592_v57  ;;  %v4650_v46 = vld [vmem:[%s7290_s7 + $0x40] sm:$0xff] }
 0x34d   :  { %2380 = vrot.lane.b32.xlu0 %v1972_v0, %s4666_s12  ;;  %v4643_v0 = vld [vmem:[%s7290_s7 + $0x8] sm:$0xff] }
 0x34e   :  { %v2084_v13 = vpop.permute.xlu1 %2083 }
 0x34f   :  { %2124 = vst.msk [vmem:[#allocation2 + $0xa0] sm:$0xff] %vm2118_vm3, %v2084_v13  ;;  %2475 = vst.msk [vmem:[#allocation2 + $0x30] sm:$0xff] %vm2118_vm3, %v2084_v13  ;;  %v2365_v41 = vpop.permute.xlu0 %2364  ;;  %4300 = vmatpush3.bf16.msra.mxu1 %v4593_v24  ;;  %v4653_v13 = vld [vmem:[%s7290_s7 + $0x58] sm:$0xff] }
 0x350   :  { %2398 = vst.msk [vmem:[#allocation2 + $0x88] sm:$0xff] %vm2165_vm4, %v2365_v41  ;;  %2563 = vst.msk [vmem:[#allocation2 + $0x18] sm:$0xff] %vm2165_vm4, %v2365_v41  ;;  %2153 = vrot.lane.b32.xlu1 %v1964_v28, %s4666_s12  ;;  %4301 = vmatprep.subr.bf16.mxu1 %v4594_v47  ;;  %v4652_v47 = vld [vmem:[%s7290_s7 + $0x50] sm:$0xff] }
 0x351   :  { %2430 = vrot.lane.b32.xlu0 %v1974_v21, %s4664_s0 }
 0x352   :  { %v2367_v49 = vpop.permute.xlu1 %2366 }
 0x353   :  { %2399 = vst.msk [vmem:[#allocation2 + $0xa8] sm:$0xff] %vm2165_vm4, %v2367_v49  ;;  %2564 = vst.msk [vmem:[#allocation2 + $0x38] sm:$0xff] %vm2165_vm4, %v2367_v49  ;;  %v2138_v59 = vpop.permute.xlu0 %2137  ;;  %4302 = vmatpush3.bf16.msra.mxu1 %v4595_v54  ;;  %v4654_v54 = vld [vmem:[%s7290_s7 + $0x60] sm:$0xff] }
 0x354   :  { %2170 = vst.msk [vmem:[#allocation2 + $0x80] sm:$0xff] %vm2165_vm4, %v2138_v59  ;;  %2499 = vst.msk [vmem:[#allocation2 + $0x10] sm:$0xff] %vm2165_vm4, %v2138_v59  ;;  %2432 = vrot.lane.b32.xlu1 %v1976_v34, %s4664_s0  ;;  %4303 = vmatprep.subr.bf16.mxu1 %v4596_v63  ;;  %v4655_v63 = vld [vmem:[%s7290_s7 + $0x68] sm:$0xff]  ;;  %v4656_v59 = vld [vmem:[%s7290_s7 + $0x70] sm:$0xff] }
 0x355   :  { %2462 = vrot.lane.b32.xlu0 %v7648_v12, %s4665_s11 }
 0x356   :  { %v2140_v18 = vpop.permute.xlu1 %2139 }
 0x357   :  { %2171 = vst.msk [vmem:[#allocation2 + $0xa0] sm:$0xff] %vm2165_vm4, %v2140_v18  ;;  %2500 = vst.msk [vmem:[#allocation2 + $0x30] sm:$0xff] %vm2165_vm4, %v2140_v18  ;;  %v2227_v10 = vpop.permute.xlu0 %2226  ;;  %4304 = vmatpush3.bf16.msra.mxu1 %v4597_v19  ;;  %v2596_v22 = vld [vmem:[#allocation2 + $0x88] sm:$0xff]  ;;  %v4657_v19 = vld [vmem:[%s7290_s7 + $0x78] sm:$0xff] }
 0x358   :  { %2268 = vst.msk [vmem:[#allocation2 + $0xc8] sm:$0xff] %vm2050_vm2, %v2227_v10  ;;  %2533 = vst.msk [vmem:[#allocation2 + $0x58] sm:$0xff] %vm2050_vm2, %v2227_v10  ;;  %2464 = vrot.lane.b32.xlu1 %v7649_v30, %s4665_s11  ;;  %4305 = vmatprep.subr.bf16.mxu1 %v4598_v4 }
 0x359   :  { %2490 = vrot.lane.b32.xlu0 %v1976_v34, %s4666_s12 }
 0x35a   :  { %v2229_v36 = vpop.permute.xlu1 %2228  ;;  %v2600_v43 = vld [vmem:[#allocation2 + $0xa8] sm:$0xff] }
 0x35b   :  { %2269 = vst.msk [vmem:[#allocation2 + $0xe8] sm:$0xff] %vm2050_vm2, %v2229_v36  ;;  %2534 = vst.msk [vmem:[#allocation2 + $0x78] sm:$0xff] %vm2050_vm2, %v2229_v36  ;;  %v2018_v37 = vpop.permute.xlu0 %2017  ;;  %v2652_v2 = vpack.c.bf16 %v2600_v43, %v2596_v22  ;;  %4306 = vmatpush3.bf16.msra.mxu1 %v4599_v44  ;;  %v2595_v29 = vld [vmem:[#allocation2 + $0x80] sm:$0xff] }
 0x35c   :  { %2057 = vst.msk [vmem:[#allocation2 + $0xc0] sm:$0xff] %vm2050_vm2, %v2018_v37  ;;  %2444 = vst.msk [vmem:[#allocation2 + $0x50] sm:$0xff] %vm2050_vm2, %v2018_v37  ;;  %2492 = vrot.lane.b32.xlu1 %v1978_v6, %s4666_s12 }
 0x35d   :  { %2434 = vrot.lane.b32.xlu0 %v1978_v6, %s4664_s0  ;;  %2979 = vmatprep.mubr.bf16.mxu1 %v2652_v2 }
 0x35e   :  { %v2020_v17 = vpop.permute.xlu1 %2019  ;;  %v2599_v60 = vld [vmem:[#allocation2 + $0xa0] sm:$0xff] }
 0x35f   :  { %2058 = vst.msk [vmem:[#allocation2 + $0xe0] sm:$0xff] %vm2050_vm2, %v2020_v17  ;;  %2445 = vst.msk [vmem:[#allocation2 + $0x70] sm:$0xff] %vm2050_vm2, %v2020_v17  ;;  %v2307_v61 = vpop.permute.xlu0 %2306  ;;  %v2651_v7 = vpack.c.bf16 %v2599_v60, %v2595_v29 }
 0x360   :  { %2348 = vst.msk [vmem:[#allocation2 + $0xc8] sm:$0xff] %vm2118_vm3, %v2307_v61  ;;  %2549 = vst.msk [vmem:[#allocation2 + $0x58] sm:$0xff] %vm2118_vm3, %v2307_v61  ;;  %2436 = vrot.lane.b32.xlu1 %v1980_v62, %s4664_s0 }
 0x361   :  { %2466 = vrot.lane.b32.xlu0 %v7652_v14, %s4665_s11  ;;  %2980 = vmatmul.mubr.bf16.gmra.mxu1 %v2651_v7 }
 0x362   :  { %v2309_v42 = vpop.permute.xlu1 %2308 }
 0x363   :  { %2349 = vst.msk [vmem:[#allocation2 + $0xe8] sm:$0xff] %vm2118_vm3, %v2309_v42  ;;  %2550 = vst.msk [vmem:[#allocation2 + $0x78] sm:$0xff] %vm2118_vm3, %v2309_v42  ;;  %v2086_v58 = vpop.permute.xlu0 %2085 }
 0x364   :  { %2401 = vst.msk [vmem:[#allocation2 + $0xe8] sm:$0xff] %vm2165_vm4, %v6384_v35  ;;  %2566 = vst.msk [vmem:[#allocation2 + $0x78] sm:$0xff] %vm2165_vm4, %v6384_v35  ;;  %2468 = vrot.lane.b32.xlu1 %v1981_v27, %s4665_s11 }
 0x365   :  { %2125 = vst.msk [vmem:[#allocation2 + $0xc0] sm:$0xff] %vm2118_vm3, %v2086_v58  ;;  %2476 = vst.msk [vmem:[#allocation2 + $0x50] sm:$0xff] %vm2118_vm3, %v2086_v58  ;;  %2494 = vrot.lane.b32.xlu0 %v1980_v62, %s4666_s12 }
 0x366   :  { %v2088_v50 = vpop.permute.xlu1 %2087 }
 0x367   :  { %2126 = vst.msk [vmem:[#allocation2 + $0xe0] sm:$0xff] %vm2118_vm3, %v2088_v50  ;;  %2477 = vst.msk [vmem:[#allocation2 + $0x70] sm:$0xff] %vm2118_vm3, %v2088_v50  ;;  %v2369_v32 = vpop.permute.xlu0 %2368 }
 0x368   :  { %2173 = vst.msk [vmem:[#allocation2 + $0xe0] sm:$0xff] %vm2165_vm4, %v6384_v35  ;;  %2502 = vst.msk [vmem:[#allocation2 + $0x70] sm:$0xff] %vm2165_vm4, %v6384_v35  ;;  %3127 = vperm.xlu1 %4459, %v4642_v39  }
 0x369   :  { %2400 = vst.msk [vmem:[#allocation2 + $0xc8] sm:$0xff] %vm2165_vm4, %v2369_v32  ;;  %2565 = vst.msk [vmem:[#allocation2 + $0x58] sm:$0xff] %vm2165_vm4, %v2369_v32  ;;  %3131 = vperm.xlu0 %4458, %v4643_v0  }
 0x36a   :  { %v2142_v40 = vpop.permute.xlu1 %2141 }
 0x36b   :  { %2172 = vst.msk [vmem:[#allocation2 + $0xc0] sm:$0xff] %vm2165_vm4, %v2142_v40  ;;  %2501 = vst.msk [vmem:[#allocation2 + $0x50] sm:$0xff] %vm2165_vm4, %v2142_v40  ;;  %v2231_v33 = vpop.permute.xlu0 %2230  ;;  %v2608_v56 = vld [vmem:[#allocation2 + $0xe8] sm:$0xff] }
 0x36c   :  { %2270 = vst.msk [vmem:[#allocation2 + $0x108] sm:$0xff] %vm2050_vm2, %v2231_v33  ;;  %2535 = vst.msk [vmem:[#allocation2 + $0x98] sm:$0xff] %vm2050_vm2, %v2231_v33  ;;  %3135 = vperm.xlu1 %4459, %v4644_v45  }
 0x36d   :  { %3139 = vperm.xlu0 %4458, %v4645_v48  }
 0x36e   :  { %v2233_v28 = vpop.permute.xlu1 %2232 }
 0x36f   :  { %2271 = vst.msk [vmem:[#allocation2 + $0x128] sm:$0xff] %vm2050_vm2, %v2233_v28  ;;  %2536 = vst.msk [vmem:[#allocation2 + $0xb8] sm:$0xff] %vm2050_vm2, %v2233_v28  ;;  %v2022_v11 = vpop.permute.xlu0 %2021  ;;  %v2607_v3 = vld [vmem:[#allocation2 + $0xe0] sm:$0xff] }
 0x370   :  { %v2604_v9 = vld [vmem:[#allocation2 + $0xc8] sm:$0xff]  ;;  %2059 = vst.msk [vmem:[#allocation2 + $0x100] sm:$0xff] %vm2050_vm2, %v2022_v11  ;;  %2446 = vst.msk [vmem:[#allocation2 + $0x90] sm:$0xff] %vm2050_vm2, %v2022_v11  ;;  %3143 = vperm.xlu1 %4459, %v4646_v51  }
 0x371   :  { %v2656_v26 = vpack.c.bf16 %v2608_v56, %v2604_v9  ;;  %3147 = vperm.xlu0 %4458, %v4647_v53  }
 0x372   :  { %v2024_v15 = vpop.permute.xlu1 %2023  ;;  %v2603_v20 = vld [vmem:[#allocation2 + $0xc0] sm:$0xff] }
 0x373   :  { %2987 = vmatprep.mubr.bf16.mxu1 %v2656_v26  ;;  %2060 = vst.msk [vmem:[#allocation2 + $0x120] sm:$0xff] %vm2050_vm2, %v2024_v15  ;;  %2447 = vst.msk [vmem:[#allocation2 + $0xb0] sm:$0xff] %vm2050_vm2, %v2024_v15  ;;  %v2311_v31 = vpop.permute.xlu0 %2310  ;;  %v2655_v16 = vpack.c.bf16 %v2607_v3, %v2603_v20 }
 0x374   :  { %2350 = vst.msk [vmem:[#allocation2 + $0x108] sm:$0xff] %vm2118_vm3, %v2311_v31  ;;  %2551 = vst.msk [vmem:[#allocation2 + $0x98] sm:$0xff] %vm2118_vm3, %v2311_v31  ;;  %3151 = vperm.xlu1 %4459, %v4648_v5  }
 0x375   :  { %3155 = vperm.xlu0 %4458, %v4649_v52   ;;  %2988 = vmatmul.mubr.bf16.gmra.mxu1 %v2655_v16 }
 0x376   :  { %v2313_v55 = vpop.permute.xlu1 %2312 }
 0x377   :  { %2351 = vst.msk [vmem:[#allocation2 + $0x128] sm:$0xff] %vm2118_vm3, %v2313_v55  ;;  %2552 = vst.msk [vmem:[#allocation2 + $0xb8] sm:$0xff] %vm2118_vm3, %v2313_v55  ;;  %v2090_v57 = vpop.permute.xlu0 %2089 }
 0x378   :  { %2127 = vst.msk [vmem:[#allocation2 + $0x100] sm:$0xff] %vm2118_vm3, %v2090_v57  ;;  %2478 = vst.msk [vmem:[#allocation2 + $0x90] sm:$0xff] %vm2118_vm3, %v2090_v57  ;;  %3159 = vperm.xlu1 %4459, %v4650_v46  }
 0x379   :  { %3163 = vperm.xlu0 %4458, %v4651_v38  }
 0x37a   :  { %v2092_v23 = vpop.permute.xlu1 %2091 }
 0x37b   :  { %2128 = vst.msk [vmem:[#allocation2 + $0x120] sm:$0xff] %vm2118_vm3, %v2092_v23  ;;  %2479 = vst.msk [vmem:[#allocation2 + $0xb0] sm:$0xff] %vm2118_vm3, %v2092_v23  ;;  %v2371_v24 = vpop.permute.xlu0 %2370 }
 0x37c   :  { %2402 = vst.msk [vmem:[#allocation2 + $0x108] sm:$0xff] %vm2165_vm4, %v2371_v24  ;;  %2567 = vst.msk [vmem:[#allocation2 + $0x98] sm:$0xff] %vm2165_vm4, %v2371_v24  ;;  %3167 = vperm.xlu1 %4459, %v4652_v47  }
 0x37d   :  { %3171 = vperm.xlu0 %4458, %v4653_v13  }
 0x37e   :  { %v2373_v21 = vpop.permute.xlu1 %2372 }
 0x37f   :  { %2403 = vst.msk [vmem:[#allocation2 + $0x128] sm:$0xff] %vm2165_vm4, %v2373_v21  ;;  %2568 = vst.msk [vmem:[#allocation2 + $0xb8] sm:$0xff] %vm2165_vm4, %v2373_v21  ;;  %v2144_v41 = vpop.permute.xlu0 %2143  ;;  %v2586_v21 = vld [vmem:[#allocation2 + $0x38] sm:$0xff] }
 0x380   :  { %2174 = vst.msk [vmem:[#allocation2 + $0x100] sm:$0xff] %vm2165_vm4, %v2144_v41  ;;  %2503 = vst.msk [vmem:[#allocation2 + $0x90] sm:$0xff] %vm2165_vm4, %v2144_v41  ;;  %3175 = vperm.xlu1 %4459, %v4654_v54  }
 0x381   :  { %3179 = vperm.xlu0 %4458, %v4655_v63  }
 0x382   :  { %v2146_v34 = vpop.permute.xlu1 %2145 }
 0x383   :  { %2175 = vst.msk [vmem:[#allocation2 + $0x120] sm:$0xff] %vm2165_vm4, %v2146_v34  ;;  %2504 = vst.msk [vmem:[#allocation2 + $0xb0] sm:$0xff] %vm2165_vm4, %v2146_v34  ;;  %v2235_v49 = vpop.permute.xlu0 %2234  ;;  %v2612_v4 = vld [vmem:[#allocation2 + $0x108] sm:$0xff] }
 0x384   :  { %2272 = vst.msk [vmem:[#allocation2 + $0x148] sm:$0xff] %vm2050_vm2, %v2235_v49  ;;  %2537 = vst.msk [vmem:[#allocation2 + $0xd8] sm:$0xff] %vm2050_vm2, %v2235_v49  ;;  %3183 = vperm.xlu1 %4459, %v4656_v59   ;;  %v2582_v59 = vld [vmem:[#allocation2 + $0x18] sm:$0xff] }
 0x385   :  { %3187 = vperm.xlu0 %4458, %v4657_v19   ;;  %v2646_v19 = vpack.c.bf16 %v2586_v21, %v2582_v59 }
 0x386   :  { %v2237_v12 = vpop.permute.xlu1 %2236  ;;  %v2616_v18 = vld [vmem:[#allocation2 + $0x128] sm:$0xff] }
 0x387   :  { %2273 = vst.msk [vmem:[#allocation2 + $0x168] sm:$0xff] %vm2050_vm2, %v2237_v12  ;;  %2538 = vst.msk [vmem:[#allocation2 + $0xf8] sm:$0xff] %vm2050_vm2, %v2237_v12  ;;  %v2026_v10 = vpop.permute.xlu0 %2025  ;;  %v2660_v30 = vpack.c.bf16 %v2616_v18, %v2612_v4  ;;  %v2611_v6 = vld [vmem:[#allocation2 + $0x100] sm:$0xff]  ;;  %v2585_v18 = vld [vmem:[#allocation2 + $0x30] sm:$0xff] }
 0x388   :  { %2061 = vst.msk [vmem:[#allocation2 + $0x140] sm:$0xff] %vm2050_vm2, %v2026_v10  ;;  %2448 = vst.msk [vmem:[#allocation2 + $0xd0] sm:$0xff] %vm2050_vm2, %v2026_v10  ;;  %v2590_v10 = vld [vmem:[#allocation2 + $0x58] sm:$0xff] }
 0x389   :  { %2995 = vmatprep.mubr.bf16.mxu1 %v2660_v30 }
 0x38a   :  { %v2028_v44 = vpop.permute.xlu1 %2027  ;;  %v2615_v36 = vld [vmem:[#allocation2 + $0x120] sm:$0xff] }
 0x38b   :  { %2062 = vst.msk [vmem:[#allocation2 + $0x160] sm:$0xff] %vm2050_vm2, %v2028_v44  ;;  %2449 = vst.msk [vmem:[#allocation2 + $0xf0] sm:$0xff] %vm2050_vm2, %v2028_v44  ;;  %v2315_v22 = vpop.permute.xlu0 %2314  ;;  %v2659_v43 = vpack.c.bf16 %v2615_v36, %v2611_v6  ;;  %v2581_v44 = vld [vmem:[#allocation2 + $0x10] sm:$0xff] }
 0x38c   :  { %2352 = vst.msk [vmem:[#allocation2 + $0x148] sm:$0xff] %vm2118_vm3, %v2315_v22  ;;  %2553 = vst.msk [vmem:[#allocation2 + $0xd8] sm:$0xff] %vm2118_vm3, %v2315_v22  ;;  %v2645_v36 = vpack.c.bf16 %v2585_v18, %v2581_v44  ;;  %v2594_v22 = vld [vmem:[#allocation2 + $0x78] sm:$0xff] }
 0x38d   :  { %2996 = vmatmul.mubr.bf16.gmra.mxu1 %v2659_v43  ;;  %v2650_v43 = vpack.c.bf16 %v2594_v22, %v2590_v10 }
 0x38e   :  { %v2317_v37 = vpop.permute.xlu1 %2316 }
 0x38f   :  { %2353 = vst.msk [vmem:[#allocation2 + $0x168] sm:$0xff] %vm2118_vm3, %v2317_v37  ;;  %2554 = vst.msk [vmem:[#allocation2 + $0xf8] sm:$0xff] %vm2118_vm3, %v2317_v37  ;;  %v2094_v2 = vpop.permute.xlu0 %2093 }
 0x390   :  { %2405 = vst.msk [vmem:[#allocation2 + $0x168] sm:$0xff] %vm2165_vm4, %v6384_v35  ;;  %2570 = vst.msk [vmem:[#allocation2 + $0xf8] sm:$0xff] %vm2165_vm4, %v6384_v35 }
 0x391   :  { %2129 = vst.msk [vmem:[#allocation2 + $0x140] sm:$0xff] %vm2118_vm3, %v2094_v2  ;;  %2480 = vst.msk [vmem:[#allocation2 + $0xd0] sm:$0xff] %vm2118_vm3, %v2094_v2 }
 0x392   :  { %v2096_v8 = vpop.permute.xlu1 %2095 }
 0x393   :  { %2130 = vst.msk [vmem:[#allocation2 + $0x160] sm:$0xff] %vm2118_vm3, %v2096_v8  ;;  %2481 = vst.msk [vmem:[#allocation2 + $0xf0] sm:$0xff] %vm2118_vm3, %v2096_v8  ;;  %v2375_v62 = vpop.permute.xlu0 %2374  ;;  %v2589_v8 = vld [vmem:[#allocation2 + $0x50] sm:$0xff] }
 0x394   :  { %2177 = vst.msk [vmem:[#allocation2 + $0x160] sm:$0xff] %vm2165_vm4, %v6384_v35  ;;  %2506 = vst.msk [vmem:[#allocation2 + $0xf0] sm:$0xff] %vm2165_vm4, %v6384_v35 }
 0x395   :  { %2404 = vst.msk [vmem:[#allocation2 + $0x148] sm:$0xff] %vm2165_vm4, %v2375_v62  ;;  %2569 = vst.msk [vmem:[#allocation2 + $0xd8] sm:$0xff] %vm2165_vm4, %v2375_v62  ;;  %v2602_v62 = vld [vmem:[#allocation2 + $0xb8] sm:$0xff] }
 0x396   :  { %v2148_v17 = vpop.permute.xlu1 %2147 }
 0x397   :  { %2176 = vst.msk [vmem:[#allocation2 + $0x140] sm:$0xff] %vm2165_vm4, %v2148_v17  ;;  %2505 = vst.msk [vmem:[#allocation2 + $0xd0] sm:$0xff] %vm2165_vm4, %v2148_v17  ;;  %v2239_v29 = vpop.permute.xlu0 %2238  ;;  %v2624_v1 = vld [vmem:[#allocation2 + $0x168] sm:$0xff]  ;;  %v2593_v17 = vld [vmem:[#allocation2 + $0x70] sm:$0xff] }
 0x398   :  { %2274 = vst.msk [vmem:[#allocation2 + $0x188] sm:$0xff] %vm2050_vm2, %v2239_v29  ;;  %2539 = vst.msk [vmem:[#allocation2 + $0x118] sm:$0xff] %vm2050_vm2, %v2239_v29  ;;  %v2649_v29 = vpack.c.bf16 %v2593_v17, %v2589_v8 }
 0x39a   :  { %v2241_v60 = vpop.permute.xlu1 %2240 }
 0x39b   :  { %2275 = vst.msk [vmem:[#allocation2 + $0x1a8] sm:$0xff] %vm2050_vm2, %v2241_v60  ;;  %2540 = vst.msk [vmem:[#allocation2 + $0x138] sm:$0xff] %vm2050_vm2, %v2241_v60  ;;  %v2030_v61 = vpop.permute.xlu0 %2029  ;;  %v2623_v42 = vld [vmem:[#allocation2 + $0x160] sm:$0xff]  ;;  %v2598_v60 = vld [vmem:[#allocation2 + $0x98] sm:$0xff] }
 0x39c   :  { %v2620_v7 = vld [vmem:[#allocation2 + $0x148] sm:$0xff]  ;;  %2063 = vst.msk [vmem:[#allocation2 + $0x180] sm:$0xff] %vm2050_vm2, %v2030_v61  ;;  %2450 = vst.msk [vmem:[#allocation2 + $0x110] sm:$0xff] %vm2050_vm2, %v2030_v61  ;;  %v2654_v61 = vpack.c.bf16 %v2602_v62, %v2598_v60 }
 0x39d   :  { %v2664_v14 = vpack.c.bf16 %v2624_v1, %v2620_v7  ;;  %v2601_v7 = vld [vmem:[#allocation2 + $0xb0] sm:$0xff]  ;;  %v2606_v1 = vld [vmem:[#allocation2 + $0xd8] sm:$0xff] }
 0x39e   :  { %v2032_v25 = vpop.permute.xlu1 %2031  ;;  %v2619_v27 = vld [vmem:[#allocation2 + $0x140] sm:$0xff] }
 0x39f   :  { %3003 = vmatprep.mubr.bf16.mxu1 %v2664_v14  ;;  %2064 = vst.msk [vmem:[#allocation2 + $0x1a0] sm:$0xff] %vm2050_vm2, %v2032_v25  ;;  %2451 = vst.msk [vmem:[#allocation2 + $0x130] sm:$0xff] %vm2050_vm2, %v2032_v25  ;;  %v2319_v58 = vpop.permute.xlu0 %2318  ;;  %v2663_v50 = vpack.c.bf16 %v2623_v42, %v2619_v27  ;;  %v2597_v14 = vld [vmem:[#allocation2 + $0x90] sm:$0xff]  ;;  %v2610_v27 = vld [vmem:[#allocation2 + $0xf8] sm:$0xff] }
 0x3a0   :  { %2354 = vst.msk [vmem:[#allocation2 + $0x188] sm:$0xff] %vm2118_vm3, %v2319_v58  ;;  %2555 = vst.msk [vmem:[#allocation2 + $0x118] sm:$0xff] %vm2118_vm3, %v2319_v58  ;;  %v2653_v25 = vpack.c.bf16 %v2601_v7, %v2597_v14  ;;  %v2658_v42 = vpack.c.bf16 %v2610_v27, %v2606_v1  ;;  %v2605_v58 = vld [vmem:[#allocation2 + $0xd0] sm:$0xff] }
 0x3a1   :  { %3004 = vmatmul.mubr.bf16.gmra.mxu1 %v2663_v50  ;;  %v2609_v50 = vld [vmem:[#allocation2 + $0xf0] sm:$0xff] }
 0x3a2   :  { %v2321_v32 = vpop.permute.xlu1 %2320 }
 0x3a3   :  { %2355 = vst.msk [vmem:[#allocation2 + $0x1a8] sm:$0xff] %vm2118_vm3, %v2321_v32  ;;  %2556 = vst.msk [vmem:[#allocation2 + $0x138] sm:$0xff] %vm2118_vm3, %v2321_v32  ;;  %v2098_v39 = vpop.permute.xlu0 %2097  ;;  %v2657_v32 = vpack.c.bf16 %v2609_v50, %v2605_v58 }
 0x3a4   :  { %2131 = vst.msk [vmem:[#allocation2 + $0x180] sm:$0xff] %vm2118_vm3, %v2098_v39  ;;  %2482 = vst.msk [vmem:[#allocation2 + $0x110] sm:$0xff] %vm2118_vm3, %v2098_v39 }
 0x3a6   :  { %v2100_v0 = vpop.permute.xlu1 %2099 }
 0x3a7   :  { %2132 = vst.msk [vmem:[#allocation2 + $0x1a0] sm:$0xff] %vm2118_vm3, %v2100_v0  ;;  %2483 = vst.msk [vmem:[#allocation2 + $0x130] sm:$0xff] %vm2118_vm3, %v2100_v0  ;;  %v2377_v40 = vpop.permute.xlu0 %2376 }
 0x3a8   :  { %2406 = vst.msk [vmem:[#allocation2 + $0x188] sm:$0xff] %vm2165_vm4, %v2377_v40  ;;  %2571 = vst.msk [vmem:[#allocation2 + $0x118] sm:$0xff] %vm2165_vm4, %v2377_v40 }
 0x3aa   :  { %v2379_v33 = vpop.permute.xlu1 %2378 }
 0x3ab   :  { %2407 = vst.msk [vmem:[#allocation2 + $0x1a8] sm:$0xff] %vm2165_vm4, %v2379_v33  ;;  %2572 = vst.msk [vmem:[#allocation2 + $0x138] sm:$0xff] %vm2165_vm4, %v2379_v33  ;;  %v2150_v45 = vpop.permute.xlu0 %2149 }
 0x3ac   :  { %2178 = vst.msk [vmem:[#allocation2 + $0x180] sm:$0xff] %vm2165_vm4, %v2150_v45  ;;  %2507 = vst.msk [vmem:[#allocation2 + $0x110] sm:$0xff] %vm2165_vm4, %v2150_v45 }
 0x3ae   :  { %v2152_v48 = vpop.permute.xlu1 %2151 }
 0x3af   :  { %2179 = vst.msk [vmem:[#allocation2 + $0x1a0] sm:$0xff] %vm2165_vm4, %v2152_v48  ;;  %2508 = vst.msk [vmem:[#allocation2 + $0x130] sm:$0xff] %vm2165_vm4, %v2152_v48  ;;  %v2243_v28 = vpop.permute.xlu0 %2242  ;;  %v2628_v9 = vld [vmem:[#allocation2 + $0x188] sm:$0xff]  ;;  %v2614_v39 = vld [vmem:[#allocation2 + $0x118] sm:$0xff] }
 0x3b0   :  { %2276 = vst.msk [vmem:[#allocation2 + $0x1c8] sm:$0xff] %vm2050_vm2, %v2243_v28  ;;  %2541 = vst.msk [vmem:[#allocation2 + $0x158] sm:$0xff] %vm2050_vm2, %v2243_v28 }
 0x3b2   :  { %v2245_v11 = vpop.permute.xlu1 %2244  ;;  %v2632_v56 = vld [vmem:[#allocation2 + $0x1a8] sm:$0xff] }
 0x3b3   :  { %2277 = vst.msk [vmem:[#allocation2 + $0x1e8] sm:$0xff] %vm2050_vm2, %v2245_v11  ;;  %2542 = vst.msk [vmem:[#allocation2 + $0x178] sm:$0xff] %vm2050_vm2, %v2245_v11  ;;  %v2034_v51 = vpop.permute.xlu0 %2033  ;;  %v2668_v26 = vpack.c.bf16 %v2632_v56, %v2628_v9  ;;  %v2627_v15 = vld [vmem:[#allocation2 + $0x180] sm:$0xff]  ;;  %v2613_v45 = vld [vmem:[#allocation2 + $0x110] sm:$0xff] }
 0x3b4   :  { %2065 = vst.msk [vmem:[#allocation2 + $0x1c0] sm:$0xff] %vm2050_vm2, %v2034_v51  ;;  %2452 = vst.msk [vmem:[#allocation2 + $0x150] sm:$0xff] %vm2050_vm2, %v2034_v51  ;;  %v2630_v56 = vld [vmem:[#allocation2 + $0x198] sm:$0xff] }
 0x3b5   :  { %3011 = vmatprep.mubr.bf16.mxu1 %v2668_v26  ;;  %v2634_v51 = vld [vmem:[#allocation2 + $0x1b8] sm:$0xff] }
 0x3b6   :  { %v2036_v53 = vpop.permute.xlu1 %2035  ;;  %v2631_v20 = vld [vmem:[#allocation2 + $0x1a0] sm:$0xff]  ;;  %v2617_v40 = vld [vmem:[#allocation2 + $0x130] sm:$0xff] }
 0x3b7   :  { %2066 = vst.msk [vmem:[#allocation2 + $0x1e0] sm:$0xff] %vm2050_vm2, %v2036_v53  ;;  %2453 = vst.msk [vmem:[#allocation2 + $0x170] sm:$0xff] %vm2050_vm2, %v2036_v53  ;;  %v2323_v3 = vpop.permute.xlu0 %2322  ;;  %v2667_v31 = vpack.c.bf16 %v2631_v20, %v2627_v15  ;;  %v2661_v48 = vpack.c.bf16 %v2617_v40, %v2613_v45  ;;  %v2670_v15 = vpack.c.bf16 %v2634_v51, %v2630_v56 }
 0x3b8   :  { %2356 = vst.msk [vmem:[#allocation2 + $0x1c8] sm:$0xff] %vm2118_vm3, %v2323_v3  ;;  %2557 = vst.msk [vmem:[#allocation2 + $0x158] sm:$0xff] %vm2118_vm3, %v2323_v3 }
 0x3b9   :  { %3012 = vmatmul.mubr.bf16.gmra.mxu1 %v2667_v31 }
 0x3ba   :  { %v2325_v16 = vpop.permute.xlu1 %2324 }
 0x3bb   :  { %2357 = vst.msk [vmem:[#allocation2 + $0x1e8] sm:$0xff] %vm2118_vm3, %v2325_v16  ;;  %2558 = vst.msk [vmem:[#allocation2 + $0x178] sm:$0xff] %vm2118_vm3, %v2325_v16  ;;  %v2102_v5 = vpop.permute.xlu0 %2101  ;;  %v2638_v16 = vld [vmem:[#allocation2 + $0x1d8] sm:$0xff] }
 0x3bc   :  { %2409 = vst.msk [vmem:[#allocation2 + $0x1e8] sm:$0xff] %vm2165_vm4, %v6384_v35  ;;  %2574 = vst.msk [vmem:[#allocation2 + $0x178] sm:$0xff] %vm2165_vm4, %v6384_v35 }
 0x3bd   :  { %2133 = vst.msk [vmem:[#allocation2 + $0x1c0] sm:$0xff] %vm2118_vm3, %v2102_v5  ;;  %2484 = vst.msk [vmem:[#allocation2 + $0x150] sm:$0xff] %vm2118_vm3, %v2102_v5  ;;  %v2642_v5 = vld [vmem:[#allocation2 + $0x1f8] sm:$0xff] }
 0x3be   :  { %v2104_v52 = vpop.permute.xlu1 %2103 }
 0x3bf   :  { %2134 = vst.msk [vmem:[#allocation2 + $0x1e0] sm:$0xff] %vm2118_vm3, %v2104_v52  ;;  %2485 = vst.msk [vmem:[#allocation2 + $0x170] sm:$0xff] %vm2118_vm3, %v2104_v52  ;;  %v2381_v55 = vpop.permute.xlu0 %2380 }
 0x3c0   :  { %2181 = vst.msk [vmem:[#allocation2 + $0x1e0] sm:$0xff] %vm2165_vm4, %v6384_v35  ;;  %2510 = vst.msk [vmem:[#allocation2 + $0x170] sm:$0xff] %vm2165_vm4, %v6384_v35 }
 0x3c1   :  { %2408 = vst.msk [vmem:[#allocation2 + $0x1c8] sm:$0xff] %vm2165_vm4, %v2381_v55  ;;  %2573 = vst.msk [vmem:[#allocation2 + $0x158] sm:$0xff] %vm2165_vm4, %v2381_v55 }
 0x3c2   :  { %v2154_v57 = vpop.permute.xlu1 %2153 }
 0x3c3   :  { %2180 = vst.msk [vmem:[#allocation2 + $0x1c0] sm:$0xff] %vm2165_vm4, %v2154_v57  ;;  %2509 = vst.msk [vmem:[#allocation2 + $0x150] sm:$0xff] %vm2165_vm4, %v2154_v57  ;;  %v2431_v46 = vpop.permute.xlu0 %2430  ;;  %v2640_v47 = vld [vmem:[#allocation2 + $0x1e8] sm:$0xff]  ;;  %v2626_v28 = vld [vmem:[#allocation2 + $0x178] sm:$0xff] }
 0x3c4   :  { %2454 = vst.msk [vmem:[#allocation2 + $0x190] sm:$0xff] %vm2050_vm2, %v2431_v46 }
 0x3c6   :  { %v2433_v38 = vpop.permute.xlu1 %2432 }
 0x3c7   :  { %2455 = vst.msk [vmem:[#allocation2 + $0x1b0] sm:$0xff] %vm2050_vm2, %v2433_v38  ;;  %v2463_v23 = vpop.permute.xlu0 %2462  ;;  %v2639_v63 = vld [vmem:[#allocation2 + $0x1e0] sm:$0xff]  ;;  %v2625_v26 = vld [vmem:[#allocation2 + $0x170] sm:$0xff]  ;;  %v2674_v38 = vpack.c.bf16 %v2642_v5, %v2638_v16 }
 0x3c8   :  { %v2636_v24 = vld [vmem:[#allocation2 + $0x1c8] sm:$0xff]  ;;  %2486 = vst.msk [vmem:[#allocation2 + $0x190] sm:$0xff] %vm2118_vm3, %v2463_v23  ;;  %v2622_v33 = vld [vmem:[#allocation2 + $0x158] sm:$0xff] }
 0x3c9   :  { %v2672_v13 = vpack.c.bf16 %v2640_v47, %v2636_v24  ;;  %v2666_v11 = vpack.c.bf16 %v2626_v28, %v2622_v33 }
 0x3ca   :  { %v2465_v41 = vpop.permute.xlu1 %2464  ;;  %v2635_v54 = vld [vmem:[#allocation2 + $0x1c0] sm:$0xff]  ;;  %v2621_v9 = vld [vmem:[#allocation2 + $0x150] sm:$0xff] }
 0x3cb   :  { %3019 = vmatprep.mubr.bf16.mxu1 %v2672_v13  ;;  %2487 = vst.msk [vmem:[#allocation2 + $0x1b0] sm:$0xff] %vm2118_vm3, %v2465_v41  ;;  %v2491_v34 = vpop.permute.xlu0 %2490  ;;  %v2671_v49 = vpack.c.bf16 %v2639_v63, %v2635_v54  ;;  %v2665_v53 = vpack.c.bf16 %v2625_v26, %v2621_v9 }
 0x3cc   :  { %2511 = vst.msk [vmem:[#allocation2 + $0x190] sm:$0xff] %vm2165_vm4, %v2491_v34 }
 0x3cd   :  { %3020 = vmatmul.mubr.bf16.gmra.mxu1 %v2671_v49 }
 0x3ce   :  { %v2493_v12 = vpop.permute.xlu1 %2492  ;;  %3060 = vmatprep.mubr.bf16.mxu1 %v2646_v19 }
 0x3cf   :  { %2512 = vst.msk [vmem:[#allocation2 + $0x1b0] sm:$0xff] %vm2165_vm4, %v2493_v12  ;;  %v2435_v4 = vpop.permute.xlu0 %2434 }
 0x3d0   :  { %2456 = vst.msk [vmem:[#allocation2 + $0x1d0] sm:$0xff] %vm2050_vm2, %v2435_v4 }
 0x3d2   :  { %v2437_v30 = vpop.permute.xlu1 %2436 }
 0x3d3   :  { %2457 = vst.msk [vmem:[#allocation2 + $0x1f0] sm:$0xff] %vm2050_vm2, %v2437_v30  ;;  %v2467_v6 = vpop.permute.xlu0 %2466  ;;  %v2629_v55 = vld [vmem:[#allocation2 + $0x190] sm:$0xff] }
 0x3d4   :  { %2488 = vst.msk [vmem:[#allocation2 + $0x1d0] sm:$0xff] %vm2118_vm3, %v2467_v6 }
 0x3d5   :  { %3061 = vmatmul.mubr.bf16.vlgmr.msra.gmra.mxu1 %v2645_v36 }
 0x3d6   :  { %v2469_v37 = vpop.permute.xlu1 %2468  ;;  %3068 = vmatprep.mubr.bf16.mxu1 %v2650_v43  ;;  %v2633_v3 = vld [vmem:[#allocation2 + $0x1b0] sm:$0xff] }
 0x3d7   :  { %2489 = vst.msk [vmem:[#allocation2 + $0x1f0] sm:$0xff] %vm2118_vm3, %v2469_v37  ;;  %v2495_v2 = vpop.permute.xlu0 %2494  ;;  %v2669_v46 = vpack.c.bf16 %v2633_v3, %v2629_v55 }
 0x3d8   :  { %2514 = vst.msk [vmem:[#allocation2 + $0x1f0] sm:$0xff] %vm2165_vm4, %v6384_v35  ;;  %2513 = vst.msk [vmem:[#allocation2 + $0x1d0] sm:$0xff] %vm2165_vm4, %v2495_v2  ;;  %v2618_v35 = vld [vmem:[#allocation2 + $0x138] sm:$0xff] }
 0x3d9   :  { %v2662_v0 = vpack.c.bf16 %v2618_v35, %v2614_v39 }
 0x3dd   :  { %3069 = vmatmul.mubr.bf16.gmra.mxu1 %v2649_v29 }
 0x3de   :  { %3076 = vmatprep.mubr.bf16.mxu1 %v2654_v61 }
 0x3df   :  { %v2637_v47 = vld [vmem:[#allocation2 + $0x1d0] sm:$0xff] }
 0x3e0   :  { %v2641_v13 = vld [vmem:[#allocation2 + $0x1f0] sm:$0xff] }
 0x3e1   :  { %v2673_v41 = vpack.c.bf16 %v2641_v13, %v2637_v47 }
 0x3e3   :  { %v6870_v16 = vpop.permute.xlu1 %3127 }
 0x3e4   :  { %v6872_v55 = vpop.permute.xlu0 %3131 }
 0x3e5   :  { %3077 = vmatmul.mubr.bf16.gmra.mxu1 %v2653_v25 }
 0x3e6   :  { %3084 = vmatprep.mubr.bf16.mxu1 %v2658_v42 }
 0x3e8   :  { %v6876_v13 = vpop.permute.xlu0 %3139 }
 0x3ed   :  { %3085 = vmatmul.mubr.bf16.gmra.mxu1 %v2657_v32 }
 0x3ee   :  { %3092 = vmatprep.mubr.bf16.mxu1 %v2662_v0 }
 0x3f5   :  { %3093 = vmatmul.mubr.bf16.gmra.mxu1 %v2661_v48 }
 0x3f6   :  { %3100 = vmatprep.mubr.bf16.mxu1 %v2666_v11 }
 0x3fd   :  { %3101 = vmatmul.mubr.bf16.gmra.mxu1 %v2665_v53 }
 0x3fe   :  { %3108 = vmatprep.mubr.bf16.mxu1 %v2670_v15  ;;  %v4243_v20 = vpop.f32.mrf.mxu1 }
 0x400   :  { %v4244_v31 = vpop.f32.mrf.mxu1 }
 0x401   :  { %v6838_v52 = vadd.f32 %v4244_v31, %v4243_v20 }
 0x402   :  { %v4246_v57 = vpop.f32.mrf.mxu1 }
 0x404   :  { %v4247_v23 = vpop.f32.mrf.mxu1 }
 0x405   :  { %3109 = vmatmul.mubr.bf16.gmra.mxu1 %v2669_v46  ;;  %v6840_v24 = vadd.f32 %v4247_v23, %v4246_v57 }
 0x406   :  { %3116 = vmatprep.mubr.bf16.mxu1 %v2674_v38  ;;  %v6874_v38 = vpop.permute.xlu1 %3135 }
 0x40a   :  { %v4249_v21 = vpop.f32.mrf.mxu1 }
 0x40c   :  { %v4250_v54 = vpop.f32.mrf.mxu1 }
 0x40d   :  { %v6842_v63 = vadd.f32 %v4250_v54, %v4249_v21  ;;  %3117 = vmatmul.mubr.bf16.gmra.mxu1 %v2673_v41 }
 0x40e   :  { %v4252_v34 = vpop.f32.mrf.mxu1 }
 0x410   :  { %v4253_v49 = vpop.f32.mrf.mxu1 }
 0x411   :  { %v6844_v59 = vadd.f32 %v4253_v49, %v4252_v34 }
 0x421   :  { %v4255_v19 = vpop.f32.mrf.mxu1 }
 0x423   :  { %v4256_v12 = vpop.f32.mrf.mxu1 }
 0x424   :  { %v6846_v4 = vadd.f32 %v4256_v12, %v4255_v19  ;;  %v6881_v12 = vpop.permute.xlu1 %3143 }
 0x425   :  { %v4258_v18 = vpop.f32.mrf.mxu1 }
 0x427   :  { %v4259_v10 = vpop.f32.mrf.mxu1 }
 0x428   :  { %v6848_v30 = vadd.f32 %v4259_v10, %v4258_v18 }
 0x435   :  { %v4261_v44 = vpop.f32.mrf.mxu1 }
 0x437   :  { %v4262_v6 = vpop.f32.mrf.mxu1 }
 0x438   :  { %v6850_v36 = vadd.f32 %v4262_v6, %v4261_v44 }
 0x439   :  { %v4264_v22 = vpop.f32.mrf.mxu1 }
 0x43b   :  { %v4265_v43 = vpop.f32.mrf.mxu1 }
 0x43c   :  { %v6852_v37 = vadd.f32 %v4265_v43, %v4264_v22  ;;  %v6889_v22 = vpop.permute.xlu0 %3147 }
 0x44d   :  { %v4267_v2 = vpop.f32.mrf.mxu1 }
 0x44f   :  { %v4268_v8 = vpop.f32.mrf.mxu1 }
 0x450   :  { %v6854_v62 = vadd.f32 %v4268_v8, %v4267_v2 }
 0x451   :  { %v4270_v17 = vpop.f32.mrf.mxu1 }
 0x453   :  { %v4271_v29 = vpop.f32.mrf.mxu1 }
 0x454   :  { %v6856_v60 = vadd.f32 %v4271_v29, %v4270_v17 }
 0x461   :  { %v4273_v61 = vpop.f32.mrf.mxu1 }
 0x463   :  { %v4274_v7 = vpop.f32.mrf.mxu1 }
 0x464   :  { %v6858_v1 = vadd.f32 %v4274_v7, %v4273_v61  ;;  %v6903_v7 = vpop.permute.xlu1 %3151 }
 0x465   :  { %v4276_v14 = vpop.f32.mrf.mxu1 }
 0x467   :  { %v4277_v25 = vpop.f32.mrf.mxu1 }
 0x468   :  { %v6860_v27 = vadd.f32 %v4277_v25, %v4276_v14 }
 0x479   :  { %v4279_v42 = vpop.f32.mrf.mxu1 }
 0x47b   :  { %v4280_v58 = vpop.f32.mrf.mxu1 }
 0x47c   :  { %v6862_v35 = vadd.f32 %v4280_v58, %v4279_v42 }
 0x47d   :  { %v4282_v50 = vpop.f32.mrf.mxu1 }
 0x47f   :  { %v4283_v32 = vpop.f32.mrf.mxu1 }
 0x480   :  { %v6864_v39 = vadd.f32 %v4283_v32, %v4282_v50  ;;  %v6911_v50 = vpop.permute.xlu0 %3155 }
 0x48d   :  { %v4285_v0 = vpop.f32.mrf.mxu1 }
 0x48f   :  { %v4286_v40 = vpop.f32.mrf.mxu1 }
 0x490   :  { %v6866_v33 = vadd.f32 %v4286_v40, %v4285_v0 }
 0x491   :  { %v4288_v45 = vpop.f32.mrf.mxu1 }
 0x493   :  { %v4289_v48 = vpop.f32.mrf.mxu1 }
 0x494   :  { %v6868_v28 = vadd.f32 %v4289_v48, %v4288_v45 }
 0x495   :  { %v4307_v11 = vpop.f32.mrf.mxu1 }
 0x497   :  { %v4308_v9 = vpop.f32.mrf.mxu1 }
 0x498   :  { %v4309_v21 = vadd.f32 %v4308_v9, %v4307_v11 }
 0x499   :  { %v4310_v56 = vpop.f32.mrf.mxu1 }
 0x49a   :  { %v6884_v18 = vadd.f32 %v4309_v21, %v6838_v52 }
 0x49b   :  { %v4311_v51 = vpop.f32.mrf.mxu1 }
 0x49c   :  { %v4312_v47 = vadd.f32 %v4311_v51, %v4310_v56  ;;  %v3190_v17 = vmul.f32 %v6870_v16, %v6884_v18 }
 0x49d   :  { %v4313_v26 = vpop.f32.mrf.mxu1 }
 0x49e   :  { %v6879_v49 = vadd.f32 %v4312_v47, %v6840_v24  ;;  %v3206_v32 = vsel %vm542_vm0, %v3190_v17, 0.0 }
 0x49f   :  { %v4314_v53 = vpop.f32.mrf.mxu1 }
 0x4a0   :  { %v4315_v54 = vadd.f32 %v4314_v53, %v4313_v26  ;;  %v3191_v2 = vmul.f32 %v6872_v55, %v6879_v49  ;;  %v6926_v53 = vpop.permute.xlu1 %3159 }
 0x4a1   :  { %v4316_v15 = vpop.f32.mrf.mxu1 }
 0x4a2   :  { %v6887_v44 = vadd.f32 %v4315_v54, %v6842_v63  ;;  %v3207_v25 = vsel %vm542_vm0, %v3191_v2, 0.0 }
 0x4a3   :  { %v4317_v20 = vpop.f32.mrf.mxu1  ;;  %v3208_v11 = vadd.f32 %v3207_v25, %v3206_v32 }
 0x4a4   :  { %v4318_v19 = vadd.f32 %v4317_v20, %v4316_v15  ;;  %v3192_v29 = vmul.f32 %v6874_v38, %v6887_v44 }
 0x4a5   :  { %v4319_v3 = vpop.f32.mrf.mxu1 }
 0x4a6   :  { %v6894_v24 = vadd.f32 %v4318_v19, %v6844_v59 }
 0x4a7   :  { %v4320_v31 = vpop.f32.mrf.mxu1 }
 0x4a8   :  { %v4321_v6 = vadd.f32 %v4320_v31, %v4319_v3  ;;  %v3193_v59 = vmul.f32 %v6876_v13, %v6894_v24 }
 0x4a9   :  { %v4322_v5 = vpop.f32.mrf.mxu1 }
 0x4aa   :  { %v6901_v63 = vadd.f32 %v4321_v6, %v6846_v4  ;;  %v3209_v4 = vsel %vm542_vm0, %v3192_v29, 0.0  ;;  %v6948_v6 = vpop.permute.xlu1 %3167 }
 0x4ab   :  { %v4323_v57 = vpop.f32.mrf.mxu1  ;;  %v3210_v15 = vadd.f32 %v3209_v4, %v3208_v11 }
 0x4ac   :  { %v4324_v8 = vadd.f32 %v4323_v57, %v4322_v5  ;;  %v3194_v40 = vmul.f32 %v6881_v12, %v6901_v63  ;;  %v6934_v57 = vpop.permute.xlu0 %3163 }
 0x4ad   :  { %v4325_v46 = vpop.f32.mrf.mxu1 }
 0x4ae   :  { %v6909_v42 = vadd.f32 %v4324_v8, %v6848_v30  ;;  %v3211_v30 = vsel %vm542_vm0, %v3193_v59, 0.0  ;;  %v3213_v3 = vsel %vm542_vm0, %v3194_v40, 0.0  ;;  %v6967_v40 = vpop.permute.xlu1 %3175 }
 0x4af   :  { %v4326_v23 = vpop.f32.mrf.mxu1 }
 0x4b0   :  { %v4327_v61 = vadd.f32 %v4326_v23, %v4325_v46  ;;  %v3195_v56 = vmul.f32 %v6889_v22, %v6909_v42  ;;  %v3212_v46 = vadd.f32 %v3211_v30, %v3210_v15  ;;  %v6956_v29 = vpop.permute.xlu0 %3171 }
 0x4b1   :  { %v4328_v41 = vpop.f32.mrf.mxu1 }
 0x4b2   :  { %v6918_v45 = vadd.f32 %v4327_v61, %v6850_v36  ;;  %v3214_v54 = vadd.f32 %v3213_v3, %v3212_v46 }
 0x4b3   :  { %v4329_v34 = vpop.f32.mrf.mxu1 }
 0x4b4   :  { %v4330_v58 = vadd.f32 %v4329_v34, %v4328_v41  ;;  %v3196_v36 = vmul.f32 %v6903_v7, %v6918_v45 }
 0x4b5   :  { %v4331_v10 = vpop.f32.mrf.mxu1 }
 0x4b6   :  { %v6924_v51 = vadd.f32 %v4330_v58, %v6852_v37  ;;  %v3215_v37 = vsel %vm542_vm0, %v3195_v56, 0.0  ;;  %v3217_v19 = vsel %vm542_vm0, %v3196_v36, 0.0  ;;  %v6975_v56 = vpop.permute.xlu0 %3179 }
 0x4b7   :  { %v4332_v43 = vpop.f32.mrf.mxu1 }
 0x4b8   :  { %v4333_v48 = vadd.f32 %v4332_v43, %v4331_v10  ;;  %v3197_v47 = vmul.f32 %v6911_v50, %v6924_v51  ;;  %v3216_v43 = vadd.f32 %v3215_v37, %v3214_v54 }
 0x4b9   :  { %v4334_v52 = vpop.f32.mrf.mxu1 }
 0x4ba   :  { %v6932_v31 = vadd.f32 %v4333_v48, %v6854_v62  ;;  %v3219_v8 = vsel %vm542_vm0, %v3197_v47, 0.0  ;;  %v3218_v61 = vadd.f32 %v3217_v19, %v3216_v43  ;;  %v6984_v47 = vpop.permute.xlu1 %3183 }
 0x4bb   :  { %v4335_v14 = vpop.f32.mrf.mxu1 }
 0x4bc   :  { %v4336_v26 = vadd.f32 %v4335_v14, %v4334_v52  ;;  %v3198_v62 = vmul.f32 %v6926_v53, %v6932_v31  ;;  %v3220_v58 = vadd.f32 %v3219_v8, %v3218_v61  ;;  %v6993_v8 = vpop.permute.xlu0 %3187 }
 0x4bd   :  { %v4337_v0 = vpop.f32.mrf.mxu1 }
 0x4be   :  { %v6940_v21 = vadd.f32 %v4336_v26, %v6856_v60 }
 0x4bf   :  { %v4338_v9 = vpop.f32.mrf.mxu1 }
 0x4c0   :  { %v4339_v5 = vadd.f32 %v4338_v9, %v4337_v0  ;;  %v3199_v60 = vmul.f32 %v6934_v57, %v6940_v21 }
 0x4c1   :  { %v4340_v20 = vpop.f32.mrf.mxu1 }
 0x4c2   :  { %v6946_v10 = vadd.f32 %v4339_v5, %v6858_v1  ;;  %v3221_v1 = vsel %vm542_vm0, %v3198_v62, 0.0  ;;  %v3223_v0 = vsel %vm542_vm0, %v3199_v60, 0.0 }
 0x4c3   :  { %v4341_v23 = vpop.f32.mrf.mxu1  ;;  %v3222_v48 = vadd.f32 %v3221_v1, %v3220_v58  ;;  %v4600_v58 = vld [vmem:[%s7293_s3 + $0x78] sm:$0xff]  }
 0x4c4   :  { %v4342_v41 = vadd.f32 %v4341_v23, %v4340_v20  ;;  %v3200_v25 = vmul.f32 %v6948_v6, %v6946_v10  ;;  %4355 = vmatprep.subr.bf16.mxu1 %v4600_v58 }
 0x4c5   :  { %v4343_v34 = vpop.f32.mrf.mxu1  ;;  %v3224_v26 = vadd.f32 %v3223_v0, %v3222_v48  ;;  %v4602_v0 = vld [vmem:[%s7293_s3 + $0x70] sm:$0xff]   ;;  %v4604_v48 = vld [vmem:[%s7293_s3 + $0x68] sm:$0xff]  }
 0x4c6   :  { %v6954_v17 = vadd.f32 %v4342_v41, %v6860_v27  ;;  %v3225_v9 = vsel %vm542_vm0, %v3200_v25, 0.0 }
 0x4c7   :  { %v4344_v2 = vpop.f32.mrf.mxu1  ;;  %v3226_v5 = vadd.f32 %v3225_v9, %v3224_v26  ;;  %v4605_v9 = vld [vmem:[%s7293_s3 + $0x28] sm:$0xff]   ;;  %v4606_v26 = vld [vmem:[%s7293_s3 + $0x60] sm:$0xff]  }
 0x4c8   :  { %v4345_v52 = vadd.f32 %v4344_v2, %v4343_v34  ;;  %v3201_v27 = vmul.f32 %v6956_v29, %v6954_v17 }
 0x4c9   :  { %v4346_v14 = vpop.f32.mrf.mxu1 }
 0x4ca   :  { %v6962_v59 = vadd.f32 %v4345_v52, %v6862_v35  ;;  %v3227_v20 = vsel %vm542_vm0, %v3201_v27, 0.0  ;;  %v4603_v27 = vld [vmem:[%s7293_s3 + $0x30] sm:$0xff]  }
 0x4cb   :  { %v4347_v32 = vpop.f32.mrf.mxu1 }
 0x4cc   :  { %v4348_v4 = vadd.f32 %v4347_v32, %v4346_v14  ;;  %v3202_v30 = vmul.f32 %v6967_v40, %v6962_v59 }
 0x4cd   :  { %v4349_v11 = vpop.f32.mrf.mxu1 }
 0x4ce   :  { %v6973_v35 = vadd.f32 %v4348_v4, %v6864_v39  ;;  %v3229_v23 = vsel %vm542_vm0, %v3202_v30, 0.0  ;;  %v3228_v39 = vadd.f32 %v3227_v20, %v3226_v5  ;;  %v4607_v20 = vld [vmem:[%s7293_s3 + $0x20] sm:$0xff]   ;;  %v4608_v5 = vld [vmem:[%s7293_s3 + $0x58] sm:$0xff]  }
 0x4cf   :  { %v4350_v15 = vpop.f32.mrf.mxu1 }
 0x4d0   :  { %v3203_v3 = vmul.f32 %v6975_v56, %v6973_v35  ;;  %v4351_v36 = vadd.f32 %v4350_v15, %v4349_v11  ;;  %v3230_v62 = vadd.f32 %v3229_v23, %v3228_v39  ;;  %v4610_v39 = vld [vmem:[%s7293_s3 + $0x50] sm:$0xff]  }
 0x4d1   :  { %v4352_v46 = vpop.f32.mrf.mxu1 }
 0x4d2   :  { %v6982_v37 = vadd.f32 %v4351_v36, %v6866_v33  ;;  %v3231_v54 = vsel %vm542_vm0, %v3203_v3, 0.0 }
 0x4d3   :  { %v4353_v41 = vpop.f32.mrf.mxu1  ;;  %v3232_v33 = vadd.f32 %v3231_v54, %v3230_v62  ;;  %v4611_v62 = vld [vmem:[%s7293_s3 + $0x10] sm:$0xff]  }
 0x4d4   :  { %v3204_v34 = vmul.f32 %v6984_v47, %v6982_v37  ;;  %v4354_v19 = vadd.f32 %v4353_v41, %v4352_v46  ;;  %v4609_v46 = vld [vmem:[%s7293_s3 + $0x18] sm:$0xff]  }
 0x4d6   :  { %v3233_v43 = vsel %vm542_vm0, %v3204_v34, 0.0  ;;  %v6991_v2 = vadd.f32 %v4354_v19, %v6868_v28  ;;  %v4601_v28 = vld [vmem:[%s7293_s3 + $0x38] sm:$0xff]  }
 0x4d7   :  { %v3234_v52 = vadd.f32 %v3233_v43, %v3232_v33  ;;  %4356 = vmatpush3.bf16.msra.mxu1 %v4601_v28  ;;  %v4612_v33 = vld [vmem:[%s7293_s3 + $0x48] sm:$0xff]  }
 0x4d8   :  { %v3205_v60 = vmul.f32 %v6993_v8, %v6991_v2  ;;  %4357 = vmatprep.subr.bf16.mxu1 %v4602_v0 }
 0x4da   :  { %v3235_v61 = vsel %vm542_vm0, %v3205_v60, 0.0 }
 0x4db   :  { %v3236_v14 = vadd.f32 %v3235_v61, %v3234_v52  ;;  %4358 = vmatpush3.bf16.msra.mxu1 %v4603_v27 }
 0x4dc   :  { %4359 = vmatprep.subr.bf16.mxu1 %v4604_v48 }
 0x4dd   :  { %v3237_v1 = vrot.slane %v3236_v14, 4 }
 0x4df   :  { %v3238_v25 = vadd.f32 %v3237_v1, %v3236_v14  ;;  %4360 = vmatpush3.bf16.msra.mxu1 %v4605_v9  ;;  %v4613_v14 = vld [vmem:[%s7293_s3 + $0x8] sm:$0xff]  }
 0x4e0   :  { %4361 = vmatprep.subr.bf16.mxu1 %v4606_v26 }
 0x4e1   :  { %v3239_v32 = vrot.slane %v3238_v25, 2 }
 0x4e3   :  { %v3240_v4 = vadd.f32 %v3239_v32, %v3238_v25  ;;  %4362 = vmatpush3.bf16.msra.mxu1 %v4607_v20 }
 0x4e4   :  { %4363 = vmatprep.subr.bf16.mxu1 %v4608_v5 }
 0x4e5   :  { %v3241_v11 = vrot.slane %v3240_v4, 1 }
 0x4e7   :  { %v3242_v30 = vadd.f32 %v3241_v11, %v3240_v4  ;;  %4364 = vmatpush3.bf16.msra.mxu1 %v4609_v46 }
 0x4e8   :  { %4365 = vmatprep.subr.bf16.mxu1 %v4610_v39 }
 0x4e9   :  { %v7019_v15 = vmul.f32 0.03125, %v3242_v30 }
 0x4eb   :  { %v3244_v3 = vsub.f32 %v6884_v18, %v7019_v15  ;;  %v3245_v36 = vsub.f32 %v6879_v49, %v7019_v15  ;;  %v3246_v23 = vsub.f32 %v6887_v44, %v7019_v15  ;;  %v3247_v41 = vsub.f32 %v6894_v24, %v7019_v15  ;;  %4366 = vmatpush3.bf16.msra.mxu1 %v4611_v62 }
 0x4ec   :  { %v3248_v54 = vsub.f32 %v6901_v63, %v7019_v15  ;;  %v3249_v60 = vsub.f32 %v6909_v42, %v7019_v15  ;;  %v3251_v25 = vsub.f32 %v6924_v51, %v7019_v15  ;;  %4367 = vmatprep.subr.bf16.mxu1 %v4612_v33  ;;  %v3252_v27 = vsub.f32 %v6932_v31, %v7019_v15 }
 0x4ed   :  { %v3260_v34 = vmul.f32 %v3244_v3, %v6870_v16  ;;  %v3261_v19 = vmul.f32 %v3245_v36, %v6872_v55  ;;  %v3262_v43 = vmul.f32 %v3246_v23, %v6874_v38  ;;  %v3263_v52 = vmul.f32 %v3247_v41, %v6876_v13 }
 0x4ee   :  { %v3264_v16 = vmul.f32 %v3248_v54, %v6881_v12  ;;  %v3250_v38 = vsub.f32 %v6918_v45, %v7019_v15  ;;  %v3265_v58 = vmul.f32 %v3249_v60, %v6889_v22  ;;  %v3253_v11 = vsub.f32 %v6940_v21, %v7019_v15 }
 0x4ef   :  { %v3276_v55 = vmul.f32 %v3260_v34, %v3260_v34  ;;  %v3277_v61 = vmul.f32 %v3261_v19, %v3261_v19  ;;  %v3278_v1 = vmul.f32 %v3262_v43, %v3262_v43  ;;  %v3279_v13 = vmul.f32 %v3263_v52, %v3263_v52  ;;  %4368 = vmatpush3.bf16.msra.mxu1 %v4613_v14 }
 0x4f0   :  { %v3280_v28 = vmul.f32 %v3264_v16, %v3264_v16  ;;  %v3266_v4 = vmul.f32 %v3250_v38, %v6903_v7  ;;  %v3267_v9 = vmul.f32 %v3251_v25, %v6911_v50  ;;  %v3281_v30 = vmul.f32 %v3265_v58, %v3265_v58 }
 0x4f1   :  { %v3292_v12 = vsel %vm542_vm0, %v3276_v55, 0.0  ;;  %v3293_v32 = vsel %vm542_vm0, %v3277_v61, 0.0  ;;  %v3295_v48 = vsel %vm542_vm0, %v3278_v1, 0.0  ;;  %v3297_v26 = vsel %vm542_vm0, %v3279_v13, 0.0 }
 0x4f2   :  { %v3294_v0 = vadd.f32 %v3293_v32, %v3292_v12  ;;  %v3299_v20 = vsel %vm542_vm0, %v3280_v28, 0.0  ;;  %v3254_v36 = vsub.f32 %v6946_v10, %v7019_v15  ;;  %v3268_v7 = vmul.f32 %v3252_v27, %v6926_v53 }
 0x4f3   :  { %v3282_v5 = vmul.f32 %v3266_v4, %v3266_v4  ;;  %v3255_v23 = vsub.f32 %v6954_v17, %v7019_v15  ;;  %v3269_v39 = vmul.f32 %v3253_v11, %v6934_v57  ;;  %v3283_v41 = vmul.f32 %v3267_v9, %v3267_v9 }
 0x4f4   :  { %v3296_v22 = vadd.f32 %v3295_v48, %v3294_v0  ;;  %v3301_v50 = vsel %vm542_vm0, %v3281_v30, 0.0  ;;  %v3256_v34 = vsub.f32 %v6962_v59, %v7019_v15  ;;  %v3270_v19 = vmul.f32 %v3254_v36, %v6948_v6 }
 0x4f5   :  { %v3284_v62 = vmul.f32 %v3268_v7, %v3268_v7  ;;  %v3303_v43 = vsel %vm542_vm0, %v3282_v5, 0.0  ;;  %v3257_v33 = vsub.f32 %v6973_v35, %v7019_v15  ;;  %v3271_v60 = vmul.f32 %v3255_v23, %v6956_v29 }
 0x4f6   :  { %v3298_v3 = vadd.f32 %v3297_v26, %v3296_v22  ;;  %v3285_v52 = vmul.f32 %v3269_v39, %v3269_v39  ;;  %v3305_v57 = vsel %vm542_vm0, %v3283_v41, 0.0  ;;  %v3258_v55 = vsub.f32 %v6982_v37, %v7019_v15 }
 0x4f7   :  { %v3272_v61 = vmul.f32 %v3256_v34, %v6967_v40  ;;  %v3286_v14 = vmul.f32 %v3270_v19, %v3270_v19  ;;  %v3307_v6 = vsel %vm542_vm0, %v3284_v62, 0.0  ;;  %v3259_v1 = vsub.f32 %v6991_v2, %v7019_v15 }
 0x4f8   :  { %v3300_v46 = vadd.f32 %v3299_v20, %v3298_v3  ;;  %v3273_v25 = vmul.f32 %v3257_v33, %v6975_v56  ;;  %v3287_v58 = vmul.f32 %v3271_v60, %v3271_v60  ;;  %v3309_v29 = vsel %vm542_vm0, %v3285_v52, 0.0 }
 0x4f9   :  { %v3274_v28 = vmul.f32 %v3258_v55, %v6984_v47  ;;  %v3288_v12 = vmul.f32 %v3272_v61, %v3272_v61  ;;  %v3311_v32 = vsel %vm542_vm0, %v3286_v14, 0.0  ;;  %v3275_v40 = vmul.f32 %v3259_v1, %v6993_v8  ;;  %v7655_v1 = vld [vmem:[#allocation30_spill] sm:$0xff] }
 0x4fa   :  { %v3302_v54 = vadd.f32 %v3301_v50, %v3300_v46  ;;  %v3289_v27 = vmul.f32 %v3273_v25, %v3273_v25  ;;  %v3313_v4 = vsel %vm542_vm0, %v3287_v58, 0.0 }
 0x4fb   :  { %v3290_v11 = vmul.f32 %v3274_v28, %v3274_v28  ;;  %v3315_v22 = vsel %vm542_vm0, %v3288_v12, 0.0  ;;  %v3291_v9 = vmul.f32 %v3275_v40, %v3275_v40 }
 0x4fc   :  { %v3304_v53 = vadd.f32 %v3303_v43, %v3302_v54  ;;  %v3317_v30 = vsel %vm542_vm0, %v3289_v27, 0.0  ;;  %v3125_v54 = vld [vmem:[%s7294_s5] sm:$0x3]  ;;  %v7654_v43 = vld [vmem:[#allocation26_spill] sm:$0xff] }
 0x4fd   :  { %v3319_v47 = vsel %vm542_vm0, %v3290_v11, 0.0  ;;  %v3321_v3 = vsel %vm542_vm0, %v3291_v9, 0.0 }
 0x4fe   :  { %v3306_v16 = vadd.f32 %v3305_v57, %v3304_v53  ;;  %v4614_v57 = vld [vmem:[%s7293_s3 + $0x40] sm:$0xff]  }
 0x4ff   :  { %4369 = vmatprep.subr.bf16.mxu1 %v4614_v57 }
 0x500   :  { %v3308_v38 = vadd.f32 %v3307_v6, %v3306_v16  ;;  %v4615_v16 = vld [vmem:[%s7293_s3] sm:$0xff]  }
 0x501   :  { %4370 = vmatpush3.bf16.msra.mxu1 %v4615_v16 }
 0x502   :  { %v3310_v13 = vadd.f32 %v3309_v29, %v3308_v38 }
 0x504   :  { %v3312_v0 = vadd.f32 %v3311_v32, %v3310_v13 }
 0x506   :  { %v3314_v48 = vadd.f32 %v3313_v4, %v3312_v0 }
 0x508   :  { %v3316_v56 = vadd.f32 %v3315_v22, %v3314_v48 }
 0x50a   :  { %v3318_v26 = vadd.f32 %v3317_v30, %v3316_v56 }
 0x50c   :  { %v3320_v20 = vadd.f32 %v3319_v47, %v3318_v26 }
 0x50e   :  { %v3322_v36 = vadd.f32 %v3321_v3, %v3320_v20 }
 0x510   :  { %v3323_v7 = vrot.slane %v3322_v36, 4 }
 0x512   :  { %v3324_v8 = vadd.f32 %v3323_v7, %v3322_v36 }
 0x514   :  { %v3325_v5 = vrot.slane %v3324_v8, 2 }
 0x516   :  { %v3326_v46 = vadd.f32 %v3325_v5, %v3324_v8 }
 0x518   :  { %v3327_v23 = vrot.slane %v3326_v46, 1 }
 0x51a   :  { %v3328_v39 = vadd.f32 %v3327_v23, %v3326_v46 }
 0x51c   :  { %v3329_v41 = vmul.f32 0.03125, %v3328_v39  ;;  %v4658_v39 = vld [vmem:[%s7290_s7 + $0x8] sm:$0xff] }
 0x51e   :  { %v3330_v50 = vadd.f32 1e-05, %v3329_v41  ;;  %v4659_v41 = vld [vmem:[%s7290_s7] sm:$0xff] }
 0x520   :  { %4638 = vrsqrt.f32 %v3330_v50  ;;  %v4660_v50 = vld [vmem:[%s7290_s7 + $0x18] sm:$0xff] }
 0x52d   :  { %v4639_v34 = vpop.eup %4638 }
 0x52e   :  { %v3332_v19 = vmul.f32 %v4639_v34, %v3125_v54 }
 0x530   :  { %v3333_v62 = vmul.f32 %v3332_v19, %v7019_v15  ;;  %v3341_v53 = vrot.slane %v3332_v19, %v7654_v43 }
 0x532   :  { %v3335_v33 = vrot.slane %v3333_v62, 7  ;;  %v3357_v60 = vmul.f32 %v3341_v53, %v6991_v2  ;;  %v3347_v52 = vmul.f32 %v3341_v53, %v6909_v42  ;;  %v3346_v61 = vmul.f32 %v3341_v53, %v6901_v63 }
 0x533   :  { %v3344_v15 = vmul.f32 %v3341_v53, %v6887_v44  ;;  %v3343_v14 = vmul.f32 %v3341_v53, %v6879_v49  ;;  %v3351_v6 = vmul.f32 %v3341_v53, %v6940_v21  ;;  %v3350_v2 = vmul.f32 %v3341_v53, %v6932_v31 }
 0x534   :  { %v3337_v55 = vsub.f32 %v3125_v54, %v3335_v33  ;;  %v3352_v42 = vmul.f32 %v3341_v53, %v6946_v10  ;;  %v3348_v38 = vmul.f32 %v3341_v53, %v6918_v45  ;;  %v3355_v58 = vmul.f32 %v3341_v53, %v6973_v35  ;;  %v4661_v54 = vld [vmem:[%s7290_s7 + $0x10] sm:$0xff] }
 0x535   :  { %v3349_v29 = vmul.f32 %v3341_v53, %v6924_v51  ;;  %v3353_v63 = vmul.f32 %v3341_v53, %v6954_v17  ;;  %v3356_v49 = vmul.f32 %v3341_v53, %v6982_v37  ;;  %v3345_v44 = vmul.f32 %v3341_v53, %v6894_v24 }
 0x536   :  { %v3361_v25 = vrot.slane %v3337_v55, %v7655_v1  ;;  %v3342_v31 = vmul.f32 %v3341_v53, %v6884_v18  ;;  %v3354_v21 = vmul.f32 %v3341_v53, %v6962_v59  ;;  %v4616_v18 = vld [vmem:[%s7293_s3 + $0xf8] sm:$0xff]  }
 0x537   :  { %4383 = vmatprep.subr.bf16.mxu1 %v4616_v18  ;;  %v4631_v18 = vld [vmem:[%s7293_s3 + $0x80] sm:$0xff]  }
 0x538   :  { %v3377_v10 = vadd.f32 %v3361_v25, %v3357_v60  ;;  %v3367_v45 = vadd.f32 %v3361_v25, %v3347_v52  ;;  %v3366_v13 = vadd.f32 %v3361_v25, %v3346_v61  ;;  %v3364_v28 = vadd.f32 %v3361_v25, %v3344_v15 }
 0x539   :  { %v3363_v12 = vadd.f32 %v3361_v25, %v3343_v14  ;;  %v3371_v32 = vadd.f32 %v3361_v25, %v3351_v6  ;;  %v3370_v35 = vadd.f32 %v3361_v25, %v3350_v2  ;;  %v3372_v0 = vadd.f32 %v3361_v25, %v3352_v42  ;;  %v4617_v6 = vld [vmem:[%s7293_s3 + $0xb8] sm:$0xff]   ;;  %v4618_v42 = vld [vmem:[%s7293_s3 + $0xf0] sm:$0xff]  }
 0x53a   :  { %v3393_v51 = vmax.f32 %v3377_v10, 0.0  ;;  %v3383_v40 = vmax.f32 %v3367_v45, 0.0  ;;  %v3382_v17 = vmax.f32 %v3366_v13, 0.0  ;;  %v3380_v27 = vmax.f32 %v3364_v28, 0.0 }
 0x53b   :  { %v3379_v4 = vmax.f32 %v3363_v12, 0.0  ;;  %v3387_v37 = vmax.f32 %v3371_v32, 0.0  ;;  %v3386_v48 = vmax.f32 %v3370_v35, 0.0  ;;  %v3388_v24 = vmax.f32 %v3372_v0, 0.0  ;;  %v4622_v0 = vld [vmem:[%s7293_s3 + $0xe0] sm:$0xff]  }
 0x53c   :  { %3478 = vst.msk [vmem:[#allocation3 + $0x98] sm:$0xff] %vm542_vm0, %v3393_v51  ;;  %3406 = vrot.lane.b32.xlu1 %v3383_v40, %s4665_s11  ;;  %3397 = vst.msk [vmem:[#allocation3 + $0x78] sm:$0xff] %vm542_vm0, %v3383_v40  ;;  %3426 = vrot.lane.b32.xlu0 %v3382_v17, %s4665_s11  ;;  %v3368_v59 = vadd.f32 %v3361_v25, %v3348_v38  ;;  %v3375_v11 = vadd.f32 %v3361_v25, %v3355_v58  ;;  %v4623_v51 = vld [vmem:[%s7293_s3 + $0xa0] sm:$0xff]  }
 0x53d   :  { %3439 = vst.msk [vmem:[#allocation3 + $0x10] sm:$0xff] %vm542_vm0, %v3383_v40  ;;  %3396 = vst.msk [vmem:[#allocation3 + $0x50] sm:$0xff] %vm542_vm0, %v3382_v17  ;;  %v3369_v22 = vadd.f32 %v3361_v25, %v3349_v29  ;;  %v3373_v56 = vadd.f32 %v3361_v25, %v3353_v63  ;;  %v3376_v9 = vadd.f32 %v3361_v25, %v3356_v49  ;;  %v4619_v63 = vld [vmem:[%s7293_s3 + $0xb0] sm:$0xff]   ;;  %v4624_v40 = vld [vmem:[%s7293_s3 + $0xd8] sm:$0xff]  }
 0x53e   :  { %3419 = vst.msk [vmem:[#allocation3 + $0x8] sm:$0xff] %vm542_vm0, %v3380_v27  ;;  %3395 = vst.msk [vmem:[#allocation3 + $0x28] sm:$0xff] %vm542_vm0, %v3379_v4  ;;  %v3365_v30 = vadd.f32 %v3361_v25, %v3345_v44  ;;  %v3362_v26 = vadd.f32 %v3361_v25, %v3342_v31  ;;  %v3384_v47 = vmax.f32 %v3368_v59, 0.0  ;;  %v3391_v20 = vmax.f32 %v3375_v11, 0.0  ;;  %v4620_v44 = vld [vmem:[%s7293_s3 + $0xe8] sm:$0xff]   ;;  %v4625_v17 = vld [vmem:[%s7293_s3 + $0x98] sm:$0xff]  }
 0x53f   :  { %3441 = vst.msk [vmem:[#allocation3 + $0x60] sm:$0xff] %vm542_vm0, %v3387_v37  ;;  %3460 = vst.msk [vmem:[#allocation3 + $0x40] sm:$0xff] %vm542_vm0, %v3387_v37  ;;  %v3385_v3 = vmax.f32 %v3369_v22, 0.0  ;;  %v3374_v36 = vadd.f32 %v3361_v25, %v3354_v21  ;;  %v3389_v7 = vmax.f32 %v3373_v56, 0.0  ;;  %v3392_v8 = vmax.f32 %v3376_v9, 0.0  ;;  %v4621_v21 = vld [vmem:[%s7293_s3 + $0xa8] sm:$0xff]  }
 0x540   :  { %3459 = vst.msk [vmem:[#allocation3 + $0x18] sm:$0xff] %vm542_vm0, %v3386_v48  ;;  %3475 = vst.msk [vmem:[#allocation3 + $0x20] sm:$0xff] %vm542_vm0, %v3388_v24  ;;  %v3381_v5 = vmax.f32 %v3365_v30, 0.0  ;;  %v3378_v46 = vmax.f32 %v3362_v26, 0.0  ;;  %3404 = vrot.lane.b32.xlu0 %v3380_v27, %s4665_s11  ;;  %3402 = vrot.lane.b32.xlu1 %v3379_v4, %s4665_s11  ;;  %v4626_v27 = vld [vmem:[%s7293_s3 + $0xd0] sm:$0xff]   ;;  %v4632_v59 = vld [vmem:[%s7293_s3 + $0x118] sm:$0xff]  }
 0x541   :  { %3442 = vst.msk [vmem:[#allocation3 + $0x88] sm:$0xff] %vm542_vm0, %v3388_v24  ;;  %3421 = vst.msk [vmem:[#allocation3 + $0x58] sm:$0xff] %vm542_vm0, %v3384_v47  ;;  %v3390_v23 = vmax.f32 %v3374_v36, 0.0  ;;  %v4627_v4 = vld [vmem:[%s7293_s3 + $0x90] sm:$0xff]  }
 0x542   :  { %3440 = vst.msk [vmem:[#allocation3 + $0x38] sm:$0xff] %vm542_vm0, %v3384_v47  ;;  %3462 = vst.msk [vmem:[#allocation3 + $0x90] sm:$0xff] %vm542_vm0, %v3391_v20  ;;  %v4633_v26 = vld [vmem:[%s7293_s3 + $0x110] sm:$0xff]  }
 0x543   :  { %3422 = vst.msk [vmem:[#allocation3 + $0x80] sm:$0xff] %vm542_vm0, %v3385_v3  ;;  %3476 = vst.msk [vmem:[#allocation3 + $0x48] sm:$0xff] %vm542_vm0, %v3389_v7 }
 0x544   :  { %3477 = vst.msk [vmem:[#allocation3 + $0x70] sm:$0xff] %vm542_vm0, %v3392_v8  ;;  %3420 = vst.msk [vmem:[#allocation3 + $0x30] sm:$0xff] %vm542_vm0, %v3381_v5  ;;  %3430 = vrot.lane.b32.xlu0 %v3387_v37, %s4665_s11  ;;  %3428 = vrot.lane.b32.xlu1 %v3386_v48, %s4665_s11  ;;  %v4628_v37 = vld [vmem:[%s7293_s3 + $0xc8] sm:$0xff]  }
 0x545   :  { %3394 = vst.msk [vmem:[#allocation3] sm:$0xff] %vm542_vm0, %v3378_v46  ;;  %3461 = vst.msk [vmem:[#allocation3 + $0x68] sm:$0xff] %vm542_vm0, %v3390_v23  ;;  %v4629_v48 = vld [vmem:[%s7293_s3 + $0x88] sm:$0xff]   ;;  %v4635_v46 = vld [vmem:[%s7293_s3 + $0x100] sm:$0xff]  }
 0x547   :  { %v3483_v36 = vld [vmem:[#allocation3 + $0x20] sm:$0xff] }
 0x548   :  { %3448 = vrot.lane.b32.xlu0 %v3388_v24, %s4665_s11  ;;  %3408 = vrot.lane.b32.xlu1 %v3384_v47, %s4665_s11  ;;  %v4630_v24 = vld [vmem:[%s7293_s3 + $0xc0] sm:$0xff]  }
 0x54c   :  { %3465 = vrot.lane.b32.xlu0 %v3391_v20, %s4665_s11  ;;  %3446 = vrot.lane.b32.xlu1 %v3385_v3, %s4665_s11  ;;  %v4634_v20 = vld [vmem:[%s7293_s3 + $0x108] sm:$0xff]  }
 0x550   :  { %3450 = vrot.lane.b32.xlu0 %v3389_v7, %s4665_s11  ;;  %3467 = vrot.lane.b32.xlu1 %v3392_v8, %s4665_s11  ;;  %v3488_v7 = vld [vmem:[#allocation3 + $0x48] sm:$0xff] }
 0x551   :  { %v3503_v23 = vpack.c.bf16 %v3488_v7, %v3483_v36 }
 0x554   :  { %3956 = vperm.xlu0 %4458, %v4658_v39   ;;  %3952 = vperm.xlu1 %4459, %v4659_v41   ;;  %v3493_v39 = vld [vmem:[#allocation3 + $0x70] sm:$0xff]  ;;  %v3498_v41 = vld [vmem:[#allocation3 + $0x98] sm:$0xff] }
 0x558   :  { %3964 = vperm.xlu0 %4458, %v4660_v50   ;;  %3960 = vperm.xlu1 %4459, %v4661_v54   ;;  %v3508_v50 = vpack.c.bf16 %v3498_v41, %v3493_v39 }
 0x5ae   :  { %v3407_v34 = vpop.permute.xlu1 %3406  ;;  %v3427_v19 = vpop.permute.xlu0 %3426 }
 0x5af   :  { %3417 = vst.msk [vmem:[#allocation3 + $0x50] sm:$0xff] %vm3414_vm5, %v3407_v34  ;;  %3436 = vst.msk [vmem:[#allocation3 + $0x30] sm:$0xff] %vm3414_vm5, %v3407_v34 }
 0x5b0   :  { %3435 = vst.msk [vmem:[#allocation3 + $0x8] sm:$0xff] %vm3414_vm5, %v3427_v19 }
 0x5b2   :  { %v3405_v62 = vpop.permute.xlu0 %3404  ;;  %v3403_v53 = vpop.permute.xlu1 %3402 }
 0x5b3   :  { %3416 = vst.msk [vmem:[#allocation3 + $0x28] sm:$0xff] %vm3414_vm5, %v3405_v62  ;;  %3415 = vst.msk [vmem:[#allocation3] sm:$0xff] %vm3414_vm5, %v3403_v53 }
 0x5b6   :  { %v3431_v33 = vpop.permute.xlu0 %3430  ;;  %v3429_v60 = vpop.permute.xlu1 %3428  ;;  %v3485_v57 = vld [vmem:[#allocation3 + $0x30] sm:$0xff] }
 0x5b7   :  { %v3480_v52 = vld [vmem:[#allocation3 + $0x8] sm:$0xff]  ;;  %3438 = vst.msk [vmem:[#allocation3 + $0x80] sm:$0xff] %vm3414_vm5, %v3431_v33  ;;  %3471 = vst.msk [vmem:[#allocation3 + $0x18] sm:$0xff] %vm3414_vm5, %v3431_v33  ;;  %v3489_v31 = vld [vmem:[#allocation3 + $0x50] sm:$0xff] }
 0x5b8   :  { %3437 = vst.msk [vmem:[#allocation3 + $0x58] sm:$0xff] %vm3414_vm5, %v3429_v60  ;;  %v3500_v16 = vpack.c.bf16 %v3485_v57, %v3480_v52 }
 0x5ba   :  { %3835 = vmatprep.mubr.bf16.mxu1 %v3500_v16  ;;  %v3449_v55 = vpop.permute.xlu0 %3448  ;;  %v3409_v61 = vpop.permute.xlu1 %3408  ;;  %v3479_v15 = vld [vmem:[#allocation3] sm:$0xff]  ;;  %v3484_v14 = vld [vmem:[#allocation3 + $0x28] sm:$0xff] }
 0x5bb   :  { %3457 = vst.msk [vmem:[#allocation3 + $0x60] sm:$0xff] %vm3414_vm5, %v3449_v55  ;;  %3472 = vst.msk [vmem:[#allocation3 + $0x40] sm:$0xff] %vm3414_vm5, %v3449_v55  ;;  %v3499_v2 = vpack.c.bf16 %v3484_v14, %v3479_v15 }
 0x5bc   :  { %3418 = vst.msk [vmem:[#allocation3 + $0x78] sm:$0xff] %vm3414_vm5, %v3409_v61  ;;  %3455 = vst.msk [vmem:[#allocation3 + $0x10] sm:$0xff] %vm3414_vm5, %v3409_v61 }
 0x5bd   :  { %3836 = vmatmul.mubr.bf16.vlgmr.msra.gmra.mxu1 %v3499_v2 }
 0x5be   :  { %4384 = vmatpush3.bf16.msra.mxu1 %v4617_v6  ;;  %v3466_v38 = vpop.permute.xlu0 %3465  ;;  %v3447_v25 = vpop.permute.xlu1 %3446  ;;  %v3495_v29 = vld [vmem:[#allocation3 + $0x80] sm:$0xff]  ;;  %v3482_v28 = vld [vmem:[#allocation3 + $0x18] sm:$0xff] }
 0x5bf   :  { %v3490_v58 = vld [vmem:[#allocation3 + $0x58] sm:$0xff]  ;;  %3473 = vst.msk [vmem:[#allocation3 + $0x68] sm:$0xff] %vm3414_vm5, %v3466_v38  ;;  %3456 = vst.msk [vmem:[#allocation3 + $0x38] sm:$0xff] %vm3414_vm5, %v3447_v25  ;;  %4385 = vmatprep.subr.bf16.mxu1 %v4618_v42 }
 0x5c0   :  { %v3505_v49 = vpack.c.bf16 %v3495_v29, %v3490_v58 }
 0x5c2   :  { %3843 = vmatprep.mubr.bf16.mxu1 %v3505_v49  ;;  %4386 = vmatpush3.bf16.msra.mxu1 %v4619_v63  ;;  %v3451_v10 = vpop.permute.xlu0 %3450  ;;  %v3468_v45 = vpop.permute.xlu1 %3467  ;;  %v3487_v12 = vld [vmem:[#allocation3 + $0x40] sm:$0xff] }
 0x5c3   :  { %v3494_v13 = vld [vmem:[#allocation3 + $0x78] sm:$0xff]  ;;  %3458 = vst.msk [vmem:[#allocation3 + $0x88] sm:$0xff] %vm3414_vm5, %v3451_v10  ;;  %3474 = vst.msk [vmem:[#allocation3 + $0x90] sm:$0xff] %vm3414_vm5, %v3468_v45  ;;  %4387 = vmatprep.subr.bf16.mxu1 %v4620_v44  ;;  %v3502_v35 = vpack.c.bf16 %v3487_v12, %v3482_v28  ;;  %v3481_v56 = vld [vmem:[#allocation3 + $0x10] sm:$0xff] }
 0x5c4   :  { %v3504_v32 = vpack.c.bf16 %v3494_v13, %v3489_v31  ;;  %v3491_v8 = vld [vmem:[#allocation3 + $0x60] sm:$0xff] }
 0x5c6   :  { %3844 = vmatmul.mubr.bf16.gmra.mxu1 %v3504_v32  ;;  %v3486_v11 = vld [vmem:[#allocation3 + $0x38] sm:$0xff]  ;;  %v3492_v30 = vld [vmem:[#allocation3 + $0x68] sm:$0xff] }
 0x5c7   :  { %4388 = vmatpush3.bf16.msra.mxu1 %v4621_v21  ;;  %3884 = vmatprep.mubr.bf16.mxu1 %v3502_v35  ;;  %v3501_v9 = vpack.c.bf16 %v3486_v11, %v3481_v56 }
 0x5c8   :  { %4389 = vmatprep.subr.bf16.mxu1 %v4622_v0 }
 0x5ca   :  { %v3497_v22 = vld [vmem:[#allocation3 + $0x90] sm:$0xff]  ;;  %v3496_v3 = vld [vmem:[#allocation3 + $0x88] sm:$0xff] }
 0x5cb   :  { %4390 = vmatpush3.bf16.msra.mxu1 %v4623_v51  ;;  %v3507_v47 = vpack.c.bf16 %v3497_v22, %v3492_v30  ;;  %v3506_v5 = vpack.c.bf16 %v3496_v3, %v3491_v8 }
 0x5cc   :  { %4391 = vmatprep.subr.bf16.mxu1 %v4624_v40 }
 0x5cf   :  { %4392 = vmatpush3.bf16.msra.mxu1 %v4625_v17  ;;  %v3953_v31 = vpop.permute.xlu1 %3952  ;;  %v3957_v12 = vpop.permute.xlu0 %3956 }
 0x5d0   :  { %4393 = vmatprep.subr.bf16.mxu1 %v4626_v27 }
 0x5d3   :  { %4394 = vmatpush3.bf16.msra.mxu1 %v4627_v4 }
 0x5d4   :  { %4395 = vmatprep.subr.bf16.mxu1 %v4628_v37  ;;  %v3961_v37 = vpop.permute.xlu1 %3960 }
 0x5d7   :  { %4396 = vmatpush3.bf16.msra.mxu1 %v4629_v48 }
 0x5d8   :  { %4397 = vmatprep.subr.bf16.mxu1 %v4630_v24 }
 0x5db   :  { %4398 = vmatpush3.bf16.msra.mxu1 %v4631_v18  ;;  %v3965_v18 = vpop.permute.xlu0 %3964 }
 0x5dc   :  { %4417 = vmatprep.subr.bf16.mxu1 %v4632_v59 }
 0x5de   :  { %3885 = vmatmul.mubr.bf16.vlgmr.msra.gmra.mxu1 %v3501_v9 }
 0x5df   :  { %3892 = vmatprep.mubr.bf16.mxu1 %v3507_v47  ;;  %4418 = vmatpush3.bf16.msra.mxu1 %v4632_v59 }
 0x5e0   :  { %4419 = vmatprep.subr.bf16.mxu1 %v4633_v26 }
 0x5e3   :  { %4420 = vmatpush3.bf16.msra.mxu1 %v4633_v26 }
 0x5e4   :  { %4421 = vmatprep.subr.bf16.mxu1 %v4634_v20 }
 0x5e6   :  { %3893 = vmatmul.mubr.bf16.gmra.mxu1 %v3506_v5 }
 0x5e7   :  { %4422 = vmatpush3.bf16.msra.mxu1 %v4634_v20  ;;  %4425 = vmatprep.mubr.msk.bf16.mxu1 %vm542_vm0, %v3503_v23 }
 0x5e8   :  { %4423 = vmatprep.subr.bf16.mxu1 %v4635_v46 }
 0x5eb   :  { %4424 = vmatpush3.bf16.msra.mxu1 %v4635_v46 }
 0x5ee   :  { %4426 = vmatmul.mubr.msk.bf16.vlgmr.msra.gmra.mxu1 %vm542_vm0, %v3508_v50 }
 0x67d   :  { %v4371_v54 = vpop.f32.mrf.mxu1 }
 0x67f   :  { %v4372_v34 = vpop.f32.mrf.mxu1 }
 0x680   :  { %v4373_v38 = vadd.f32 %v4372_v34, %v4371_v54 }
 0x681   :  { %v4374_v19 = vpop.f32.mrf.mxu1 }
 0x683   :  { %v4375_v62 = vpop.f32.mrf.mxu1 }
 0x684   :  { %v4376_v10 = vadd.f32 %v4375_v62, %v4374_v19 }
 0x686   :  { %v4377_v53 = vpop.f32.mrf.mxu1 }
 0x688   :  { %v4378_v33 = vpop.f32.mrf.mxu1 }
 0x689   :  { %v4379_v29 = vadd.f32 %v4378_v33, %v4377_v53 }
 0x68a   :  { %v4380_v60 = vpop.f32.mrf.mxu1 }
 0x68c   :  { %v4381_v52 = vpop.f32.mrf.mxu1 }
 0x68d   :  { %v4382_v45 = vadd.f32 %v4381_v52, %v4380_v60 }
 0x69e   :  { %v4399_v57 = vpop.f32.mrf.mxu1 }
 0x6a0   :  { %v4400_v16 = vpop.f32.mrf.mxu1 }
 0x6a1   :  { %v4401_v2 = vadd.f32 %v4400_v16, %v4399_v57 }
 0x6a2   :  { %v4402_v55 = vpop.f32.mrf.mxu1 }
 0x6a3   :  { %v3887_v44 = vadd.f32 %v4401_v2, %v4373_v38 }
 0x6a4   :  { %v4403_v61 = vpop.f32.mrf.mxu1 }
 0x6a5   :  { %v4404_v63 = vadd.f32 %v4403_v61, %v4402_v55 }
 0x6a6   :  { %v4405_v15 = vpop.f32.mrf.mxu1 }
 0x6a7   :  { %v3890_v51 = vadd.f32 %v4404_v63, %v4376_v10 }
 0x6a8   :  { %v4406_v14 = vpop.f32.mrf.mxu1 }
 0x6a9   :  { %v4407_v25 = vadd.f32 %v4406_v14, %v4405_v15 }
 0x6aa   :  { %v4408_v6 = vpop.f32.mrf.mxu1 }
 0x6ab   :  { %v3895_v13 = vadd.f32 %v4407_v25, %v4379_v29 }
 0x6ac   :  { %v4409_v42 = vpop.f32.mrf.mxu1 }
 0x6ad   :  { %v4410_v49 = vadd.f32 %v4409_v42, %v4408_v6 }
 0x6ae   :  { %v4427_v58 = vpop.f32.mrf.mxu1 }
 0x6af   :  { %v7258_v35 = vadd.f32 %v4427_v58, %v3895_v13  ;;  %v3898_v0 = vadd.f32 %v4410_v49, %v4382_v45 }
 0x6b0   :  { %v3935_v21 = vpop.f32.mrf.mxu1 }
 0x6b1   :  { %v7256_v28 = vadd.f32 %v3935_v21, %v3887_v44  ;;  %v3969_v48 = vmul.f32 %v3961_v37, %v7258_v35  ;;  %v3950_v44 = vld [vmem:[%s7295_s6] sm:$0x3] }
 0x6b2   :  { %v4428_v32 = vpop.f32.mrf.mxu1  ;;  %v4015_v45 = vmul.f32 0.25, %v3950_v44 }
 0x6b3   :  { %v3967_v17 = vmul.f32 %v3953_v31, %v7256_v28  ;;  %v7261_v27 = vadd.f32 %v4428_v32, %v3898_v0  ;;  %v3974_v9 = vsel %vm542_vm0, %v3969_v48, 0.0 }
 0x6b4   :  { %v3938_v40 = vpop.f32.mrf.mxu1 }
 0x6b5   :  { %v3939_v4 = vadd.f32 %v3938_v40, %v3890_v51  ;;  %v3971_v59 = vsel %vm542_vm0, %v3967_v17, 0.0  ;;  %v3970_v11 = vmul.f32 %v3965_v18, %v7261_v27 }
 0x6b7   :  { %v3968_v24 = vmul.f32 %v3957_v12, %v3939_v4  ;;  %v3976_v26 = vsel %vm542_vm0, %v3970_v11, 0.0 }
 0x6b9   :  { %v3972_v22 = vsel %vm542_vm0, %v3968_v24, 0.0 }
 0x6ba   :  { %v3973_v56 = vadd.f32 %v3972_v22, %v3971_v59 }
 0x6bc   :  { %v3975_v30 = vadd.f32 %v3974_v9, %v3973_v56 }
 0x6be   :  { %v3977_v47 = vadd.f32 %v3976_v26, %v3975_v30 }
 0x6c0   :  { %v3978_v20 = vrot.slane %v3977_v47, 4 }
 0x6c2   :  { %v3979_v3 = vadd.f32 %v3978_v20, %v3977_v47 }
 0x6c4   :  { %v3980_v36 = vrot.slane %v3979_v3, 2 }
 0x6c6   :  { %v3981_v7 = vadd.f32 %v3980_v36, %v3979_v3 }
 0x6c8   :  { %v3982_v8 = vrot.slane %v3981_v7, 1 }
 0x6ca   :  { %v3983_v5 = vadd.f32 %v3982_v8, %v3981_v7 }
 0x6cc   :  { %v3984_v46 = vmul.f32 0.125, %v3983_v5 }
 0x6ce   :  { %v3985_v23 = vsub.f32 %v7256_v28, %v3984_v46  ;;  %v3986_v39 = vsub.f32 %v3939_v4, %v3984_v46  ;;  %v3987_v41 = vsub.f32 %v7258_v35, %v3984_v46  ;;  %v3988_v50 = vsub.f32 %v7261_v27, %v3984_v46 }
 0x6d0   :  { %v3989_v54 = vmul.f32 %v3985_v23, %v3953_v31  ;;  %v3990_v34 = vmul.f32 %v3986_v39, %v3957_v12  ;;  %v3991_v19 = vmul.f32 %v3987_v41, %v3961_v37  ;;  %v3992_v62 = vmul.f32 %v3988_v50, %v3965_v18 }
 0x6d2   :  { %v3993_v53 = vmul.f32 %v3989_v54, %v3989_v54  ;;  %v3994_v33 = vmul.f32 %v3990_v34, %v3990_v34  ;;  %v3995_v60 = vmul.f32 %v3991_v19, %v3991_v19  ;;  %v3996_v52 = vmul.f32 %v3992_v62, %v3992_v62 }
 0x6d4   :  { %v3997_v57 = vsel %vm542_vm0, %v3993_v53, 0.0  ;;  %v3998_v16 = vsel %vm542_vm0, %v3994_v33, 0.0  ;;  %v4000_v61 = vsel %vm542_vm0, %v3995_v60, 0.0  ;;  %v4002_v14 = vsel %vm542_vm0, %v3996_v52, 0.0 }
 0x6d5   :  { %v3999_v55 = vadd.f32 %v3998_v16, %v3997_v57 }
 0x6d7   :  { %v4001_v15 = vadd.f32 %v4000_v61, %v3999_v55 }
 0x6d9   :  { %v4003_v6 = vadd.f32 %v4002_v14, %v4001_v15 }
 0x6db   :  { %v4004_v2 = vrot.slane %v4003_v6, 4 }
 0x6dd   :  { %v4005_v42 = vadd.f32 %v4004_v2, %v4003_v6 }
 0x6df   :  { %v4006_v38 = vrot.slane %v4005_v42, 2 }
 0x6e1   :  { %v4007_v25 = vadd.f32 %v4006_v38, %v4005_v42 }
 0x6e3   :  { %v4008_v58 = vrot.slane %v4007_v25, 1 }
 0x6e5   :  { %v4009_v29 = vadd.f32 %v4008_v58, %v4007_v25 }
 0x6e7   :  { %v4010_v63 = vmul.f32 0.125, %v4009_v29 }
 0x6e9   :  { %v4011_v49 = vadd.f32 1e-05, %v4010_v63 }
 0x6eb   :  { %4640 = vrsqrt.f32 %v4011_v49 }
 0x6f8   :  { %v4641_v31 = vpop.eup %4640 }
 0x6f9   :  { %v4013_v21 = vmul.f32 %v4641_v31, %v3950_v44 }
 0x6fb   :  { %v4014_v10 = vmul.f32 0.25, %v4013_v21 }
 0x6fd   :  { %v4016_v13 = vmul.f32 %v4014_v10, %v3984_v46  ;;  %v4024_v32 = vrot.slane %v4014_v10, %v7654_v43 }
 0x6ff   :  { %v4018_v12 = vrot.slane %v4016_v13, 7  ;;  %v4025_v51 = vmul.f32 %v4024_v32, %v7256_v28  ;;  %v4026_v40 = vmul.f32 %v4024_v32, %v3939_v4  ;;  %v4027_v17 = vmul.f32 %v4024_v32, %v7258_v35 }
 0x700   :  { %v4028_v48 = vmul.f32 %v4024_v32, %v7261_v27 }
 0x701   :  { %v4020_v0 = vsub.f32 %v4015_v45, %v4018_v12 }
 0x703   :  { %v4032_v37 = vrot.slane %v4020_v0, %v7655_v1 }
 0x705   :  { %v4033_v24 = vadd.f32 %v4032_v37, %v4025_v51  ;;  %v4034_v18 = vadd.f32 %v4032_v37, %v4026_v40  ;;  %v4035_v59 = vadd.f32 %v4032_v37, %v4027_v17  ;;  %v4036_v11 = vadd.f32 %v4032_v37, %v4028_v48 }
 0x707   :  { %v4037_v22 = vmax.f32 %v4033_v24, 0.0  ;;  %v4038_v56 = vmax.f32 %v4034_v18, 0.0  ;;  %v4039_v9 = vmax.f32 %v4035_v59, 0.0  ;;  %v4040_v26 = vmax.f32 %v4036_v11, 0.0 }
 0x709   :  { %v4041_v30 = vadd.f32 %v4038_v56, %v4037_v22 }
 0x70b   :  { %v4042_v43 = vadd.f32 %v4041_v30, %v4039_v9 }
 0x70d   :  { %v4043_v47 = vadd.f32 %v4042_v43, %v4040_v26 }
 0x70f   :  { %4044 = vst.msk [vmem:[%s7296_s8] sm:$0xff] %vm542_vm0, %v4043_v47 }

</bundles_post_ra>
